<compile_context>
chip_gen: v5e
topology: v5e:2x2
jax: 0.10.0
libtpu: 0.0.40
codegen_flags: <defaults>
</compile_context>

<pallas_src>
import functools

import jax
import jax.numpy as jnp
from jax.experimental import pallas as pl
from jax.experimental.pallas import tpu as pltpu


# ----------------------------- Pallas kernels -----------------------------

def _imp_gate_kernel(x_ref, w_ref, mask_ref, imp_ref, gated_ref, *, deltas, halo):
    """conv_imp (SubMConv3d C->27) + fused sigmoid feature gate, channel-major tiles.

    x_ref:     (1, 1, C, TILE_Q + 2*halo)  bf16  input slab (flat padded spatial on lanes)
    w_ref:     (27, Cout, C)               bf16  per-offset transposed conv weights
    mask_ref:  (1, 1, TILE_Q)              f32   active-voxel mask (lane dense)
    imp_ref:   (1, Cout, TILE_Q)           f32   importance logits (lane dense)
    gated_ref: (1, C, TILE_Q)              bf16  gated features   (lane dense)
    """
    tq = imp_ref.shape[2]
    cout = imp_ref.shape[1]
    x = x_ref[0, 0]                                   # (C, TILE_Q + 2*halo)
    mask = mask_ref[0]                                # (1, TILE_Q)

    acc = jnp.zeros((cout, tq), jnp.float32)
    for o, d in enumerate(deltas):                    # 27 shifted MXU dots, f32 accumulate
        s = halo + d
        acc = acc + jnp.dot(w_ref[o], x[:, s:s + tq],
                            preferred_element_type=jnp.float32)
    acc = acc * mask                                  # submanifold: output only at active voxels
    imp_ref[0] = acc

    # fused gate (mask_multi=True): features *= sigmoid(importance[..., -1]).
    # Note: in the reference, *all* active voxels of the batch are gated before the
    # fore/back split, so gating every active voxel here is exact.
    gate = jax.nn.sigmoid(acc[cout - 1:cout, :])      # (1, TILE_Q), EUP
    gated = x[:, halo:halo + tq].astype(jnp.float32) * gate * mask
    gated_ref[0] = gated.astype(gated_ref.dtype)


def _query_conv_kernel(x_ref, w_ref, scale_ref, bias_ref, mask_ref, out_ref, *,
                       deltas, halo):
    """update_query: SubMConv3d(C->C) + BN(eval, folded) + ReLU, masked to active voxels."""
    tq = out_ref.shape[2]
    cout = out_ref.shape[1]
    x = x_ref[0, 0]                                   # (C, TILE_Q + 2*halo) bf16
    mask = mask_ref[0]                                # (1, TILE_Q)

    acc = jnp.zeros((cout, tq), jnp.float32)
    for o, d in enumerate(deltas):
        s = halo + d
        acc = acc + jnp.dot(w_ref[o], x[:, s:s + tq],
                            preferred_element_type=jnp.float32)
    acc = acc * scale_ref[...] + bias_ref[...]        # BN (eval) — (Cout, 1) broadcast
    acc = jnp.maximum(acc, 0.0)                       # ReLU
    out_ref[0] = (acc * mask).astype(out_ref.dtype)


# ----------------------------- Pallas wrappers -----------------------------

def imp_conv_gate(x_slabs, w_t, active, *, deltas, halo, tile_q):
    B, n_t, C, slab_w = x_slabs.shape
    n_off, cout, _ = w_t.shape
    q_total = active.shape[-1]
    kernel = functools.partial(_imp_gate_kernel, deltas=deltas, halo=halo)
    return pl.pallas_call(
        kernel,
        out_shape=(jax.ShapeDtypeStruct((B, cout, q_total), jnp.float32),
                   jax.ShapeDtypeStruct((B, C, q_total), x_slabs.dtype)),
        grid=(B, n_t),
        in_specs=[
            pl.BlockSpec((1, 1, C, slab_w), lambda b, t: (b, t, 0, 0)),
            pl.BlockSpec((n_off, cout, C), lambda b, t: (0, 0, 0)),   # weights resident
            pl.BlockSpec((1, 1, tile_q), lambda b, t: (b, 0, t)),
        ],
        out_specs=(
            pl.BlockSpec((1, cout, tile_q), lambda b, t: (b, 0, t)),
            pl.BlockSpec((1, C, tile_q), lambda b, t: (b, 0, t)),
        ),
        compiler_params=pltpu.CompilerParams(
            dimension_semantics=("parallel", "parallel"),
            vmem_limit_bytes=48 * 1024 * 1024,
        ),
    )(x_slabs, w_t, active)


def query_conv_bn_relu(x_slabs, w_t, scale, bias, active, *, deltas, halo, tile_q):
    B, n_t, C, slab_w = x_slabs.shape
    n_off, cout, _ = w_t.shape
    q_total = active.shape[-1]
    kernel = functools.partial(_query_conv_kernel, deltas=deltas, halo=halo)
    return pl.pallas_call(
        kernel,
        out_shape=jax.ShapeDtypeStruct((B, cout, q_total), jnp.float32),
        grid=(B, n_t),
        in_specs=[
            pl.BlockSpec((1, 1, C, slab_w), lambda b, t: (b, t, 0, 0)),
            pl.BlockSpec((n_off, cout, C), lambda b, t: (0, 0, 0)),
            pl.BlockSpec((cout, 1), lambda b, t: (0, 0)),
            pl.BlockSpec((cout, 1), lambda b, t: (0, 0)),
            pl.BlockSpec((1, 1, tile_q), lambda b, t: (b, 0, t)),
        ],
        out_specs=pl.BlockSpec((1, cout, tile_q), lambda b, t: (b, 0, t)),
        compiler_params=pltpu.CompilerParams(
            dimension_semantics=("parallel", "parallel"),
            vmem_limit_bytes=48 * 1024 * 1024,
        ),
    )(x_slabs, w_t, scale, bias, active)


# ----------------------------- JAX glue -----------------------------

def _make_slabs(grid_t, tile_q, halo, n_t):
    """(B, C, Q) channel-major grid -> (B, n_t, C, tile_q + 2*halo) overlapping slabs.

    Only 2*halo rows per tile are duplicated (vs. 27x for im2col).
    TODO(synk): a manual-DMA halo (memory_space=pl.ANY + make_async_copy) would remove
    even this duplication; kept in XLA here for robustness.
    """
    ext = jnp.pad(grid_t, ((0, 0), (0, 0), (halo, halo)))
    return jnp.stack([ext[:, :, t * tile_q: t * tile_q + tile_q + 2 * halo]
                      for t in range(n_t)], axis=1)


def query_init_forward(feats, coords, params, cfg):
    """Eval-mode forward of QueryInit on a fixed-size sparse voxel set.

    feats:  [B, N, C] float32 sparse voxel features
    coords: [B, N, 3] int32 voxel indices (z, y, x), unique per batch
    returns (updated_query_dense [B, Q, C], out_active [B, Q, 1], voxels_3d, loss)
    where Q is the padded flat spatial size (pad ring + round-up rows are always inactive).
    """
    B, N, C = feats.shape
    D, H, W = cfg["spatial_shape"]
    Dp, Hp, Wp = D + 2, H + 2, W + 2
    S, R = Hp * Wp, Wp
    halo = S + R + 1                       # max |flat offset| of a 3x3x3 neighbour
    n_pad = Dp * S
    tile_q = cfg["tile_q"]
    n_t = pl.cdiv(n_pad, tile_q)
    q_total = n_t * tile_q
    threshold = cfg["threshold"]
    offs = cfg["kernel_offsets"]           # (26, 3), center removed
    inv_idx = jnp.array([2, 1, 0])

    deltas = tuple(dz * S + dy * R + dx
                   for dz in (-1, 0, 1) for dy in (-1, 0, 1) for dx in (-1, 0, 1))

    bidx = jnp.arange(B)[:, None]
    cz, cy, cx = coords[..., 0], coords[..., 1], coords[..., 2]
    flat = (cz + 1) * S + (cy + 1) * R + (cx + 1)          # padded flat spatial index

    # dense channel-major grid (flat padded spatial on lanes) + active-voxel mask
    x_dense = jnp.zeros((B, q_total, C), jnp.float32).at[bidx, flat].set(feats)
    x_dense_t = jnp.transpose(x_dense, (0, 2, 1)).astype(jnp.bfloat16)   # (B, C, Q)
    active = jnp.zeros((B, q_total), jnp.float32).at[bidx, flat].set(1.0)[:, None, :]

    # voxels_3d (only used by the training loss; computed for forward parity)
    voxels_3d = (coords.astype(jnp.float32) * cfg["voxel_stride"]
                 * cfg["voxel_size"][inv_idx] + cfg["point_cloud_range"][:3][inv_idx])

    # ---- conv_imp (SubMConv3d C->27) + fused sigmoid gate (Pallas hot path) ----
    imps_t, gated_t = imp_conv_gate(_make_slabs(x_dense_t, tile_q, halo, n_t),
                                    params["w_imp_t"], active,
                                    deltas=deltas, halo=halo, tile_q=tile_q)

    # ---- split_voxels (mask_multi=True, topk=True) ----
    imps_vox = imps_t[bidx, :, flat]                       # (B, N, 27) at active voxels
    mask_voxel = jax.nn.sigmoid(imps_vox[..., 26])         # (B, N)
    mask_kernel = jax.nn.sigmoid(imps_vox[..., :26])       # (B, N, 26)

    n_fore = int(N * threshold)
    order = jnp.argsort(-mask_voxel, axis=1)
    fore_sel = jnp.zeros((B, N), jnp.bool_).at[bidx, order[:, :n_fore]].set(True)

    cand = coords[:, :, None, :] + offs[None, None]        # (B, N, 26, 3) real coords
    kmask = (mask_kernel >= threshold) & fore_sel[..., None]
    inb = ((cand[..., 0] > 0) & (cand[..., 0] < D) &       # strictly >0 / <dim: matches torch
           (cand[..., 1] > 0) & (cand[..., 1] < H) &
           (cand[..., 2] > 0) & (cand[..., 2] < W))
    valid = (kmask & inb).reshape(B, N * 26)
    cand_flat = ((cand[..., 0] + 1) * S + (cand[..., 1] + 1) * R
                 + (cand[..., 2] + 1)).reshape(B, N * 26)
    cand_flat = jnp.where(valid, cand_flat, 0)
    new_active = jnp.zeros((B, q_total), jnp.float32).at[bidx, cand_flat].max(
        valid.astype(jnp.float32))

    # TODO(synk): torch.unique / unique_consecutive dedup and the variable-length
    # fore/back concatenation have no static-shape Pallas equivalent; the dense
    # active-mask union is semantically equivalent (duplicates collapse, spawned voxels
    # carry zero features, original voxels keep gated features).
    out_active = jnp.maximum(active, new_active[:, None, :])

    # ---- update_query: SubMConv3d(C->C) + BN(eval) + ReLU (Pallas hot path) ----
    updated_t = query_conv_bn_relu(_make_slabs(gated_t, tile_q, halo, n_t),
                                   params["w_q_t"], params["bn_scale"],
                                   params["bn_bias"], out_active,
                                   deltas=deltas, halo=halo, tile_q=tile_q)

    loss_box_of_pts = jnp.zeros((), jnp.float32)           # eval mode: no focal loss
    updated = jnp.transpose(updated_t, (0, 2, 1))          # (B, Q, C) channels-last
    return updated, jnp.transpose(out_active, (0, 2, 1)), voxels_3d, loss_box_of_pts


# ----------------------------- main -----------------------------

if __name__ == "__main__":
    B, N, C = 2, 20, 4
    D, H, W = 8, 8, 8
    # Lane-tile rows per grid step (multiple of 128).  Size per generation:
    # v7x (64 MiB VMEM): keep slab + imp/gated tiles well under the limit; v6e/v5e can
    # use larger tiles.  512 is plenty for the toy grid here.
    TILE_Q = 512

    key = jax.random.PRNGKey(0)
    kf, kc, kw1, kw2 = jax.random.split(key, 4)

    # unique active voxel coordinates per batch
    P_real = D * H * W
    flat_ids = jnp.stack([jax.random.permutation(k, P_real)[:N]
                          for k in jax.random.split(kc, B)])
    coords = jnp.stack([flat_ids // (H * W), (flat_ids // W) % H, flat_ids % W],
                       axis=-1).astype(jnp.int32)
    feats = jax.random.normal(kf, (B, N, C), jnp.float32)

    # SubMConv3d weights in spconv layout [27, Cin, Cout]; kernels take [27, Cout, Cin] bf16
    w_imp = jax.random.normal(kw1, (27, C, 27), jnp.float32) * 0.2
    w_q = jax.random.normal(kw2, (27, C, C), jnp.float32) * 0.2
    gamma = 1.0 + 0.1 * jnp.arange(C, dtype=jnp.float32)
    beta = 0.05 * jnp.arange(C, dtype=jnp.float32)
    rmean = 0.01 * jnp.arange(C, dtype=jnp.float32)
    rvar = jnp.ones((C,), jnp.float32)
    eps = 1e-5
    params = dict(
        w_imp_t=jnp.transpose(w_imp, (0, 2, 1)).astype(jnp.bfloat16),
        w_q_t=jnp.transpose(w_q, (0, 2, 1)).astype(jnp.bfloat16),
        bn_scale=(gamma / jnp.sqrt(rvar + eps)).reshape(C, 1),
        bn_bias=(beta - rmean * gamma / jnp.sqrt(rvar + eps)).reshape(C, 1),
    )

    # 3x3x3 kernel offsets with the center removed (same ordering as the PyTorch module)
    offs_list = [[i, j, k] for i in (-1, 0, 1) for j in (-1, 0, 1) for k in (-1, 0, 1)]
    offs_list.remove([0, 0, 0])
    cfg = dict(
        spatial_shape=(D, H, W),
        threshold=0.5,
        voxel_stride=1,
        voxel_size=jnp.array([0.1, 0.1, 0.2], jnp.float32),
        point_cloud_range=jnp.array([0.0, -40.0, -3.0, 70.4, 40.0, 1.0], jnp.float32),
        kernel_offsets=jnp.array(offs_list, jnp.int32),
        tile_q=TILE_Q,
    )

    # ---- correctness check: fused Pallas imp-conv + gate vs a plain-JAX reference ----
    Dp, Hp, Wp = D + 2, H + 2, W + 2
    S, R = Hp * Wp, Wp
    halo = S + R + 1
    n_pad = Dp * S
    n_t = pl.cdiv(n_pad, TILE_Q)
    q_total = n_t * TILE_Q
    deltas = tuple(dz * S + dy * R + dx
                   for dz in (-1, 0, 1) for dy in (-1, 0, 1) for dx in (-1, 0, 1))
    bidx = jnp.arange(B)[:, None]
    flat = (coords[..., 0] + 1) * S + (coords[..., 1] + 1) * R + (coords[..., 2] + 1)

    x_dense = jnp.zeros((B, q_total, C), jnp.float32).at[bidx, flat].set(feats)
    x_dense_t = jnp.transpose(x_dense, (0, 2, 1)).astype(jnp.bfloat16)
    active = jnp.zeros((B, q_total), jnp.float32).at[bidx, flat].set(1.0)[:, None, :]
    slabs = _make_slabs(x_dense_t, TILE_Q, halo, n_t)
    imps_t, gated_t = imp_conv_gate(slabs, params["w_imp_t"], active,
                                    deltas=deltas, halo=halo, tile_q=TILE_Q)
    imps_vox = imps_t[bidx, :, flat]                       # (B, N, 27)
    gated_vox = gated_t[bidx, :, flat].astype(jnp.float32)  # (B, N, C)

    # plain-JAX reference: 27-offset shifted conv on a channels-last padded grid
    xg = jnp.zeros((B, D, H, W, C), jnp.float32).at[
        bidx, coords[..., 0], coords[..., 1], coords[..., 2]].set(feats)
    xgp = jnp.pad(xg.astype(jnp.bfloat16).astype(jnp.float32),
                  ((0, 0), (1, 1), (1, 1), (1, 1), (0, 0)))
    wf = jnp.transpose(params["w_imp_t"], (0, 2, 1)).astype(jnp.float32)   # (27, C, 27)
    ref = jnp.zeros((B, D, H, W, 27), jnp.float32)
    o = 0
    for dz in (-1, 0, 1):
        for dy in (-1, 0, 1):
            for dx in (-1, 0, 1):
                xs = xgp[:, 1 + dz:1 + dz + D, 1 + dy:1 + dy + H, 1 + dx:1 + dx + W, :]
                ref = ref + jnp.einsum("bdhwc,co->bdhwo", xs, wf[o])
                o += 1
    ref_vox = ref[bidx, coords[..., 0], coords[..., 1], coords[..., 2]]    # (B, N, 27)
    assert jnp.allclose(imps_vox, ref_vox, atol=2e-3, rtol=2e-3), "imp conv mismatch"

    feats_b16 = feats.astype(jnp.bfloat16).astype(jnp.float32)
    ref_gated = feats_b16 * jax.nn.sigmoid(ref_vox[..., 26:27])
    assert jnp.allclose(gated_vox, ref_gated, atol=2e-2, rtol=2e-2), "fused gate mismatch"

    # ---- full forward ----
    updated, out_active, voxels_3d, loss = query_init_forward(feats, coords, params, cfg)
    jax.block_until_ready((updated, out_active, voxels_3d, loss))
    print("KERNEL_OK")
</pallas_src>

<mosaic_0001>
module attributes {stable_mosaic.version = 11 : i64} {
  func.func @_imp_gate_kernel(%arg0: i32, %arg1: i32, %arg2: memref<1x1x4x734xbf16, #tpu.memory_space<vmem>>, %arg3: memref<27x27x4xbf16, #tpu.memory_space<vmem>>, %arg4: memref<1x1x512xf32, #tpu.memory_space<vmem>>, %arg5: memref<1x27x512xf32, #tpu.memory_space<vmem>>, %arg6: memref<1x4x512xbf16, #tpu.memory_space<vmem>>) attributes {dimension_semantics = [#tpu.dimension_semantics<parallel>, #tpu.dimension_semantics<parallel>], iteration_bounds = array<i64: 2, 2>, scalar_prefetch = 0 : i64, scratch_operands = 0 : i64, tpu.core_type = #tpu.core_type<tc>, window_params = [{transform_indices = @transform_0, window_bounds = array<i64: 1, 1, 4, 734>}, {pipeline_mode = #tpu.pipeline_mode<synchronous>, transform_indices = @transform_1, window_bounds = array<i64: 27, 27, 4>}, {transform_indices = @transform_2, window_bounds = array<i64: 1, 1, 512>}, {transform_indices = @transform_3, window_bounds = array<i64: 1, 27, 512>}, {transform_indices = @transform_4, window_bounds = array<i64: 1, 4, 512>}]} {
    %c0 = arith.constant 0 : index
    %c0_0 = arith.constant 0 : index
    %c0_1 = arith.constant 0 : index
    %c0_2 = arith.constant 0 : index
    %0 = vector.load %arg2[%c0, %c0_0, %c0_1, %c0_2] : memref<1x1x4x734xbf16, #tpu.memory_space<vmem>>, vector<1x1x4x734xbf16>
    %1 = vector.shape_cast %0 : vector<1x1x4x734xbf16> to vector<4x734xbf16>
    %c0_3 = arith.constant 0 : index
    %c0_4 = arith.constant 0 : index
    %c0_5 = arith.constant 0 : index
    %2 = vector.load %arg4[%c0_3, %c0_4, %c0_5] : memref<1x1x512xf32, #tpu.memory_space<vmem>>, vector<1x1x512xf32>
    %3 = vector.shape_cast %2 : vector<1x1x512xf32> to vector<1x512xf32>
    %cst = arith.constant 0.000000e+00 : f32
    %4 = vector.broadcast %cst : f32 to vector<27x512xf32>
    %c0_6 = arith.constant 0 : index
    %c0_7 = arith.constant 0 : index
    %c0_8 = arith.constant 0 : index
    %5 = vector.load %arg3[%c0_6, %c0_7, %c0_8] : memref<27x27x4xbf16, #tpu.memory_space<vmem>>, vector<1x27x4xbf16>
    %6 = vector.shape_cast %5 : vector<1x27x4xbf16> to vector<27x4xbf16>
    %7 = vector.extract_strided_slice %1 {offsets = [0, 0], sizes = [4, 512], strides = [1, 1]} : vector<4x734xbf16> to vector<4x512xbf16>
    %cst_9 = arith.constant dense<0.000000e+00> : vector<27x512xf32>
    %8 = tpu.matmul %6, %7, %cst_9 {dimension_numbers = #tpu.dot_dimension_numbers<[1], [0], [0], [1], [0, 0, 1, 1], [], []>} : vector<27x4xbf16>, vector<4x512xbf16>, vector<27x512xf32> -> vector<27x512xf32>
    %9 = arith.addf %4, %8 : vector<27x512xf32>
    %c1 = arith.constant 1 : index
    %c0_10 = arith.constant 0 : index
    %c0_11 = arith.constant 0 : index
    %10 = vector.load %arg3[%c1, %c0_10, %c0_11] : memref<27x27x4xbf16, #tpu.memory_space<vmem>>, vector<1x27x4xbf16>
    %11 = vector.shape_cast %10 : vector<1x27x4xbf16> to vector<27x4xbf16>
    %12 = vector.extract_strided_slice %1 {offsets = [0, 1], sizes = [4, 512], strides = [1, 1]} : vector<4x734xbf16> to vector<4x512xbf16>
    %cst_12 = arith.constant dense<0.000000e+00> : vector<27x512xf32>
    %13 = tpu.matmul %11, %12, %cst_12 {dimension_numbers = #tpu.dot_dimension_numbers<[1], [0], [0], [1], [0, 0, 1, 1], [], []>} : vector<27x4xbf16>, vector<4x512xbf16>, vector<27x512xf32> -> vector<27x512xf32>
    %14 = arith.addf %9, %13 : vector<27x512xf32>
    %c2 = arith.constant 2 : index
    %c0_13 = arith.constant 0 : index
    %c0_14 = arith.constant 0 : index
    %15 = vector.load %arg3[%c2, %c0_13, %c0_14] : memref<27x27x4xbf16, #tpu.memory_space<vmem>>, vector<1x27x4xbf16>
    %16 = vector.shape_cast %15 : vector<1x27x4xbf16> to vector<27x4xbf16>
    %17 = vector.extract_strided_slice %1 {offsets = [0, 2], sizes = [4, 512], strides = [1, 1]} : vector<4x734xbf16> to vector<4x512xbf16>
    %cst_15 = arith.constant dense<0.000000e+00> : vector<27x512xf32>
    %18 = tpu.matmul %16, %17, %cst_15 {dimension_numbers = #tpu.dot_dimension_numbers<[1], [0], [0], [1], [0, 0, 1, 1], [], []>} : vector<27x4xbf16>, vector<4x512xbf16>, vector<27x512xf32> -> vector<27x512xf32>
    %19 = arith.addf %14, %18 : vector<27x512xf32>
    %c3 = arith.constant 3 : index
    %c0_16 = arith.constant 0 : index
    %c0_17 = arith.constant 0 : index
    %20 = vector.load %arg3[%c3, %c0_16, %c0_17] : memref<27x27x4xbf16, #tpu.memory_space<vmem>>, vector<1x27x4xbf16>
    %21 = vector.shape_cast %20 : vector<1x27x4xbf16> to vector<27x4xbf16>
    %22 = vector.extract_strided_slice %1 {offsets = [0, 10], sizes = [4, 512], strides = [1, 1]} : vector<4x734xbf16> to vector<4x512xbf16>
    %cst_18 = arith.constant dense<0.000000e+00> : vector<27x512xf32>
    %23 = tpu.matmul %21, %22, %cst_18 {dimension_numbers = #tpu.dot_dimension_numbers<[1], [0], [0], [1], [0, 0, 1, 1], [], []>} : vector<27x4xbf16>, vector<4x512xbf16>, vector<27x512xf32> -> vector<27x512xf32>
    %24 = arith.addf %19, %23 : vector<27x512xf32>
    %c4 = arith.constant 4 : index
    %c0_19 = arith.constant 0 : index
    %c0_20 = arith.constant 0 : index
    %25 = vector.load %arg3[%c4, %c0_19, %c0_20] : memref<27x27x4xbf16, #tpu.memory_space<vmem>>, vector<1x27x4xbf16>
    %26 = vector.shape_cast %25 : vector<1x27x4xbf16> to vector<27x4xbf16>
    %27 = vector.extract_strided_slice %1 {offsets = [0, 11], sizes = [4, 512], strides = [1, 1]} : vector<4x734xbf16> to vector<4x512xbf16>
    %cst_21 = arith.constant dense<0.000000e+00> : vector<27x512xf32>
    %28 = tpu.matmul %26, %27, %cst_21 {dimension_numbers = #tpu.dot_dimension_numbers<[1], [0], [0], [1], [0, 0, 1, 1], [], []>} : vector<27x4xbf16>, vector<4x512xbf16>, vector<27x512xf32> -> vector<27x512xf32>
    %29 = arith.addf %24, %28 : vector<27x512xf32>
    %c5 = arith.constant 5 : index
    %c0_22 = arith.constant 0 : index
    %c0_23 = arith.constant 0 : index
    %30 = vector.load %arg3[%c5, %c0_22, %c0_23] : memref<27x27x4xbf16, #tpu.memory_space<vmem>>, vector<1x27x4xbf16>
    %31 = vector.shape_cast %30 : vector<1x27x4xbf16> to vector<27x4xbf16>
    %32 = vector.extract_strided_slice %1 {offsets = [0, 12], sizes = [4, 512], strides = [1, 1]} : vector<4x734xbf16> to vector<4x512xbf16>
    %cst_24 = arith.constant dense<0.000000e+00> : vector<27x512xf32>
    %33 = tpu.matmul %31, %32, %cst_24 {dimension_numbers = #tpu.dot_dimension_numbers<[1], [0], [0], [1], [0, 0, 1, 1], [], []>} : vector<27x4xbf16>, vector<4x512xbf16>, vector<27x512xf32> -> vector<27x512xf32>
    %34 = arith.addf %29, %33 : vector<27x512xf32>
    %c6 = arith.constant 6 : index
    %c0_25 = arith.constant 0 : index
    %c0_26 = arith.constant 0 : index
    %35 = vector.load %arg3[%c6, %c0_25, %c0_26] : memref<27x27x4xbf16, #tpu.memory_space<vmem>>, vector<1x27x4xbf16>
    %36 = vector.shape_cast %35 : vector<1x27x4xbf16> to vector<27x4xbf16>
    %37 = vector.extract_strided_slice %1 {offsets = [0, 20], sizes = [4, 512], strides = [1, 1]} : vector<4x734xbf16> to vector<4x512xbf16>
    %cst_27 = arith.constant dense<0.000000e+00> : vector<27x512xf32>
    %38 = tpu.matmul %36, %37, %cst_27 {dimension_numbers = #tpu.dot_dimension_numbers<[1], [0], [0], [1], [0, 0, 1, 1], [], []>} : vector<27x4xbf16>, vector<4x512xbf16>, vector<27x512xf32> -> vector<27x512xf32>
    %39 = arith.addf %34, %38 : vector<27x512xf32>
    %c7 = arith.constant 7 : index
    %c0_28 = arith.constant 0 : index
    %c0_29 = arith.constant 0 : index
    %40 = vector.load %arg3[%c7, %c0_28, %c0_29] : memref<27x27x4xbf16, #tpu.memory_space<vmem>>, vector<1x27x4xbf16>
    %41 = vector.shape_cast %40 : vector<1x27x4xbf16> to vector<27x4xbf16>
    %42 = vector.extract_strided_slice %1 {offsets = [0, 21], sizes = [4, 512], strides = [1, 1]} : vector<4x734xbf16> to vector<4x512xbf16>
    %cst_30 = arith.constant dense<0.000000e+00> : vector<27x512xf32>
    %43 = tpu.matmul %41, %42, %cst_30 {dimension_numbers = #tpu.dot_dimension_numbers<[1], [0], [0], [1], [0, 0, 1, 1], [], []>} : vector<27x4xbf16>, vector<4x512xbf16>, vector<27x512xf32> -> vector<27x512xf32>
    %44 = arith.addf %39, %43 : vector<27x512xf32>
    %c8 = arith.constant 8 : index
    %c0_31 = arith.constant 0 : index
    %c0_32 = arith.constant 0 : index
    %45 = vector.load %arg3[%c8, %c0_31, %c0_32] : memref<27x27x4xbf16, #tpu.memory_space<vmem>>, vector<1x27x4xbf16>
    %46 = vector.shape_cast %45 : vector<1x27x4xbf16> to vector<27x4xbf16>
    %47 = vector.extract_strided_slice %1 {offsets = [0, 22], sizes = [4, 512], strides = [1, 1]} : vector<4x734xbf16> to vector<4x512xbf16>
    %cst_33 = arith.constant dense<0.000000e+00> : vector<27x512xf32>
    %48 = tpu.matmul %46, %47, %cst_33 {dimension_numbers = #tpu.dot_dimension_numbers<[1], [0], [0], [1], [0, 0, 1, 1], [], []>} : vector<27x4xbf16>, vector<4x512xbf16>, vector<27x512xf32> -> vector<27x512xf32>
    %49 = arith.addf %44, %48 : vector<27x512xf32>
    %c9 = arith.constant 9 : index
    %c0_34 = arith.constant 0 : index
    %c0_35 = arith.constant 0 : index
    %50 = vector.load %arg3[%c9, %c0_34, %c0_35] : memref<27x27x4xbf16, #tpu.memory_space<vmem>>, vector<1x27x4xbf16>
    %51 = vector.shape_cast %50 : vector<1x27x4xbf16> to vector<27x4xbf16>
    %52 = vector.extract_strided_slice %1 {offsets = [0, 100], sizes = [4, 512], strides = [1, 1]} : vector<4x734xbf16> to vector<4x512xbf16>
    %cst_36 = arith.constant dense<0.000000e+00> : vector<27x512xf32>
    %53 = tpu.matmul %51, %52, %cst_36 {dimension_numbers = #tpu.dot_dimension_numbers<[1], [0], [0], [1], [0, 0, 1, 1], [], []>} : vector<27x4xbf16>, vector<4x512xbf16>, vector<27x512xf32> -> vector<27x512xf32>
    %54 = arith.addf %49, %53 : vector<27x512xf32>
    %c10 = arith.constant 10 : index
    %c0_37 = arith.constant 0 : index
    %c0_38 = arith.constant 0 : index
    %55 = vector.load %arg3[%c10, %c0_37, %c0_38] : memref<27x27x4xbf16, #tpu.memory_space<vmem>>, vector<1x27x4xbf16>
    %56 = vector.shape_cast %55 : vector<1x27x4xbf16> to vector<27x4xbf16>
    %57 = vector.extract_strided_slice %1 {offsets = [0, 101], sizes = [4, 512], strides = [1, 1]} : vector<4x734xbf16> to vector<4x512xbf16>
    %cst_39 = arith.constant dense<0.000000e+00> : vector<27x512xf32>
    %58 = tpu.matmul %56, %57, %cst_39 {dimension_numbers = #tpu.dot_dimension_numbers<[1], [0], [0], [1], [0, 0, 1, 1], [], []>} : vector<27x4xbf16>, vector<4x512xbf16>, vector<27x512xf32> -> vector<27x512xf32>
    %59 = arith.addf %54, %58 : vector<27x512xf32>
    %c11 = arith.constant 11 : index
    %c0_40 = arith.constant 0 : index
    %c0_41 = arith.constant 0 : index
    %60 = vector.load %arg3[%c11, %c0_40, %c0_41] : memref<27x27x4xbf16, #tpu.memory_space<vmem>>, vector<1x27x4xbf16>
    %61 = vector.shape_cast %60 : vector<1x27x4xbf16> to vector<27x4xbf16>
    %62 = vector.extract_strided_slice %1 {offsets = [0, 102], sizes = [4, 512], strides = [1, 1]} : vector<4x734xbf16> to vector<4x512xbf16>
    %cst_42 = arith.constant dense<0.000000e+00> : vector<27x512xf32>
    %63 = tpu.matmul %61, %62, %cst_42 {dimension_numbers = #tpu.dot_dimension_numbers<[1], [0], [0], [1], [0, 0, 1, 1], [], []>} : vector<27x4xbf16>, vector<4x512xbf16>, vector<27x512xf32> -> vector<27x512xf32>
    %64 = arith.addf %59, %63 : vector<27x512xf32>
    %c12 = arith.constant 12 : index
    %c0_43 = arith.constant 0 : index
    %c0_44 = arith.constant 0 : index
    %65 = vector.load %arg3[%c12, %c0_43, %c0_44] : memref<27x27x4xbf16, #tpu.memory_space<vmem>>, vector<1x27x4xbf16>
    %66 = vector.shape_cast %65 : vector<1x27x4xbf16> to vector<27x4xbf16>
    %67 = vector.extract_strided_slice %1 {offsets = [0, 110], sizes = [4, 512], strides = [1, 1]} : vector<4x734xbf16> to vector<4x512xbf16>
    %cst_45 = arith.constant dense<0.000000e+00> : vector<27x512xf32>
    %68 = tpu.matmul %66, %67, %cst_45 {dimension_numbers = #tpu.dot_dimension_numbers<[1], [0], [0], [1], [0, 0, 1, 1], [], []>} : vector<27x4xbf16>, vector<4x512xbf16>, vector<27x512xf32> -> vector<27x512xf32>
    %69 = arith.addf %64, %68 : vector<27x512xf32>
    %c13 = arith.constant 13 : index
    %c0_46 = arith.constant 0 : index
    %c0_47 = arith.constant 0 : index
    %70 = vector.load %arg3[%c13, %c0_46, %c0_47] : memref<27x27x4xbf16, #tpu.memory_space<vmem>>, vector<1x27x4xbf16>
    %71 = vector.shape_cast %70 : vector<1x27x4xbf16> to vector<27x4xbf16>
    %72 = vector.extract_strided_slice %1 {offsets = [0, 111], sizes = [4, 512], strides = [1, 1]} : vector<4x734xbf16> to vector<4x512xbf16>
    %cst_48 = arith.constant dense<0.000000e+00> : vector<27x512xf32>
    %73 = tpu.matmul %71, %72, %cst_48 {dimension_numbers = #tpu.dot_dimension_numbers<[1], [0], [0], [1], [0, 0, 1, 1], [], []>} : vector<27x4xbf16>, vector<4x512xbf16>, vector<27x512xf32> -> vector<27x512xf32>
    %74 = arith.addf %69, %73 : vector<27x512xf32>
    %c14 = arith.constant 14 : index
    %c0_49 = arith.constant 0 : index
    %c0_50 = arith.constant 0 : index
    %75 = vector.load %arg3[%c14, %c0_49, %c0_50] : memref<27x27x4xbf16, #tpu.memory_space<vmem>>, vector<1x27x4xbf16>
    %76 = vector.shape_cast %75 : vector<1x27x4xbf16> to vector<27x4xbf16>
    %77 = vector.extract_strided_slice %1 {offsets = [0, 112], sizes = [4, 512], strides = [1, 1]} : vector<4x734xbf16> to vector<4x512xbf16>
    %cst_51 = arith.constant dense<0.000000e+00> : vector<27x512xf32>
    %78 = tpu.matmul %76, %77, %cst_51 {dimension_numbers = #tpu.dot_dimension_numbers<[1], [0], [0], [1], [0, 0, 1, 1], [], []>} : vector<27x4xbf16>, vector<4x512xbf16>, vector<27x512xf32> -> vector<27x512xf32>
    %79 = arith.addf %74, %78 : vector<27x512xf32>
    %c15 = arith.constant 15 : index
    %c0_52 = arith.constant 0 : index
    %c0_53 = arith.constant 0 : index
    %80 = vector.load %arg3[%c15, %c0_52, %c0_53] : memref<27x27x4xbf16, #tpu.memory_space<vmem>>, vector<1x27x4xbf16>
    %81 = vector.shape_cast %80 : vector<1x27x4xbf16> to vector<27x4xbf16>
    %82 = vector.extract_strided_slice %1 {offsets = [0, 120], sizes = [4, 512], strides = [1, 1]} : vector<4x734xbf16> to vector<4x512xbf16>
    %cst_54 = arith.constant dense<0.000000e+00> : vector<27x512xf32>
    %83 = tpu.matmul %81, %82, %cst_54 {dimension_numbers = #tpu.dot_dimension_numbers<[1], [0], [0], [1], [0, 0, 1, 1], [], []>} : vector<27x4xbf16>, vector<4x512xbf16>, vector<27x512xf32> -> vector<27x512xf32>
    %84 = arith.addf %79, %83 : vector<27x512xf32>
    %c16 = arith.constant 16 : index
    %c0_55 = arith.constant 0 : index
    %c0_56 = arith.constant 0 : index
    %85 = vector.load %arg3[%c16, %c0_55, %c0_56] : memref<27x27x4xbf16, #tpu.memory_space<vmem>>, vector<1x27x4xbf16>
    %86 = vector.shape_cast %85 : vector<1x27x4xbf16> to vector<27x4xbf16>
    %87 = vector.extract_strided_slice %1 {offsets = [0, 121], sizes = [4, 512], strides = [1, 1]} : vector<4x734xbf16> to vector<4x512xbf16>
    %cst_57 = arith.constant dense<0.000000e+00> : vector<27x512xf32>
    %88 = tpu.matmul %86, %87, %cst_57 {dimension_numbers = #tpu.dot_dimension_numbers<[1], [0], [0], [1], [0, 0, 1, 1], [], []>} : vector<27x4xbf16>, vector<4x512xbf16>, vector<27x512xf32> -> vector<27x512xf32>
    %89 = arith.addf %84, %88 : vector<27x512xf32>
    %c17 = arith.constant 17 : index
    %c0_58 = arith.constant 0 : index
    %c0_59 = arith.constant 0 : index
    %90 = vector.load %arg3[%c17, %c0_58, %c0_59] : memref<27x27x4xbf16, #tpu.memory_space<vmem>>, vector<1x27x4xbf16>
    %91 = vector.shape_cast %90 : vector<1x27x4xbf16> to vector<27x4xbf16>
    %92 = vector.extract_strided_slice %1 {offsets = [0, 122], sizes = [4, 512], strides = [1, 1]} : vector<4x734xbf16> to vector<4x512xbf16>
    %cst_60 = arith.constant dense<0.000000e+00> : vector<27x512xf32>
    %93 = tpu.matmul %91, %92, %cst_60 {dimension_numbers = #tpu.dot_dimension_numbers<[1], [0], [0], [1], [0, 0, 1, 1], [], []>} : vector<27x4xbf16>, vector<4x512xbf16>, vector<27x512xf32> -> vector<27x512xf32>
    %94 = arith.addf %89, %93 : vector<27x512xf32>
    %c18 = arith.constant 18 : index
    %c0_61 = arith.constant 0 : index
    %c0_62 = arith.constant 0 : index
    %95 = vector.load %arg3[%c18, %c0_61, %c0_62] : memref<27x27x4xbf16, #tpu.memory_space<vmem>>, vector<1x27x4xbf16>
    %96 = vector.shape_cast %95 : vector<1x27x4xbf16> to vector<27x4xbf16>
    %97 = vector.extract_strided_slice %1 {offsets = [0, 200], sizes = [4, 512], strides = [1, 1]} : vector<4x734xbf16> to vector<4x512xbf16>
    %cst_63 = arith.constant dense<0.000000e+00> : vector<27x512xf32>
    %98 = tpu.matmul %96, %97, %cst_63 {dimension_numbers = #tpu.dot_dimension_numbers<[1], [0], [0], [1], [0, 0, 1, 1], [], []>} : vector<27x4xbf16>, vector<4x512xbf16>, vector<27x512xf32> -> vector<27x512xf32>
    %99 = arith.addf %94, %98 : vector<27x512xf32>
    %c19 = arith.constant 19 : index
    %c0_64 = arith.constant 0 : index
    %c0_65 = arith.constant 0 : index
    %100 = vector.load %arg3[%c19, %c0_64, %c0_65] : memref<27x27x4xbf16, #tpu.memory_space<vmem>>, vector<1x27x4xbf16>
    %101 = vector.shape_cast %100 : vector<1x27x4xbf16> to vector<27x4xbf16>
    %102 = vector.extract_strided_slice %1 {offsets = [0, 201], sizes = [4, 512], strides = [1, 1]} : vector<4x734xbf16> to vector<4x512xbf16>
    %cst_66 = arith.constant dense<0.000000e+00> : vector<27x512xf32>
    %103 = tpu.matmul %101, %102, %cst_66 {dimension_numbers = #tpu.dot_dimension_numbers<[1], [0], [0], [1], [0, 0, 1, 1], [], []>} : vector<27x4xbf16>, vector<4x512xbf16>, vector<27x512xf32> -> vector<27x512xf32>
    %104 = arith.addf %99, %103 : vector<27x512xf32>
    %c20 = arith.constant 20 : index
    %c0_67 = arith.constant 0 : index
    %c0_68 = arith.constant 0 : index
    %105 = vector.load %arg3[%c20, %c0_67, %c0_68] : memref<27x27x4xbf16, #tpu.memory_space<vmem>>, vector<1x27x4xbf16>
    %106 = vector.shape_cast %105 : vector<1x27x4xbf16> to vector<27x4xbf16>
    %107 = vector.extract_strided_slice %1 {offsets = [0, 202], sizes = [4, 512], strides = [1, 1]} : vector<4x734xbf16> to vector<4x512xbf16>
    %cst_69 = arith.constant dense<0.000000e+00> : vector<27x512xf32>
    %108 = tpu.matmul %106, %107, %cst_69 {dimension_numbers = #tpu.dot_dimension_numbers<[1], [0], [0], [1], [0, 0, 1, 1], [], []>} : vector<27x4xbf16>, vector<4x512xbf16>, vector<27x512xf32> -> vector<27x512xf32>
    %109 = arith.addf %104, %108 : vector<27x512xf32>
    %c21 = arith.constant 21 : index
    %c0_70 = arith.constant 0 : index
    %c0_71 = arith.constant 0 : index
    %110 = vector.load %arg3[%c21, %c0_70, %c0_71] : memref<27x27x4xbf16, #tpu.memory_space<vmem>>, vector<1x27x4xbf16>
    %111 = vector.shape_cast %110 : vector<1x27x4xbf16> to vector<27x4xbf16>
    %112 = vector.extract_strided_slice %1 {offsets = [0, 210], sizes = [4, 512], strides = [1, 1]} : vector<4x734xbf16> to vector<4x512xbf16>
    %cst_72 = arith.constant dense<0.000000e+00> : vector<27x512xf32>
    %113 = tpu.matmul %111, %112, %cst_72 {dimension_numbers = #tpu.dot_dimension_numbers<[1], [0], [0], [1], [0, 0, 1, 1], [], []>} : vector<27x4xbf16>, vector<4x512xbf16>, vector<27x512xf32> -> vector<27x512xf32>
    %114 = arith.addf %109, %113 : vector<27x512xf32>
    %c22 = arith.constant 22 : index
    %c0_73 = arith.constant 0 : index
    %c0_74 = arith.constant 0 : index
    %115 = vector.load %arg3[%c22, %c0_73, %c0_74] : memref<27x27x4xbf16, #tpu.memory_space<vmem>>, vector<1x27x4xbf16>
    %116 = vector.shape_cast %115 : vector<1x27x4xbf16> to vector<27x4xbf16>
    %117 = vector.extract_strided_slice %1 {offsets = [0, 211], sizes = [4, 512], strides = [1, 1]} : vector<4x734xbf16> to vector<4x512xbf16>
    %cst_75 = arith.constant dense<0.000000e+00> : vector<27x512xf32>
    %118 = tpu.matmul %116, %117, %cst_75 {dimension_numbers = #tpu.dot_dimension_numbers<[1], [0], [0], [1], [0, 0, 1, 1], [], []>} : vector<27x4xbf16>, vector<4x512xbf16>, vector<27x512xf32> -> vector<27x512xf32>
    %119 = arith.addf %114, %118 : vector<27x512xf32>
    %c23 = arith.constant 23 : index
    %c0_76 = arith.constant 0 : index
    %c0_77 = arith.constant 0 : index
    %120 = vector.load %arg3[%c23, %c0_76, %c0_77] : memref<27x27x4xbf16, #tpu.memory_space<vmem>>, vector<1x27x4xbf16>
    %121 = vector.shape_cast %120 : vector<1x27x4xbf16> to vector<27x4xbf16>
    %122 = vector.extract_strided_slice %1 {offsets = [0, 212], sizes = [4, 512], strides = [1, 1]} : vector<4x734xbf16> to vector<4x512xbf16>
    %cst_78 = arith.constant dense<0.000000e+00> : vector<27x512xf32>
    %123 = tpu.matmul %121, %122, %cst_78 {dimension_numbers = #tpu.dot_dimension_numbers<[1], [0], [0], [1], [0, 0, 1, 1], [], []>} : vector<27x4xbf16>, vector<4x512xbf16>, vector<27x512xf32> -> vector<27x512xf32>
    %124 = arith.addf %119, %123 : vector<27x512xf32>
    %c24 = arith.constant 24 : index
    %c0_79 = arith.constant 0 : index
    %c0_80 = arith.constant 0 : index
    %125 = vector.load %arg3[%c24, %c0_79, %c0_80] : memref<27x27x4xbf16, #tpu.memory_space<vmem>>, vector<1x27x4xbf16>
    %126 = vector.shape_cast %125 : vector<1x27x4xbf16> to vector<27x4xbf16>
    %127 = vector.extract_strided_slice %1 {offsets = [0, 220], sizes = [4, 512], strides = [1, 1]} : vector<4x734xbf16> to vector<4x512xbf16>
    %cst_81 = arith.constant dense<0.000000e+00> : vector<27x512xf32>
    %128 = tpu.matmul %126, %127, %cst_81 {dimension_numbers = #tpu.dot_dimension_numbers<[1], [0], [0], [1], [0, 0, 1, 1], [], []>} : vector<27x4xbf16>, vector<4x512xbf16>, vector<27x512xf32> -> vector<27x512xf32>
    %129 = arith.addf %124, %128 : vector<27x512xf32>
    %c25 = arith.constant 25 : index
    %c0_82 = arith.constant 0 : index
    %c0_83 = arith.constant 0 : index
    %130 = vector.load %arg3[%c25, %c0_82, %c0_83] : memref<27x27x4xbf16, #tpu.memory_space<vmem>>, vector<1x27x4xbf16>
    %131 = vector.shape_cast %130 : vector<1x27x4xbf16> to vector<27x4xbf16>
    %132 = vector.extract_strided_slice %1 {offsets = [0, 221], sizes = [4, 512], strides = [1, 1]} : vector<4x734xbf16> to vector<4x512xbf16>
    %cst_84 = arith.constant dense<0.000000e+00> : vector<27x512xf32>
    %133 = tpu.matmul %131, %132, %cst_84 {dimension_numbers = #tpu.dot_dimension_numbers<[1], [0], [0], [1], [0, 0, 1, 1], [], []>} : vector<27x4xbf16>, vector<4x512xbf16>, vector<27x512xf32> -> vector<27x512xf32>
    %134 = arith.addf %129, %133 : vector<27x512xf32>
    %c26 = arith.constant 26 : index
    %c0_85 = arith.constant 0 : index
    %c0_86 = arith.constant 0 : index
    %135 = vector.load %arg3[%c26, %c0_85, %c0_86] : memref<27x27x4xbf16, #tpu.memory_space<vmem>>, vector<1x27x4xbf16>
    %136 = vector.shape_cast %135 : vector<1x27x4xbf16> to vector<27x4xbf16>
    %137 = vector.extract_strided_slice %1 {offsets = [0, 222], sizes = [4, 512], strides = [1, 1]} : vector<4x734xbf16> to vector<4x512xbf16>
    %cst_87 = arith.constant dense<0.000000e+00> : vector<27x512xf32>
    %138 = tpu.matmul %136, %137, %cst_87 {dimension_numbers = #tpu.dot_dimension_numbers<[1], [0], [0], [1], [0, 0, 1, 1], [], []>} : vector<27x4xbf16>, vector<4x512xbf16>, vector<27x512xf32> -> vector<27x512xf32>
    %139 = arith.addf %134, %138 : vector<27x512xf32>
    %140 = vector.broadcast %3 : vector<1x512xf32> to vector<27x512xf32>
    %141 = arith.mulf %139, %140 : vector<27x512xf32>
    %c0_88 = arith.constant 0 : index
    %c0_89 = arith.constant 0 : index
    %c0_90 = arith.constant 0 : index
    %142 = vector.load %arg5[%c0_88, %c0_89, %c0_90] : memref<1x27x512xf32, #tpu.memory_space<vmem>>, vector<1x27x512xf32>
    %143 = vector.shape_cast %142 : vector<1x27x512xf32> to vector<27x512xf32>
    %144 = vector.shape_cast %141 : vector<27x512xf32> to vector<1x27x512xf32>
    tpu.vector_store %arg5[%c0_88, %c0_89, %c0_90], %144 {strides = array<i32>} : memref<1x27x512xf32, #tpu.memory_space<vmem>>, vector<1x27x512xf32>,
    %145 = vector.extract_strided_slice %141 {offsets = [26, 0], sizes = [1, 512], strides = [1, 1]} : vector<27x512xf32> to vector<1x512xf32>
    %146 = arith.negf %145 : vector<1x512xf32>
    %147 = math.exp %146 : vector<1x512xf32>
    %cst_91 = arith.constant 1.000000e+00 : f32
    %148 = vector.broadcast %cst_91 : f32 to vector<1x512xf32>
    %149 = arith.addf %148, %147 : vector<1x512xf32>
    %150 = arith.divf %148, %149 : vector<1x512xf32>
    %151 = vector.extract_strided_slice %1 {offsets = [0, 111], sizes = [4, 512], strides = [1, 1]} : vector<4x734xbf16> to vector<4x512xbf16>
    %152 = arith.extf %151 : vector<4x512xbf16> to vector<4x512xf32>
    %153 = vector.broadcast %150 : vector<1x512xf32> to vector<4x512xf32>
    %154 = arith.mulf %152, %153 : vector<4x512xf32>
    %155 = vector.broadcast %3 : vector<1x512xf32> to vector<4x512xf32>
    %156 = arith.mulf %154, %155 : vector<4x512xf32>
    %157 = arith.truncf %156 : vector<4x512xf32> to vector<4x512xbf16>
    %c0_92 = arith.constant 0 : index
    %c0_93 = arith.constant 0 : index
    %c0_94 = arith.constant 0 : index
    %158 = vector.load %arg6[%c0_92, %c0_93, %c0_94] : memref<1x4x512xbf16, #tpu.memory_space<vmem>>, vector<1x4x512xbf16>
    %159 = vector.shape_cast %158 : vector<1x4x512xbf16> to vector<4x512xbf16>
    %160 = vector.shape_cast %157 : vector<4x512xbf16> to vector<1x4x512xbf16>
    tpu.vector_store %arg6[%c0_92, %c0_93, %c0_94], %160 {strides = array<i32>} : memref<1x4x512xbf16, #tpu.memory_space<vmem>>, vector<1x4x512xbf16>,
    return
  }
  func.func @transform_0(%arg0: i32, %arg1: i32) -> (i32, i32, i32, i32) {
    %c0_i32 = arith.constant 0 : i32
    %c0_i32_0 = arith.constant 0 : i32
    %c0_i32_1 = arith.constant 0 : i32
    return %arg0, %arg1, %c0_i32, %c0_i32_0 : i32, i32, i32, i32
  }
  func.func @transform_1(%arg0: i32, %arg1: i32) -> (i32, i32, i32) {
    %c0_i32 = arith.constant 0 : i32
    %c0_i32_0 = arith.constant 0 : i32
    %c0_i32_1 = arith.constant 0 : i32
    %c0_i32_2 = arith.constant 0 : i32
    return %c0_i32, %c0_i32_0, %c0_i32_1 : i32, i32, i32
  }
  func.func @transform_2(%arg0: i32, %arg1: i32) -> (i32, i32, i32) {
    %c0_i32 = arith.constant 0 : i32
    %c0_i32_0 = arith.constant 0 : i32
    return %arg0, %c0_i32, %arg1 : i32, i32, i32
  }
  func.func @transform_3(%arg0: i32, %arg1: i32) -> (i32, i32, i32) {
    %c0_i32 = arith.constant 0 : i32
    %c0_i32_0 = arith.constant 0 : i32
    return %arg0, %c0_i32, %arg1 : i32, i32, i32
  }
  func.func @transform_4(%arg0: i32, %arg1: i32) -> (i32, i32, i32) {
    %c0_i32 = arith.constant 0 : i32
    %c0_i32_0 = arith.constant 0 : i32
    return %arg0, %c0_i32, %arg1 : i32, i32, i32
  }
}

</mosaic_0001>

<bundles_post_ra>
// kernel: tpu_custom_call.1
= control target key start
LH: loop header
LB: loop body
LE: loop exit
PB: predicated region body
PF: predicated region fallthrough
CT: control target
= control target key end

     0   :  { %s7683_s0 = inlined_call_operand.vmem [shape: bf16[2,2,4,734], index: 0, kind: input, shape index: {}]   ;;  %s7684_s1 = inlined_call_operand.vmem [shape: bf16[27,27,4], index: 1, kind: input, shape index: {}]   ;;  %s7685_s2 = inlined_call_operand.vmem [shape: f32[2,1,1024], index: 2, kind: input, shape index: {}]   ;;  %s7686_s3 = inlined_call_operand.vmem [shape: f32[2,27,1024], index: 3, kind: output, shape index: {0}]   ;;  %s7687_s4 = inlined_call_operand.hbm [shape: bf16[2,4,1024], index: 4, kind: output, shape index: {1}]  }
   0x1   :  { %7688 = sst [smem:[#allocation6_spill]] %s7683_s0 }
   0x2   :  { %10 = vsyncpa [#allocation4], 0 }
   0x3   :  { %12 = vsyncpa [#allocation4 + $0x1], 0  ;;  %s5651_s15 = smov 0   ;;  %s5653_s16 = smov 0  }
   0x4   :  { %s5655_s17 = smov 0   ;;  %s5657_s18 = smov 0  }
   0x5   :  { %s5659_s19 = smov 0   ;;  %s5661_s20 = smov 0  }
   0x6   :  { %s5663_s21 = smov 0   ;;  %s5665_s22 = smov 0  }
   0x7 LB: > { %s4773_s23 = sadd.s32 4294967295, %s5597_s22   ;;  %s4774_s24 = sadd.s32 4294967294, %s5597_s22   ;;  %s5597_s22 = sphi %s5665_s22, %s18_s22   ;;  %s5593_s21 = sphi %s5663_s21, %s7699_s21   ;;  %s5589_s20 = sphi %s5661_s20, %s7698_s20   ;;  %s5585_s19 = sphi %s5659_s19, %s7697_s19   ;;  %s5581_s18 = sphi %s5657_s18, %s7696_s18   ;;  %s5577_s17 = sphi %s5655_s17, %s7695_s17   ;;  %s5573_s16 = sphi %s5653_s16, %s7694_s16   ;;  %s5569_s15 = sphi %s5651_s15, %s7693_s15  }
   0x8   : > { %s27_s25 = sadd.s32 1, %s5589_s20  ;;  %s30_s26 = sadd.s32 1, %s5593_s21 }
   0x9   : > { %p28_p0 = scmp.ge.s32.totalorder %s27_s25, 2  ;;  %p126_p1 = scmp.ne.s32.totalorder %s5577_s17, %s5573_s16 }
   0xa   : > { %p127_p2 = scmp.eq.s32.totalorder %s4773_s23, 3  ;;  %p160_p5 = scmp.ne.s32.totalorder %s5573_s16, %s5569_s15 }
   0xb   : > { %s7701_s25 = smov (%p28_p0, %s27_s25), 0  ;;  %s7703_s26 = smov (!%p28_p0, %s30_s26), %s5593_s21 }
   0xc   : > { %s112_s27 = ssub.s32 %s5589_s20, %s7701_s25  ;;  %p5702_p3 = por %p127_p2, %p126_p1 }
   0xd   : > { %p32_p4 = scmp.ge.s32.totalorder %s7703_s26, 2  ;;  %p161_p6 = scmp.eq.s32.totalorder %s4774_s24, 3 }
   0xe   : > { %p4777_p7 = scmp.ge.s32.totalorder %s5597_s22, 1  ;;  %p206_p9 = scmp.lt.s32.totalorder %s5597_s22, 5 }
   0xf   : > { %s7705_s26 = smov (%p32_p4, %s7703_s26), 0  ;;  %p5711_p8 = por %p161_p6, %p160_p5 }
  0x10   : > { %s111_s30 = ssub.s32 %s5593_s21, %s7705_s26  ;;  %s116_s5 = sadd.s32 1, %s5577_s17 }
  0x11   : > { %s113_s6 = sor.u32 %s112_s27, %s111_s30  ;;  %p207_p10 = pnand %p4777_p7, %p206_p9 }
  0x12   : > { %p114_p11 = scmp.eq.s32.totalorder %s113_s6, 0  ;;  %p248_p12 = scmp.lt.s32.totalorder (!%p207_p10), %s5585_s19, 1 }
  0x13   : > { %210 = sbr.rel (%p207_p10) target bundleno = 1468 (0x5bc), region = 32  ;;  %p250_p13 = scmp.lt.s32.totalorder (!%p207_p10), %s5581_s18, 1 }
  0x14   : > { %s5720_s7 = scalar_select %p114_p11, %s5577_s17, %s116_s5  }
  0x15   : > { %s7691_s0 = sld [smem:[#allocation6_spill]] (!%p207_p10)  ;;  %s5599_s27 = smov (!%p207_p10), 127  }
  0x16   : > { %s5600_s30 = smov (!%p207_p10), 126   ;;  %s5601_s5 = smov (!%p207_p10), 118  }
  0x17   : > { %s5602_s6 = smov (!%p207_p10), 117   ;;  %s5609_s23 = smov (!%p207_p10), 26  }
  0x18   : > { %s5725_s8 = scalar_select %p248_p12, %s5585_s19, 1  ;;  %vm316_vm0 = vcmask 1039360   ;;  %vm328_vm1 = vcmask 1041408   ;;  %v5335_v35 = vld [vmem:[%s7684_s1 + $0x10] sm:$0xff]  ;;  %vm321_vm2 = vcmask 31744   ;;  %vm560_vm3 = vcmask 1031168  }
  0x19   : > { %s251_s9 = scalar_select %p250_p13, %s5581_s18, 1  ;;  %v4793_v49 = vld [vmem:[%s7684_s1 + $0x18] sm:$0xf]  ;;  %v5336_v50 = vld [vmem:[%s7684_s1 + $0x18] sm:$0x30]  ;;  %vm713_vm4 = vcmask 965632  }
  0x1a   : > { %s5388_s10 = smul.u32 12, %s5725_s8  ;;  %v4794_v54 = vor.u32 %v5336_v50, %v4793_v49  ;;  %vm866_vm5 = vcmask 957440   ;;  %vm1019_vm6 = vcmask 949248   ;;  %vm1172_vm7 = vcmask 883712   ;;  %s5617_s14 = smov 55  }
  0x1b   : > { %s5387_s11 = smul.u32 6, %s251_s9  ;;  %s5603_s9 = smov 116   ;;  %vm1325_vm8 = vcmask 875520   ;;  %vm1478_vm9 = vcmask 867328   ;;  %vm1631_vm10 = vcmask 228352   ;;  %vm1784_vm11 = vcmask 220160  }
  0x1c   : > { %vm1937_vm12 = vcmask 211968   ;;  %vm2090_vm13 = vcmask 146432   ;;  %vm2243_vm14 = vcmask 138240   ;;  %vm2396_vm15 = vcmask 130048  }
  0x1d   : > { %s254_s12 = sadd.s32 %s5388_s10, %s5387_s11  ;;  %s5605_s11 = smov 107  }
  0x1e   : > { %s4780_s13 = sshll.u32 %s254_s12, 1  ;;  %s5610_s10 = smov 18  }
  0x1f   : > { %s256_s24 = scalar_lea.vmem %s7691_s0, %s4780_s13  ;;  %s5607_s13 = smov 28  }
  0x20   : > { %v5732_v0 = vld [vmem:[%s256_s24] sm:$0xff]  ;;  %v5734_v1 = vld [vmem:[%s256_s24 + $0x8] sm:$0xf]  ;;  %s5604_s24 = smov 108   ;;  %s5612_s12 = smov 16  }
  0x21   : > { %292 = vst [vmem:[#allocation1] ss:$4 sm:$0xff] %v5732_v0 }
  0x22   : > { %295 = vst [vmem:[#allocation1 + $0x20] ss:$4 sm:$0xff] %v5734_v1 }
  0x28   : > { %v302_v2 = vld.sshfl [vmem:[#allocation1 + $0x18] sm:$0xff pattern:$0x73625140]  ;;  %v300_v3 = vld.sshfl [vmem:[#allocation1 + $0x10] sm:$0xff pattern:$0x73625140] }
  0x29   : > { %312 = vrot.lane.b32.xlu0 %v302_v2, %s5599_s27  ;;  %310 = vrot.lane.b32.xlu1 %v300_v3, %s5599_s27  ;;  %v304_v4 = vld.sshfl [vmem:[#allocation1 + $0x20] sm:$0xff pattern:$0x73625140]  ;;  %v298_v5 = vld.sshfl [vmem:[#allocation1 + $0x8] sm:$0xff pattern:$0x73625140] }
  0x2a   : > { %539 = vst [vmem:[#allocation1 + $0x20] ss:$4 sm:$0xff] %v5734_v1  ;;  %v296_v6 = vld.sshfl [vmem:[#allocation1] sm:$0xff pattern:$0x73625140] }
  0x2b   : > { %306 = vrot.lane.b32.xlu2 %v296_v6, %s5599_s27  ;;  %427 = vst [vmem:[#allocation1] ss:$4 sm:$0xff] %v5732_v0 }
  0x31   : > { %314 = vrot.lane.b32.xlu0 %v304_v4, %s5599_s27  ;;  %308 = vrot.lane.b32.xlu1 %v298_v5, %s5599_s27  ;;  %v548_v7 = vld.sshfl [vmem:[#allocation1 + $0x20] sm:$0xff pattern:$0x73625140]  ;;  %s5611_s27 = smov 17  }
  0x32   : > { %692 = vst [vmem:[#allocation1 + $0x20] ss:$4 sm:$0xff] %v5734_v1  ;;  %v5741_v8 = vld.sshfl [vmem:[#allocation1] sm:$0xff pattern:$0x73625140] }
  0x33   : > { %v5743_v9 = vld.sshfl [vmem:[#allocation1 + $0x8] sm:$0xff pattern:$0x73625140]  ;;  %v430_v10 = vld.sshfl [vmem:[#allocation1 + $0x10] sm:$0xff pattern:$0x73625140] }
  0x34   : > { %v5745_v11 = vld.sshfl [vmem:[#allocation1 + $0x18] sm:$0xff pattern:$0x73625140]  ;;  %v442_v33 = vsel %vm328_vm1, %v430_v10, 0  ;;  %v440_v40 = vsel %vm328_vm1, %v5743_v9, 0  ;;  %v438_v44 = vsel %vm328_vm1, %v5741_v8, 0 }
  0x35   : > { %537 = vst [vmem:[#allocation1] ss:$4 sm:$0xff] %v5732_v0  ;;  %v444_v48 = vsel %vm328_vm1, %v5745_v11, 0  ;;  %v5333_v10 = vld [vmem:[%s7684_s1] sm:$0xff] }
  0x39   : > { %558 = vrot.lane.b32.xlu0 %v548_v7, %s5600_s30  ;;  %v701_v12 = vld.sshfl [vmem:[#allocation1 + $0x20] sm:$0xff pattern:$0x73625140] }
  0x3a   : > { %845 = vst [vmem:[#allocation1 + $0x20] ss:$4 sm:$0xff] %v5734_v1 }
  0x3c   : > { %v544_v13 = vld.sshfl [vmem:[#allocation1 + $0x10] sm:$0xff pattern:$0x73625140]  ;;  %v540_v14 = vld.sshfl [vmem:[#allocation1] sm:$0xff pattern:$0x73625140] }
  0x3d   : > { %554 = vrot.lane.b32.xlu1 %v544_v13, %s5600_s30  ;;  %v546_v15 = vld.sshfl [vmem:[#allocation1 + $0x18] sm:$0xff pattern:$0x73625140]  ;;  %v542_v16 = vld.sshfl [vmem:[#allocation1 + $0x8] sm:$0xff pattern:$0x73625140] }
  0x3e   : > { %556 = vrot.lane.b32.xlu2 %v546_v15, %s5600_s30  ;;  %690 = vst [vmem:[#allocation1] ss:$4 sm:$0xff] %v5732_v0 }
  0x41   : > { %550 = vrot.lane.b32.xlu0 %v540_v14, %s5600_s30  ;;  %v854_v17 = vld.sshfl [vmem:[#allocation1 + $0x20] sm:$0xff pattern:$0x73625140] }
  0x42   : > { %998 = vst [vmem:[#allocation1 + $0x20] ss:$4 sm:$0xff] %v5734_v1 }
  0x45   : > { %v699_v18 = vld.sshfl [vmem:[#allocation1 + $0x18] sm:$0xff pattern:$0x73625140]  ;;  %v697_v19 = vld.sshfl [vmem:[#allocation1 + $0x10] sm:$0xff pattern:$0x73625140] }
  0x46   : > { %552 = vrot.lane.b32.xlu2 %v542_v16, %s5600_s30  ;;  %709 = vrot.lane.b32.xlu1 %v699_v18, %s5601_s5  ;;  %v695_v20 = vld.sshfl [vmem:[#allocation1 + $0x8] sm:$0xff pattern:$0x73625140]  ;;  %v693_v21 = vld.sshfl [vmem:[#allocation1] sm:$0xff pattern:$0x73625140] }
  0x47   : > { %843 = vst [vmem:[#allocation1] ss:$4 sm:$0xff] %v5732_v0  ;;  %s5606_s30 = smov 106  }
  0x49   : > { %707 = vrot.lane.b32.xlu0 %v697_v19, %s5601_s5  ;;  %v1007_v26 = vld.sshfl [vmem:[#allocation1 + $0x20] sm:$0xff pattern:$0x73625140] }
  0x4a   : > { %1151 = vst [vmem:[#allocation1 + $0x20] ss:$4 sm:$0xff] %v5734_v1 }
  0x4e   : > { %705 = vrot.lane.b32.xlu1 %v695_v20, %s5601_s5  ;;  %711 = vrot.lane.b32.xlu2 %v701_v12, %s5601_s5  ;;  %v852_v22 = vld.sshfl [vmem:[#allocation1 + $0x18] sm:$0xff pattern:$0x73625140]  ;;  %v848_v23 = vld.sshfl [vmem:[#allocation1 + $0x8] sm:$0xff pattern:$0x73625140] }
  0x4f   : > { %v846_v24 = vld.sshfl [vmem:[#allocation1] sm:$0xff pattern:$0x73625140]  ;;  %v850_v25 = vld.sshfl [vmem:[#allocation1 + $0x10] sm:$0xff pattern:$0x73625140] }
  0x50   : > { %996 = vst [vmem:[#allocation1] ss:$4 sm:$0xff] %v5732_v0 }
  0x51   : > { %862 = vrot.lane.b32.xlu0 %v852_v22, %s5602_s6  ;;  %v1160_v12 = vld.sshfl [vmem:[#allocation1 + $0x20] sm:$0xff pattern:$0x73625140]  ;;  %v5334_v22 = vld [vmem:[%s7684_s1 + $0x8] sm:$0x30] }
  0x52   : > { %1304 = vst [vmem:[#allocation1 + $0x20] ss:$4 sm:$0xff] %v5734_v1 }
  0x56   : > { %864 = vrot.lane.b32.xlu1 %v854_v17, %s5602_s6  ;;  %703 = vrot.lane.b32.xlu2 %v693_v21, %s5601_s5  ;;  %v4809_v21 = vld [vmem:[%s7684_s1 + $0x8] sm:$0xf]  ;;  %s5616_s5 = smov 56  }
  0x57   : > { %v1003_v27 = vld.sshfl [vmem:[#allocation1 + $0x10] sm:$0xff pattern:$0x73625140]  ;;  %v999_v28 = vld.sshfl [vmem:[#allocation1] sm:$0xff pattern:$0x73625140] }
  0x58   : > { %v1005_v36 = vld.sshfl [vmem:[#allocation1 + $0x18] sm:$0xff pattern:$0x73625140]  ;;  %v1001_v51 = vld.sshfl [vmem:[#allocation1 + $0x8] sm:$0xff pattern:$0x73625140] }
  0x59   : > { %858 = vrot.lane.b32.xlu0 %v848_v23, %s5602_s6  ;;  %1149 = vst [vmem:[#allocation1] ss:$4 sm:$0xff] %v5732_v0  ;;  %v1313_v23 = vld.sshfl [vmem:[#allocation1 + $0x20] sm:$0xff pattern:$0x73625140] }
  0x5a   : > { %1457 = vst [vmem:[#allocation1 + $0x20] ss:$4 sm:$0xff] %v5734_v1 }
  0x5e   : > { %856 = vrot.lane.b32.xlu1 %v846_v24, %s5602_s6  ;;  %860 = vrot.lane.b32.xlu2 %v850_v25, %s5602_s6  ;;  %v4810_v25 = vor.u32 %v5334_v22, %v4809_v21  ;;  %v4869_v22 = vld [vmem:[%s7684_s1 + $0x48] sm:$0xf]  ;;  %s5608_s6 = smov 27  }
  0x60   : > { %v1158_v62 = vld.sshfl [vmem:[#allocation1 + $0x18] sm:$0xff pattern:$0x73625140]  ;;  %v1156_v63 = vld.sshfl [vmem:[#allocation1 + $0x10] sm:$0xff pattern:$0x73625140] }
  0x61   : > { %1017 = vrot.lane.b32.xlu0 %v1007_v26, %s5603_s9  ;;  %v1154_v5 = vld.sshfl [vmem:[#allocation1 + $0x8] sm:$0xff pattern:$0x73625140]  ;;  %v1152_v24 = vld.sshfl [vmem:[#allocation1] sm:$0xff pattern:$0x73625140] }
  0x62   : > { %1302 = vst [vmem:[#allocation1] ss:$4 sm:$0xff] %v5732_v0 }
  0x66   : > { %1013 = vrot.lane.b32.xlu1 %v1003_v27, %s5603_s9  ;;  %1015 = vrot.lane.b32.xlu2 %v1005_v36, %s5603_s9 }
  0x69   : > { %1009 = vrot.lane.b32.xlu0 %v999_v28, %s5603_s9  ;;  %v1311_v26 = vld.sshfl [vmem:[#allocation1 + $0x18] sm:$0xff pattern:$0x73625140]  ;;  %v1305_v27 = vld.sshfl [vmem:[#allocation1] sm:$0xff pattern:$0x73625140] }
  0x6a   : > { %v1307_v28 = vld.sshfl [vmem:[#allocation1 + $0x8] sm:$0xff pattern:$0x73625140] }
  0x6e   : > { %1011 = vrot.lane.b32.xlu2 %v1001_v51, %s5603_s9  ;;  %1168 = vrot.lane.b32.xlu1 %v1158_v62, %s5604_s24  ;;  %v5339_v51 = vld [vmem:[%s7684_s1 + $0x30] sm:$0xff]  ;;  %s5621_s9 = smov 44  }
  0x71   : > { %1166 = vrot.lane.b32.xlu0 %v1156_v63, %s5604_s24 }
  0x76   : > { %1164 = vrot.lane.b32.xlu1 %v1154_v5, %s5604_s24  ;;  %1170 = vrot.lane.b32.xlu2 %v1160_v12, %s5604_s24 }
  0x79   : > { %1321 = vrot.lane.b32.xlu0 %v1311_v26, %s5605_s11 }
  0x7e   : > { %1323 = vrot.lane.b32.xlu1 %v1313_v23, %s5605_s11  ;;  %1162 = vrot.lane.b32.xlu2 %v1152_v24, %s5604_s24  ;;  %v5342_v23 = vld [vmem:[%s7684_s1 + $0x48] sm:$0x30]  ;;  %s5622_s24 = smov 36  }
  0x81   : > { %1317 = vrot.lane.b32.xlu0 %v1307_v28, %s5605_s11 }
  0x85   : > { %v307_v29 = vpop.permute.xlu2 %306 }
  0x86   : > { %1315 = vrot.lane.b32.xlu1 %v1305_v27, %s5605_s11  ;;  %v4870_v27 = vor.u32 %v5342_v23, %v4869_v22 }
  0x98   : > { %v557_v37 = vpop.permute.xlu2 %556 }
  0x9b   : > { %v313_v30 = vpop.permute.xlu0 %312  ;;  %v311_v31 = vpop.permute.xlu1 %310 }
  0x9c   : > { %v319_v32 = vsel %vm316_vm0, %v311_v31, %v313_v30 }
  0x9d   : > { %v336_v34 = vsel %vm328_vm1, %v319_v32, 0 }
  0x9e   : > { %386 = vmatpush.bf16.msra.mxu2 %v336_v34 }
  0xa0   : > { %v553_v56 = vpop.permute.xlu2 %552 }
  0xa1   : > { %4799 = vmatmul.msk.bf16.vlgmr.msra.gmra.mxu2 %vm321_vm2, %v5335_v35 }
  0xa2   : > { %491 = vmatpush.bf16.msrb.mxu2 %v442_v33 }
  0xa3   : > { %v315_v38 = vpop.permute.xlu0 %314  ;;  %v309_v39 = vpop.permute.xlu1 %308 }
  0xa4   : > { %v317_v41 = vsel %vm316_vm0, %v307_v29, %v309_v39  ;;  %v318_v42 = vsel %vm316_vm0, %v309_v39, %v311_v31  ;;  %v320_v43 = vsel %vm316_vm0, %v313_v30, %v315_v38  ;;  %v5337_v31 = vld [vmem:[%s7684_s1 + $0x20] sm:$0xff]  ;;  %vm2549_vm0 = vcmask 64512  }
  0xa5   : > { %v330_v45 = vsel %vm328_vm1, %v317_v41, 0  ;;  %v333_v46 = vsel %vm328_vm1, %v318_v42, 0  ;;  %v339_v47 = vsel %vm328_vm1, %v320_v43, 0 }
  0xa6   : > { %348 = vmatpush.bf16.msra.mxu0 %v330_v45  ;;  %367 = vmatpush.bf16.msra.mxu1 %v333_v46  ;;  %v5338_v45 = vld [vmem:[%s7684_s1 + $0x28] sm:$0x30]  ;;  %v1466_v46 = vld.sshfl [vmem:[#allocation1 + $0x20] sm:$0xff pattern:$0x73625140] }
  0xa7   : > { %405 = vmatpush.bf16.msra.mxu3 %v339_v47  ;;  %1610 = vst [vmem:[#allocation1 + $0x20] ss:$4 sm:$0xff] %v5734_v1  ;;  %1476 = vrot.lane.b32.xlu0 %v1466_v46, %s5606_s30 }
  0xa8   : > { %v712_v6 = vpop.permute.xlu2 %711 }
  0xa9   : > { %4795 = vmatmul.msk.bf16.vlgmr.msra.gmra.mxu0 %vm321_vm2, %v5335_v35  ;;  %4797 = vmatmul.msk.bf16.vlgmr.msra.gmra.mxu1 %vm321_vm2, %v5335_v35 }
  0xaa   : > { %472 = vmatpush.bf16.msrb.mxu1 %v440_v40  ;;  %453 = vmatpush.bf16.msrb.mxu0 %v438_v44  ;;  %v4829_v44 = vld [vmem:[%s7684_s1 + $0x28] sm:$0xf] }
  0xab   : > { %510 = vmatpush.bf16.msrb.mxu3 %v444_v48  ;;  %v559_v52 = vpop.permute.xlu0 %558  ;;  %v4830_v48 = vor.u32 %v5338_v45, %v4829_v44  ;;  %v5343_v45 = vld [vmem:[%s7684_s1 + $0x50] sm:$0xff] }
  0xac   : > { %4801 = vmatmul.msk.bf16.vlgmr.msra.gmra.mxu3 %vm321_vm2, %v5335_v35  ;;  %v564_v53 = vsel %vm560_vm3, %v557_v37, %v559_v52  ;;  %v1309_v35 = vld.sshfl [vmem:[#allocation1 + $0x10] sm:$0xff pattern:$0x73625140] }
  0xad   : > { %v581_v55 = vsel %vm328_vm1, %v564_v53, 0  ;;  %1319 = vrot.lane.b32.xlu2 %v1309_v35, %s5605_s11  ;;  %1455 = vst [vmem:[#allocation1] ss:$4 sm:$0xff] %v5732_v0  ;;  %s5615_s11 = smov 6  }
  0xaf   : > { %647 = vmatpush.bf16.msra.mxu3 %v581_v55  ;;  %v555_v57 = vpop.permute.xlu1 %554 }
  0xb0   : > { %v563_v58 = vsel %vm560_vm3, %v555_v57, %v557_v37  ;;  %v562_v59 = vsel %vm560_vm3, %v553_v56, %v555_v57  ;;  %v704_v14 = vpop.permute.xlu2 %703 }
  0xb1   : > { %4800 = vmatmul.msk.bf16.gmra.mxu2 %vm321_vm2, %v4794_v54  ;;  %v578_v60 = vsel %vm328_vm1, %v563_v58, 0  ;;  %v575_v61 = vsel %vm328_vm1, %v562_v59, 0 }
  0xb2   : > { %628 = vmatpush.bf16.msra.mxu2 %v578_v60  ;;  %609 = vmatpush.bf16.msra.mxu1 %v575_v61 }
  0xb3   : > { %v551_v2 = vpop.permute.xlu0 %550 }
  0xb4   : > { %v561_v3 = vsel %vm560_vm3, %v551_v2, %v553_v56  ;;  %v1462_v47 = vld.sshfl [vmem:[#allocation1 + $0x10] sm:$0xff pattern:$0x73625140]  ;;  %v1458_v49 = vld.sshfl [vmem:[#allocation1] sm:$0xff pattern:$0x73625140] }
  0xb5   : > { %v572_v4 = vsel %vm328_vm1, %v561_v3, 0  ;;  %1472 = vrot.lane.b32.xlu1 %v1462_v47, %s5606_s30  ;;  %1468 = vrot.lane.b32.xlu0 %v1458_v49, %s5606_s30  ;;  %v1464_v56 = vld.sshfl [vmem:[#allocation1 + $0x18] sm:$0xff pattern:$0x73625140]  ;;  %vm2702_vm3 = vcmask 56320  }
  0xb6   : > { %590 = vmatpush.bf16.msra.mxu0 %v572_v4  ;;  %1474 = vrot.lane.b32.xlu2 %v1464_v56, %s5606_s30  ;;  %v4849_v3 = vld [vmem:[%s7684_s1 + $0x38] sm:$0xf]  ;;  %v5340_v4 = vld [vmem:[%s7684_s1 + $0x38] sm:$0x30] }
  0xb7   : > { %v4850_v5 = vor.u32 %v5340_v4, %v4849_v3  ;;  %v5344_v3 = vld [vmem:[%s7684_s1 + $0x58] sm:$0x30] }
  0xb8   : > { %v710_v7 = vpop.permute.xlu1 %709  ;;  %v861_v32 = vpop.permute.xlu2 %860 }
  0xb9   : > { %4796 = vmatmul.msk.bf16.gmra.mxu0 %vm321_vm2, %v4794_v54  ;;  %4798 = vmatmul.msk.bf16.gmra.mxu1 %vm321_vm2, %v4794_v54  ;;  %v717_v16 = vsel %vm713_vm4, %v710_v7, %v712_v6  ;;  %v1460_v6 = vld.sshfl [vmem:[#allocation1 + $0x8] sm:$0xff pattern:$0x73625140] }
  0xba   : > { %v734_v19 = vsel %vm328_vm1, %v717_v16, 0  ;;  %1608 = vst [vmem:[#allocation1] ss:$4 sm:$0xff] %v5732_v0 }
  0xbb   : > { %v708_v8 = vpop.permute.xlu0 %707 }
  0xbc   : > { %4802 = vmatmul.msk.bf16.gmra.mxu3 %vm321_vm2, %v4794_v54  ;;  %v716_v9 = vsel %vm713_vm4, %v708_v8, %v710_v7 }
  0xbd   : > { %v731_v11 = vsel %vm328_vm1, %v716_v9, 0 }
  0xbe   : > { %1470 = vrot.lane.b32.xlu2 %v1460_v6, %s5606_s30  ;;  %s5619_s30 = smov 46  }
  0xc0   : > { %v706_v13 = vpop.permute.xlu1 %705  ;;  %v1016_v50 = vpop.permute.xlu2 %1015 }
  0xc1   : > { %4815 = vmatmul.msk.bf16.vlgmr.msrb.gmra.mxu2 %vm321_vm2, %v5333_v10  ;;  %v714_v15 = vsel %vm713_vm4, %v704_v14, %v706_v13  ;;  %v715_v17 = vsel %vm713_vm4, %v706_v13, %v708_v8  ;;  %v1617_v7 = vld.sshfl [vmem:[#allocation1 + $0x18] sm:$0xff pattern:$0x73625140]  ;;  %v1615_v8 = vld.sshfl [vmem:[#allocation1 + $0x10] sm:$0xff pattern:$0x73625140] }
  0xc2   : > { %781 = vmatpush.bf16.msrb.mxu2 %v731_v11  ;;  %v725_v18 = vsel %vm328_vm1, %v714_v15, 0  ;;  %v728_v20 = vsel %vm328_vm1, %v715_v17, 0  ;;  %1627 = vrot.lane.b32.xlu1 %v1617_v7, %s5607_s13  ;;  %v1613_v9 = vld.sshfl [vmem:[#allocation1 + $0x8] sm:$0xff pattern:$0x73625140]  ;;  %vm2855_vm4 = vcmask 48128  }
  0xc3   : > { %v863_v30 = vpop.permute.xlu0 %862  ;;  %1625 = vrot.lane.b32.xlu0 %v1615_v8, %s5607_s13  ;;  %v1619_v15 = vld.sshfl [vmem:[#allocation1 + $0x20] sm:$0xff pattern:$0x73625140] }
  0xc4   : > { %v869_v33 = vsel %vm866_vm5, %v861_v32, %v863_v30  ;;  %1763 = vst [vmem:[#allocation1 + $0x20] ss:$4 sm:$0xff] %v5734_v1 }
  0xc5   : > { %v884_v34 = vsel %vm328_vm1, %v869_v33, 0 }
  0xc6   : > { %1629 = vrot.lane.b32.xlu2 %v1619_v15, %s5607_s13 }
  0xc8   : > { %v865_v29 = vpop.permute.xlu1 %864  ;;  %v1012_v58 = vpop.permute.xlu2 %1011 }
  0xc9   : > { %4811 = vmatmul.msk.bf16.vlgmr.msrb.gmra.mxu0 %vm321_vm2, %v5333_v10  ;;  %4813 = vmatmul.msk.bf16.vlgmr.msrb.gmra.mxu1 %vm321_vm2, %v5333_v10  ;;  %v870_v39 = vsel %vm866_vm5, %v863_v30, %v865_v29 }
  0xca   : > { %743 = vmatpush.bf16.msrb.mxu0 %v725_v18  ;;  %762 = vmatpush.bf16.msrb.mxu1 %v728_v20  ;;  %v887_v42 = vsel %vm328_vm1, %v870_v39, 0 }
  0xcb   : > { %v859_v36 = vpop.permute.xlu0 %858  ;;  %1623 = vrot.lane.b32.xlu1 %v1613_v9, %s5607_s13  ;;  %v1772_v33 = vld.sshfl [vmem:[#allocation1 + $0x20] sm:$0xff pattern:$0x73625140] }
  0xcc   : > { %4817 = vmatmul.msk.bf16.vlgmr.msrb.gmra.mxu3 %vm321_vm2, %v5333_v10  ;;  %v868_v40 = vsel %vm866_vm5, %v859_v36, %v861_v32  ;;  %v5341_v10 = vld [vmem:[%s7684_s1 + $0x40] sm:$0xff]  ;;  %1916 = vst [vmem:[#allocation1 + $0x20] ss:$4 sm:$0xff] %v5734_v1 }
  0xcd   : > { %800 = vmatpush.bf16.msrb.mxu3 %v734_v19  ;;  %v881_v43 = vsel %vm328_vm1, %v868_v40, 0 }
  0xd0   : > { %v857_v37 = vpop.permute.xlu1 %856  ;;  %v1171_v11 = vpop.permute.xlu2 %1170 }
  0xd1   : > { %4816 = vmatmul.msk.bf16.gmra.mxu2 %vm321_vm2, %v4810_v25  ;;  %v867_v38 = vsel %vm866_vm5, %v857_v37, %v859_v36  ;;  %vm3008_vm5 = vcmask 457728  }
  0xd2   : > { %v878_v41 = vsel %vm328_vm1, %v867_v38, 0 }
  0xd3   : > { %v1018_v52 = vpop.permute.xlu0 %1017  ;;  %1782 = vrot.lane.b32.xlu1 %v1772_v33, %s5608_s6  ;;  %v5345_v33 = vld [vmem:[%s7684_s1 + $0x60] sm:$0xff] }
  0xd4   : > { %v1023_v57 = vsel %vm1019_vm6, %v1016_v50, %v1018_v52 }
  0xd5   : > { %v1040_v62 = vsel %vm328_vm1, %v1023_v57, 0 }
  0xd8   : > { %v1014_v53 = vpop.permute.xlu1 %1013  ;;  %v1163_v24 = vpop.permute.xlu2 %1162 }
  0xd9   : > { %4812 = vmatmul.msk.bf16.gmra.mxu0 %vm321_vm2, %v4810_v25  ;;  %4814 = vmatmul.msk.bf16.gmra.mxu1 %vm321_vm2, %v4810_v25  ;;  %v1022_v54 = vsel %vm1019_vm6, %v1014_v53, %v1016_v50  ;;  %v1021_v60 = vsel %vm1019_vm6, %v1012_v58, %v1014_v53 }
  0xda   : > { %v1037_v55 = vsel %vm328_vm1, %v1022_v54, 0  ;;  %v1034_v63 = vsel %vm328_vm1, %v1021_v60, 0 }
  0xdb   : > { %v1010_v59 = vpop.permute.xlu0 %1009 }
  0xdc   : > { %4818 = vmatmul.msk.bf16.gmra.mxu3 %vm321_vm2, %v4810_v25  ;;  %v1020_v61 = vsel %vm1019_vm6, %v1010_v59, %v1012_v58  ;;  %vm3161_vm6 = vcmask 449536  }
  0xdd   : > { %v1031_v2 = vsel %vm328_vm1, %v1020_v61, 0 }
  0xe0   : > { %v1169_v13 = vpop.permute.xlu1 %1168 }
  0xe1   : > { %4835 = vmatmul.msk.bf16.vlgmr.msra.gmra.mxu2 %vm321_vm2, %v5337_v31  ;;  %v1176_v18 = vsel %vm1172_vm7, %v1169_v13, %v1171_v11 }
  0xe2   : > { %934 = vmatpush.bf16.msra.mxu2 %v884_v34  ;;  %v1193_v21 = vsel %vm328_vm1, %v1176_v18, 0  ;;  %v1611_v34 = vld.sshfl [vmem:[#allocation1] sm:$0xff pattern:$0x73625140] }
  0xe3   : > { %v1167_v14 = vpop.permute.xlu0 %1166  ;;  %1621 = vrot.lane.b32.xlu2 %v1611_v34, %s5607_s13  ;;  %1761 = vst [vmem:[#allocation1] ss:$4 sm:$0xff] %v5732_v0  ;;  %s5620_s13 = smov 45  }
  0xe4   : > { %v1175_v19 = vsel %vm1172_vm7, %v1167_v14, %v1169_v13 }
  0xe5   : > { %v1190_v20 = vsel %vm328_vm1, %v1175_v19, 0 }
  0xe8   : > { %v1165_v28 = vpop.permute.xlu1 %1164 }
  0xe9   : > { %4831 = vmatmul.msk.bf16.vlgmr.msra.gmra.mxu0 %vm321_vm2, %v5337_v31  ;;  %4833 = vmatmul.msk.bf16.vlgmr.msra.gmra.mxu1 %vm321_vm2, %v5337_v31  ;;  %v1173_v32 = vsel %vm1172_vm7, %v1163_v24, %v1165_v28 }
  0xea   : > { %896 = vmatpush.bf16.msra.mxu0 %v878_v41  ;;  %915 = vmatpush.bf16.msra.mxu1 %v881_v43  ;;  %v1184_v36 = vsel %vm328_vm1, %v1173_v32, 0  ;;  %v1770_v41 = vld.sshfl [vmem:[#allocation1 + $0x18] sm:$0xff pattern:$0x73625140] }
  0xeb   : > { %1780 = vrot.lane.b32.xlu0 %v1770_v41, %s5608_s6  ;;  %v1766_v46 = vld.sshfl [vmem:[#allocation1 + $0x8] sm:$0xff pattern:$0x73625140]  ;;  %v1768_v56 = vld.sshfl [vmem:[#allocation1 + $0x10] sm:$0xff pattern:$0x73625140]  ;;  %v1322_v59 = vpop.permute.xlu0 %1321 }
  0xec   : > { %4837 = vmatmul.msk.bf16.vlgmr.msra.gmra.mxu3 %vm321_vm2, %v5337_v31  ;;  %v1174_v31 = vsel %vm1172_vm7, %v1165_v28, %v1167_v14  ;;  %1778 = vrot.lane.b32.xlu2 %v1768_v56, %s5608_s6  ;;  %vm3314_vm7 = vcmask 441344  }
  0xed   : > { %953 = vmatpush.bf16.msra.mxu3 %v887_v42  ;;  %v1187_v35 = vsel %vm328_vm1, %v1174_v31, 0  ;;  %v1764_v42 = vld.sshfl [vmem:[#allocation1] sm:$0xff pattern:$0x73625140] }
  0xee   : > { %1774 = vrot.lane.b32.xlu1 %v1764_v42, %s5608_s6  ;;  %1914 = vst [vmem:[#allocation1] ss:$4 sm:$0xff] %v5732_v0 }
  0xf0   : > { %v1324_v49 = vpop.permute.xlu1 %1323 }
  0xf1   : > { %4836 = vmatmul.msk.bf16.gmra.mxu2 %vm321_vm2, %v4830_v48  ;;  %v1329_v60 = vsel %vm1325_vm8, %v1322_v59, %v1324_v49 }
  0xf3   : > { %1776 = vrot.lane.b32.xlu0 %v1766_v46, %s5608_s6  ;;  %s5613_s6 = smov 8  }
  0xf5   : > { %v1921_v13 = vld.sshfl [vmem:[#allocation1 + $0x10] sm:$0xff pattern:$0x73625140] }
  0xf6   : > { %1931 = vrot.lane.b32.xlu1 %v1921_v13, %s5609_s23 }
  0xf8   : > { %v1316_v8 = vpop.permute.xlu1 %1315 }
  0xf9   : > { %4832 = vmatmul.msk.bf16.gmra.mxu0 %vm321_vm2, %v4830_v48  ;;  %4834 = vmatmul.msk.bf16.gmra.mxu1 %vm321_vm2, %v4830_v48 }
  0xfc   : > { %4838 = vmatmul.msk.bf16.gmra.mxu3 %vm321_vm2, %v4830_v48 }
 0x101   : > { %4855 = vmatmul.msk.bf16.vlgmr.msrb.gmra.mxu2 %vm321_vm2, %v5339_v51 }
 0x102   : > { %1087 = vmatpush.bf16.msrb.mxu2 %v1037_v55 }
 0x107   : > { %v1320_v53 = vpop.permute.xlu2 %1319 }
 0x108   : > { %v1328_v61 = vsel %vm1325_vm8, %v1320_v53, %v1322_v59 }
 0x109   : > { %4851 = vmatmul.msk.bf16.vlgmr.msrb.gmra.mxu0 %vm321_vm2, %v5339_v51  ;;  %4853 = vmatmul.msk.bf16.vlgmr.msrb.gmra.mxu1 %vm321_vm2, %v5339_v51 }
 0x10a   : > { %1049 = vmatpush.bf16.msrb.mxu0 %v1031_v2  ;;  %1068 = vmatpush.bf16.msrb.mxu1 %v1034_v63  ;;  %v1343_v63 = vsel %vm328_vm1, %v1328_v61, 0  ;;  %v4889_v2 = vld [vmem:[%s7684_s1 + $0x58] sm:$0xf] }
 0x10b   : > { %v4890_v7 = vor.u32 %v5344_v3, %v4889_v2 }
 0x10c   : > { %4857 = vmatmul.msk.bf16.vlgmr.msrb.gmra.mxu3 %vm321_vm2, %v5339_v51 }
 0x10d   : > { %1106 = vmatpush.bf16.msrb.mxu3 %v1040_v62  ;;  %v1346_v62 = vsel %vm328_vm1, %v1329_v60, 0 }
 0x111   : > { %4856 = vmatmul.msk.bf16.gmra.mxu2 %vm321_vm2, %v4850_v5 }
 0x119   : > { %4852 = vmatmul.msk.bf16.gmra.mxu0 %vm321_vm2, %v4850_v5  ;;  %4854 = vmatmul.msk.bf16.gmra.mxu1 %vm321_vm2, %v4850_v5 }
 0x11c   : > { %4858 = vmatmul.msk.bf16.gmra.mxu3 %vm321_vm2, %v4850_v5 }
 0x121   : > { %4875 = vmatmul.msk.bf16.vlgmr.msra.gmra.mxu2 %vm321_vm2, %v5341_v10 }
 0x122   : > { %1240 = vmatpush.bf16.msra.mxu2 %v1190_v20 }
 0x124   : > { %v388_v12 = vpop.f32.mrf.mxu2 }
 0x126   : > { %v5890_v16 = vpop.f32.mrf.mxu0  ;;  %v5892_v17 = vpop.f32.mrf.mxu1 }
 0x127   : > { %v1473_v41 = vpop.permute.xlu1 %1472 }
 0x129   : > { %4871 = vmatmul.msk.bf16.vlgmr.msra.gmra.mxu0 %vm321_vm2, %v5341_v10  ;;  %4873 = vmatmul.msk.bf16.vlgmr.msra.gmra.mxu1 %vm321_vm2, %v5341_v10 }
 0x12a   : > { %1202 = vmatpush.bf16.msra.mxu0 %v1184_v36  ;;  %1221 = vmatpush.bf16.msra.mxu1 %v1187_v35 }
 0x12c   : > { %4877 = vmatmul.msk.bf16.vlgmr.msra.gmra.mxu3 %vm321_vm2, %v5341_v10  ;;  %v5909_v25 = vpop.f32.mrf.mxu2 }
 0x12d   : > { %1259 = vmatpush.bf16.msra.mxu3 %v1193_v21 }
 0x12e   : > { %v5913_v29 = vpop.f32.mrf.mxu0  ;;  %v5915_v30 = vpop.f32.mrf.mxu1 }
 0x12f   : > { %v5911_v26 = vpop.f32.mrf.mxu3 }
 0x131   : > { %4876 = vmatmul.msk.bf16.gmra.mxu2 %vm321_vm2, %v4870_v27 }
 0x134   : > { %v5926_v37 = vpop.f32.mrf.mxu2 }
 0x136   : > { %v5930_v39 = vpop.f32.mrf.mxu0  ;;  %v5932_v40 = vpop.f32.mrf.mxu1 }
 0x137   : > { %v5928_v38 = vpop.f32.mrf.mxu3 }
 0x139   : > { %4872 = vmatmul.msk.bf16.gmra.mxu0 %vm321_vm2, %v4870_v27  ;;  %4874 = vmatmul.msk.bf16.gmra.mxu1 %vm321_vm2, %v4870_v27 }
 0x13c   : > { %4878 = vmatmul.msk.bf16.gmra.mxu3 %vm321_vm2, %v4870_v27  ;;  %v5939_v43 = vpop.f32.mrf.mxu2  ;;  %v1917_v27 = vld.sshfl [vmem:[#allocation1] sm:$0xff pattern:$0x73625140] }
 0x13e   : > { %v5946_v47 = vpop.f32.mrf.mxu0  ;;  %v5948_v48 = vpop.f32.mrf.mxu1 }
 0x13f   : > { %v5941_v44 = vpop.f32.mrf.mxu3 }
 0x141   : > { %4895 = vmatmul.msk.bf16.vlgmr.msrb.gmra.mxu2 %vm321_vm2, %v5343_v45 }
 0x142   : > { %1393 = vmatpush.bf16.msrb.mxu2 %v1343_v63 }
 0x144   : > { %v493_v50 = vpop.f32.mrf.mxu2 }
 0x145   : > { %v5954_v52 = vadd.f32 %v493_v50, %v388_v12  ;;  %v1925_v12 = vld.sshfl [vmem:[#allocation1 + $0x20] sm:$0xff pattern:$0x73625140] }
 0x146   : > { %v474_v54 = vpop.f32.mrf.mxu1  ;;  %v455_v55 = vpop.f32.mrf.mxu0  ;;  %1935 = vrot.lane.b32.xlu0 %v1925_v12, %s5609_s23  ;;  %2069 = vst [vmem:[#allocation1 + $0x20] ss:$4 sm:$0xff] %v5734_v1 }
 0x147   : > { %v5952_v51 = vpop.f32.mrf.mxu3  ;;  %v5957_v57 = vadd.f32 %v474_v54, %v5892_v17  ;;  %v5960_v58 = vadd.f32 %v455_v55, %v5890_v16  ;;  %v1318_v16 = vpop.permute.xlu0 %1317 }
 0x148   : > { %v1327_v17 = vsel %vm1325_vm8, %v1318_v16, %v1320_v53  ;;  %v1326_v18 = vsel %vm1325_vm8, %v1316_v8, %v1318_v16  ;;  %v1923_v53 = vld.sshfl [vmem:[#allocation1 + $0x18] sm:$0xff pattern:$0x73625140]  ;;  %vm3467_vm8 = vcmask 375808  }
 0x149   : > { %4891 = vmatmul.msk.bf16.vlgmr.msrb.gmra.mxu0 %vm321_vm2, %v5343_v45  ;;  %4893 = vmatmul.msk.bf16.vlgmr.msrb.gmra.mxu1 %vm321_vm2, %v5343_v45  ;;  %v1340_v19 = vsel %vm328_vm1, %v1327_v17, 0  ;;  %v1337_v20 = vsel %vm328_vm1, %v1326_v18, 0 }
 0x14a   : > { %1355 = vmatpush.bf16.msrb.mxu0 %v1337_v20  ;;  %1374 = vmatpush.bf16.msrb.mxu1 %v1340_v19 }
 0x14b   : > { %1933 = vrot.lane.b32.xlu2 %v1923_v53, %s5609_s23 }
 0x14c   : > { %4897 = vmatmul.msk.bf16.vlgmr.msrb.gmra.mxu3 %vm321_vm2, %v5343_v45  ;;  %v495_v4 = vpop.f32.mrf.mxu2 }
 0x14d   : > { %1412 = vmatpush.bf16.msrb.mxu3 %v1346_v62  ;;  %v5978_v5 = vadd.f32 %v495_v4, %v5909_v25 }
 0x14e   : > { %v457_v10 = vpop.f32.mrf.mxu0  ;;  %v476_v11 = vpop.f32.mrf.mxu1  ;;  %1927 = vrot.lane.b32.xlu0 %v1917_v27, %s5609_s23 }
 0x14f   : > { %v512_v6 = vpop.f32.mrf.mxu3  ;;  %v5984_v14 = vadd.f32 %v457_v10, %v5913_v29  ;;  %v5987_v15 = vadd.f32 %v476_v11, %v5915_v30  ;;  %v1919_v10 = vld.sshfl [vmem:[#allocation1 + $0x8] sm:$0xff pattern:$0x73625140] }
 0x150   : > { %v5981_v9 = vadd.f32 %v512_v6, %v5911_v26  ;;  %2067 = vst [vmem:[#allocation1] ss:$4 sm:$0xff] %v5732_v0 }
 0x151   : > { %4896 = vmatmul.msk.bf16.gmra.mxu2 %vm321_vm2, %v4890_v7 }
 0x153   : > { %1929 = vrot.lane.b32.xlu2 %v1919_v10, %s5609_s23  ;;  %s5614_s23 = smov 7  }
 0x154   : > { %v498_v21 = vpop.f32.mrf.mxu2 }
 0x155   : > { %v5998_v22 = vadd.f32 %v498_v21, %v5926_v37 }
 0x156   : > { %v460_v25 = vpop.f32.mrf.mxu0  ;;  %v479_v26 = vpop.f32.mrf.mxu1 }
 0x157   : > { %v514_v23 = vpop.f32.mrf.mxu3  ;;  %v6004_v28 = vadd.f32 %v460_v25, %v5930_v39  ;;  %v6007_v29 = vadd.f32 %v479_v26, %v5932_v40  ;;  %v1477_v39 = vpop.permute.xlu0 %1476  ;;  %v2076_v18 = vld.sshfl [vmem:[#allocation1 + $0x18] sm:$0xff pattern:$0x73625140]  ;;  %v2074_v19 = vld.sshfl [vmem:[#allocation1 + $0x10] sm:$0xff pattern:$0x73625140] }
 0x158   : > { %v6001_v24 = vadd.f32 %v514_v23, %v5928_v38  ;;  %v1475_v40 = vpop.permute.xlu2 %1474  ;;  %2086 = vrot.lane.b32.xlu1 %v2076_v18, %s5610_s10  ;;  %2084 = vrot.lane.b32.xlu0 %v2074_v19, %s5610_s10  ;;  %v5347_v25 = vld [vmem:[%s7684_s1 + $0x70] sm:$0xff]  ;;  %v5349_v18 = vld [vmem:[%s7684_s1 + $0x80] sm:$0xff] }
 0x159   : > { %4892 = vmatmul.msk.bf16.gmra.mxu0 %vm321_vm2, %v4890_v7  ;;  %4894 = vmatmul.msk.bf16.gmra.mxu1 %vm321_vm2, %v4890_v7  ;;  %v1481_v42 = vsel %vm1478_vm9, %v1473_v41, %v1475_v40 }
 0x15c   : > { %4898 = vmatmul.msk.bf16.gmra.mxu3 %vm321_vm2, %v4890_v7  ;;  %v500_v30 = vpop.f32.mrf.mxu2 }
 0x15d   : > { %v6014_v31 = vadd.f32 %v500_v30, %v5939_v43  ;;  %v1496_v43 = vsel %vm328_vm1, %v1481_v42, 0 }
 0x15e   : > { %v481_v35 = vpop.f32.mrf.mxu1  ;;  %v462_v36 = vpop.f32.mrf.mxu0 }
 0x15f   : > { %v517_v32 = vpop.f32.mrf.mxu3  ;;  %v6023_v37 = vadd.f32 %v481_v35, %v5948_v48  ;;  %v6026_v38 = vadd.f32 %v462_v36, %v5946_v47  ;;  %v1482_v48 = vsel %vm1478_vm9, %v1475_v40, %v1477_v39  ;;  %v1469_v56 = vpop.permute.xlu0 %1468 }
 0x160   : > { %v6020_v34 = vadd.f32 %v517_v32, %v5941_v44  ;;  %v1471_v59 = vpop.permute.xlu2 %1470 }
 0x161   : > { %4915 = vmatmul.msk.bf16.vlgmr.msra.gmra.mxu2 %vm321_vm2, %v5345_v33  ;;  %v1479_v60 = vsel %vm1478_vm9, %v1469_v56, %v1471_v59 }
 0x162   : > { %1546 = vmatpush.bf16.msra.mxu2 %v1496_v43  ;;  %v1490_v62 = vsel %vm328_vm1, %v1479_v60, 0  ;;  %v2070_v60 = vld.sshfl [vmem:[#allocation1] sm:$0xff pattern:$0x73625140] }
 0x164   : > { %v630_v44 = vpop.f32.mrf.mxu2 }
 0x165   : > { %v6032_v46 = vadd.f32 %v630_v44, %v5954_v52  ;;  %v1499_v52 = vsel %vm328_vm1, %v1482_v48, 0 }
 0x166   : > { %v611_v49 = vpop.f32.mrf.mxu1  ;;  %v592_v50 = vpop.f32.mrf.mxu0 }
 0x167   : > { %v519_v45 = vpop.f32.mrf.mxu3  ;;  %v6039_v54 = vadd.f32 %v611_v49, %v5957_v57  ;;  %v6042_v55 = vadd.f32 %v592_v50, %v5960_v58  ;;  %v4909_v57 = vld [vmem:[%s7684_s1 + $0x68] sm:$0xf]  ;;  %v5346_v58 = vld [vmem:[%s7684_s1 + $0x68] sm:$0x30]  ;;  %v1626_v42 = vpop.permute.xlu0 %1625 }
 0x168   : > { %v6036_v47 = vadd.f32 %v519_v45, %v5952_v51  ;;  %v1480_v51 = vsel %vm1478_vm9, %v1471_v59, %v1473_v41  ;;  %v4910_v4 = vor.u32 %v5346_v58, %v4909_v57  ;;  %v1628_v41 = vpop.permute.xlu1 %1627  ;;  %v4929_v45 = vld [vmem:[%s7684_s1 + $0x78] sm:$0xf]  ;;  %vm3620_vm9 = vcmask 367616  }
 0x169   : > { %4911 = vmatmul.msk.bf16.vlgmr.msra.gmra.mxu0 %vm321_vm2, %v5345_v33  ;;  %4913 = vmatmul.msk.bf16.vlgmr.msra.gmra.mxu1 %vm321_vm2, %v5345_v33  ;;  %v1493_v61 = vsel %vm328_vm1, %v1480_v51, 0  ;;  %v1634_v44 = vsel %vm1631_vm10, %v1626_v42, %v1628_v41 }
 0x16a   : > { %1508 = vmatpush.bf16.msra.mxu0 %v1490_v62  ;;  %1527 = vmatpush.bf16.msra.mxu1 %v1493_v61 }
 0x16c   : > { %4917 = vmatmul.msk.bf16.vlgmr.msra.gmra.mxu3 %vm321_vm2, %v5345_v33  ;;  %v632_v63 = vpop.f32.mrf.mxu2 }
 0x16d   : > { %1565 = vmatpush.bf16.msra.mxu3 %v1499_v52  ;;  %v6060_v2 = vadd.f32 %v632_v63, %v5978_v5 }
 0x16e   : > { %v594_v7 = vpop.f32.mrf.mxu0  ;;  %v613_v8 = vpop.f32.mrf.mxu1 }
 0x16f   : > { %v649_v3 = vpop.f32.mrf.mxu3  ;;  %v6066_v11 = vadd.f32 %v594_v7, %v5984_v14  ;;  %v6069_v12 = vadd.f32 %v613_v8, %v5987_v15 }
 0x170   : > { %v6063_v6 = vadd.f32 %v649_v3, %v5981_v9  ;;  %v1624_v61 = vpop.permute.xlu1 %1623 }
 0x171   : > { %4916 = vmatmul.msk.bf16.gmra.mxu2 %vm321_vm2, %v4910_v4  ;;  %v1633_v62 = vsel %vm1631_vm10, %v1624_v61, %v1626_v42 }
 0x174   : > { %v635_v5 = vpop.f32.mrf.mxu2 }
 0x175   : > { %v6075_v13 = vadd.f32 %v635_v5, %v5998_v22  ;;  %v2072_v22 = vld.sshfl [vmem:[#allocation1 + $0x8] sm:$0xff pattern:$0x73625140] }
 0x176   : > { %v597_v17 = vpop.f32.mrf.mxu0  ;;  %v616_v14 = vpop.f32.mrf.mxu1  ;;  %2082 = vrot.lane.b32.xlu1 %v2072_v22, %s5610_s10  ;;  %2220 = vst [vmem:[#allocation1] ss:$4 sm:$0xff] %v5732_v0 }
 0x177   : > { %v651_v9 = vpop.f32.mrf.mxu3  ;;  %v6081_v15 = vadd.f32 %v597_v17, %v6004_v28  ;;  %v6084_v20 = vadd.f32 %v616_v14, %v6007_v29 }
 0x178   : > { %v6078_v16 = vadd.f32 %v651_v9, %v6001_v24 }
 0x179   : > { %4912 = vmatmul.msk.bf16.gmra.mxu0 %vm321_vm2, %v4910_v4  ;;  %4914 = vmatmul.msk.bf16.gmra.mxu1 %vm321_vm2, %v4910_v4 }
 0x17c   : > { %4918 = vmatmul.msk.bf16.gmra.mxu3 %vm321_vm2, %v4910_v4  ;;  %v637_v21 = vpop.f32.mrf.mxu2 }
 0x17d   : > { %v6092_v23 = vadd.f32 %v637_v21, %v6014_v31  ;;  %v1630_v31 = vpop.permute.xlu2 %1629  ;;  %v2229_v9 = vld.sshfl [vmem:[#allocation1 + $0x18] sm:$0xff pattern:$0x73625140]  ;;  %v2223_v17 = vld.sshfl [vmem:[#allocation1] sm:$0xff pattern:$0x73625140] }
 0x17e   : > { %v618_v27 = vpop.f32.mrf.mxu1  ;;  %v599_v28 = vpop.f32.mrf.mxu0  ;;  %v1635_v43 = vsel %vm1631_vm10, %v1628_v41, %v1630_v31  ;;  %2239 = vrot.lane.b32.xlu0 %v2229_v9, %s5611_s27  ;;  %v2225_v19 = vld.sshfl [vmem:[#allocation1 + $0x8] sm:$0xff pattern:$0x73625140] }
 0x17f   : > { %v654_v24 = vpop.f32.mrf.mxu3  ;;  %v6101_v29 = vadd.f32 %v618_v27, %v6023_v37  ;;  %v6104_v30 = vadd.f32 %v599_v28, %v6026_v38  ;;  %v2078_v37 = vld.sshfl [vmem:[#allocation1 + $0x20] sm:$0xff pattern:$0x73625140]  ;;  %v1652_v48 = vsel %vm328_vm1, %v1635_v43, 0  ;;  %v1783_v28 = vpop.permute.xlu1 %1782 }
 0x180   : > { %v6098_v26 = vadd.f32 %v654_v24, %v6020_v34  ;;  %2088 = vrot.lane.b32.xlu2 %v2078_v37, %s5610_s10  ;;  %2222 = vst [vmem:[#allocation1 + $0x20] ss:$4 sm:$0xff] %v5734_v1 }
 0x181   : > { %4935 = vmatmul.msk.bf16.vlgmr.msrb.gmra.mxu2 %vm321_vm2, %v5347_v25 }
 0x184   : > { %v783_v32 = vpop.f32.mrf.mxu2 }
 0x185   : > { %v6109_v35 = vadd.f32 %v783_v32, %v6032_v46  ;;  %v5348_v46 = vld [vmem:[%s7684_s1 + $0x78] sm:$0x30] }
 0x186   : > { %v764_v36 = vpop.f32.mrf.mxu1  ;;  %v745_v39 = vpop.f32.mrf.mxu0  ;;  %2235 = vrot.lane.b32.xlu0 %v2225_v19, %s5611_s27 }
 0x187   : > { %v656_v33 = vpop.f32.mrf.mxu3  ;;  %v6115_v38 = vadd.f32 %v764_v36, %v6039_v54  ;;  %v6118_v40 = vadd.f32 %v745_v39, %v6042_v55  ;;  %v4930_v54 = vor.u32 %v5348_v46, %v4929_v45  ;;  %v1622_v55 = vpop.permute.xlu2 %1621  ;;  %v2231_v51 = vld.sshfl [vmem:[#allocation1 + $0x20] sm:$0xff pattern:$0x73625140]  ;;  %v5350_v36 = vld [vmem:[%s7684_s1 + $0x88] sm:$0x30] }
 0x188   : > { %v6112_v34 = vadd.f32 %v656_v33, %v6036_v47  ;;  %v1649_v47 = vsel %vm328_vm1, %v1634_v44, 0  ;;  %2241 = vrot.lane.b32.xlu1 %v2231_v51, %s5611_s27  ;;  %2375 = vst [vmem:[#allocation1 + $0x20] ss:$4 sm:$0xff] %v5734_v1  ;;  %2080 = vrot.lane.b32.xlu2 %v2070_v60, %s5610_s10  ;;  %v1632_v63 = vsel %vm1631_vm10, %v1622_v55, %v1624_v61  ;;  %v1781_v39 = vpop.permute.xlu0 %1780  ;;  %s5618_s10 = smov 54   ;;  %vm3773_vm10 = vcmask 359424  }
 0x189   : > { %4931 = vmatmul.msk.bf16.vlgmr.msrb.gmra.mxu0 %vm321_vm2, %v5347_v25  ;;  %4933 = vmatmul.msk.bf16.vlgmr.msrb.gmra.mxu1 %vm321_vm2, %v5347_v25  ;;  %v1643_v3 = vsel %vm328_vm1, %v1632_v63, 0  ;;  %v1788_v37 = vsel %vm1784_vm11, %v1781_v39, %v1783_v28 }
 0x18a   : > { %1699 = vmatpush.bf16.msrb.mxu2 %v1649_v47  ;;  %1661 = vmatpush.bf16.msrb.mxu0 %v1643_v3  ;;  %v1805_v41 = vsel %vm328_vm1, %v1788_v37, 0 }
 0x18c   : > { %4937 = vmatmul.msk.bf16.vlgmr.msrb.gmra.mxu3 %vm321_vm2, %v5347_v25  ;;  %v785_v49 = vpop.f32.mrf.mxu2 }
 0x18d   : > { %1718 = vmatpush.bf16.msrb.mxu3 %v1652_v48  ;;  %v6136_v50 = vadd.f32 %v785_v49, %v6060_v2  ;;  %v1646_v2 = vsel %vm328_vm1, %v1633_v62, 0 }
 0x18e   : > { %v747_v52 = vpop.f32.mrf.mxu0  ;;  %v766_v59 = vpop.f32.mrf.mxu1  ;;  %1680 = vmatpush.bf16.msrb.mxu1 %v1646_v2 }
 0x18f   : > { %v802_v53 = vpop.f32.mrf.mxu3  ;;  %v6142_v57 = vadd.f32 %v747_v52, %v6066_v11  ;;  %v6145_v58 = vadd.f32 %v766_v59, %v6069_v12  ;;  %v2384_v49 = vld.sshfl [vmem:[#allocation1 + $0x20] sm:$0xff pattern:$0x73625140] }
 0x190   : > { %v6139_v56 = vadd.f32 %v802_v53, %v6063_v6  ;;  %2233 = vrot.lane.b32.xlu1 %v2223_v17, %s5611_s27  ;;  %2394 = vrot.lane.b32.xlu0 %v2384_v49, %s5612_s12  ;;  %2528 = vst [vmem:[#allocation1 + $0x20] ss:$4 sm:$0xff] %v5734_v1 }
 0x191   : > { %4936 = vmatmul.msk.bf16.gmra.mxu2 %vm321_vm2, %v4930_v54 }
 0x194   : > { %v788_v4 = vpop.f32.mrf.mxu2 }
 0x195   : > { %v6157_v6 = vadd.f32 %v788_v4, %v6075_v13 }
 0x196   : > { %v750_v10 = vpop.f32.mrf.mxu0  ;;  %v769_v11 = vpop.f32.mrf.mxu1 }
 0x197   : > { %v804_v7 = vpop.f32.mrf.mxu3  ;;  %v6163_v12 = vadd.f32 %v750_v10, %v6081_v15  ;;  %v6166_v5 = vadd.f32 %v769_v11, %v6084_v20  ;;  %v5351_v11 = vld [vmem:[%s7684_s1 + $0x90] sm:$0xff] }
 0x198   : > { %v6160_v8 = vadd.f32 %v804_v7, %v6078_v16 }
 0x199   : > { %4932 = vmatmul.msk.bf16.gmra.mxu0 %vm321_vm2, %v4930_v54  ;;  %4934 = vmatmul.msk.bf16.gmra.mxu1 %vm321_vm2, %v4930_v54 }
 0x19c   : > { %4938 = vmatmul.msk.bf16.gmra.mxu3 %vm321_vm2, %v4930_v54  ;;  %v790_v13 = vpop.f32.mrf.mxu2 }
 0x19d   : > { %v6174_v16 = vadd.f32 %v790_v13, %v6092_v23 }
 0x19e   : > { %v771_v20 = vpop.f32.mrf.mxu1  ;;  %v752_v21 = vpop.f32.mrf.mxu0 }
 0x19f   : > { %v807_v14 = vpop.f32.mrf.mxu3  ;;  %v6183_v22 = vadd.f32 %v771_v20, %v6101_v29  ;;  %v6186_v24 = vadd.f32 %v752_v21, %v6104_v30  ;;  %v2227_v29 = vld.sshfl [vmem:[#allocation1 + $0x10] sm:$0xff pattern:$0x73625140] }
 0x1a0   : > { %v6180_v15 = vadd.f32 %v807_v14, %v6098_v26  ;;  %2237 = vrot.lane.b32.xlu2 %v2227_v29, %s5611_s27  ;;  %2373 = vst [vmem:[#allocation1] ss:$4 sm:$0xff] %v5732_v0 }
 0x1a1   : > { %4955 = vmatmul.msk.bf16.vlgmr.msra.gmra.mxu2 %vm321_vm2, %v5349_v18 }
 0x1a4   : > { %v936_v23 = vpop.f32.mrf.mxu2 }
 0x1a5   : > { %v6191_v27 = vadd.f32 %v936_v23, %v6109_v35  ;;  %v1779_v35 = vpop.permute.xlu2 %1778 }
 0x1a6   : > { %v917_v31 = vpop.f32.mrf.mxu1  ;;  %v898_v32 = vpop.f32.mrf.mxu0 }
 0x1a7   : > { %v809_v25 = vpop.f32.mrf.mxu3  ;;  %v6197_v33 = vadd.f32 %v917_v31, %v6115_v38  ;;  %v6200_v30 = vadd.f32 %v898_v32, %v6118_v40  ;;  %v1787_v38 = vsel %vm1784_vm11, %v1779_v35, %v1781_v39  ;;  %v2380_v53 = vld.sshfl [vmem:[#allocation1 + $0x10] sm:$0xff pattern:$0x73625140]  ;;  %v2376_v3 = vld.sshfl [vmem:[#allocation1] sm:$0xff pattern:$0x73625140] }
 0x1a8   : > { %v6194_v26 = vadd.f32 %v809_v25, %v6112_v34  ;;  %v4949_v34 = vld [vmem:[%s7684_s1 + $0x88] sm:$0xf]  ;;  %v1802_v42 = vsel %vm328_vm1, %v1787_v38, 0  ;;  %2390 = vrot.lane.b32.xlu1 %v2380_v53, %s5612_s12  ;;  %2386 = vrot.lane.b32.xlu0 %v2376_v3, %s5612_s12  ;;  %v2382_v31 = vld.sshfl [vmem:[#allocation1 + $0x18] sm:$0xff pattern:$0x73625140] }
 0x1a9   : > { %4951 = vmatmul.msk.bf16.vlgmr.msra.gmra.mxu0 %vm321_vm2, %v5349_v18  ;;  %4953 = vmatmul.msk.bf16.vlgmr.msra.gmra.mxu1 %vm321_vm2, %v5349_v18  ;;  %v4950_v45 = vor.u32 %v5350_v36, %v4949_v34 }
 0x1aa   : > { %1852 = vmatpush.bf16.msra.mxu2 %v1802_v42  ;;  %2392 = vrot.lane.b32.xlu2 %v2382_v31, %s5612_s12 }
 0x1ac   : > { %4957 = vmatmul.msk.bf16.vlgmr.msra.gmra.mxu3 %vm321_vm2, %v5349_v18  ;;  %v938_v40 = vpop.f32.mrf.mxu2 }
 0x1ad   : > { %v6218_v43 = vadd.f32 %v938_v40, %v6136_v50  ;;  %1871 = vmatpush.bf16.msra.mxu3 %v1805_v41  ;;  %v1775_v50 = vpop.permute.xlu1 %1774  ;;  %v1934_v14 = vpop.permute.xlu2 %1933 }
 0x1ae   : > { %v900_v48 = vpop.f32.mrf.mxu0  ;;  %v919_v47 = vpop.f32.mrf.mxu1 }
 0x1af   : > { %v955_v44 = vpop.f32.mrf.mxu3  ;;  %v6224_v54 = vadd.f32 %v900_v48, %v6142_v57  ;;  %v6227_v55 = vadd.f32 %v919_v47, %v6145_v58  ;;  %v2378_v47 = vld.sshfl [vmem:[#allocation1 + $0x8] sm:$0xff pattern:$0x73625140] }
 0x1b0   : > { %v6221_v46 = vadd.f32 %v955_v44, %v6139_v56  ;;  %v1777_v56 = vpop.permute.xlu0 %1776  ;;  %2526 = vst [vmem:[#allocation1] ss:$4 sm:$0xff] %v5732_v0 }
 0x1b1   : > { %4956 = vmatmul.msk.bf16.gmra.mxu2 %vm321_vm2, %v4950_v45  ;;  %v1786_v52 = vsel %vm1784_vm11, %v1777_v56, %v1779_v35  ;;  %v1785_v59 = vsel %vm1784_vm11, %v1775_v50, %v1777_v56  ;;  %vm3926_vm11 = vcmask 293888  }
 0x1b2   : > { %v1799_v60 = vsel %vm328_vm1, %v1786_v52, 0  ;;  %v1796_v57 = vsel %vm328_vm1, %v1785_v59, 0  ;;  %2388 = vrot.lane.b32.xlu2 %v2378_v47, %s5612_s12  ;;  %s5623_s12 = smov 35  }
 0x1b3   : > { %1814 = vmatpush.bf16.msra.mxu0 %v1796_v57  ;;  %1833 = vmatpush.bf16.msra.mxu1 %v1799_v60 }
 0x1b4   : > { %v941_v51 = vpop.f32.mrf.mxu2 }
 0x1b5   : > { %v6238_v58 = vadd.f32 %v941_v51, %v6157_v6  ;;  %v1932_v18 = vpop.permute.xlu1 %1931  ;;  %v1930_v35 = vpop.permute.xlu2 %1929 }
 0x1b6   : > { %v903_v63 = vpop.f32.mrf.mxu0  ;;  %v922_v2 = vpop.f32.mrf.mxu1  ;;  %v1940_v19 = vsel %vm1937_vm12, %v1932_v18, %v1934_v14  ;;  %v1939_v34 = vsel %vm1937_vm12, %v1930_v35, %v1932_v18 }
 0x1b7   : > { %v957_v61 = vpop.f32.mrf.mxu3  ;;  %v6244_v4 = vadd.f32 %v903_v63, %v6163_v12  ;;  %v6247_v7 = vadd.f32 %v922_v2, %v6166_v5  ;;  %v1952_v39 = vsel %vm328_vm1, %v1939_v34, 0  ;;  %v2535_v59 = vld.sshfl [vmem:[#allocation1 + $0x18] sm:$0xff pattern:$0x73625140]  ;;  %v5353_v63 = vld [vmem:[%s7684_s1 + $0xa0] sm:$0xff] }
 0x1b8   : > { %v6241_v62 = vadd.f32 %v957_v61, %v6160_v8  ;;  %v2533_v51 = vld.sshfl [vmem:[#allocation1 + $0x10] sm:$0xff pattern:$0x73625140]  ;;  %2545 = vrot.lane.b32.xlu1 %v2535_v59, %s5613_s6 }
 0x1b9   : > { %4952 = vmatmul.msk.bf16.gmra.mxu0 %vm321_vm2, %v4950_v45  ;;  %4954 = vmatmul.msk.bf16.gmra.mxu1 %vm321_vm2, %v4950_v45  ;;  %v5355_v59 = vld [vmem:[%s7684_s1 + $0xb0] sm:$0xff] }
 0x1ba   : > { %2543 = vrot.lane.b32.xlu0 %v2533_v51, %s5613_s6 }
 0x1bc   : > { %4958 = vmatmul.msk.bf16.gmra.mxu3 %vm321_vm2, %v4950_v45  ;;  %v943_v6 = vpop.f32.mrf.mxu2 }
 0x1bd   : > { %v6254_v8 = vadd.f32 %v943_v6, %v6174_v16  ;;  %v1936_v16 = vpop.permute.xlu0 %1935 }
 0x1be   : > { %v924_v5 = vpop.f32.mrf.mxu1  ;;  %v905_v9 = vpop.f32.mrf.mxu0 }
 0x1bf   : > { %v960_v10 = vpop.f32.mrf.mxu3  ;;  %v6263_v17 = vadd.f32 %v924_v5, %v6183_v22  ;;  %v6266_v13 = vadd.f32 %v905_v9, %v6186_v24  ;;  %v1941_v22 = vsel %vm1937_vm12, %v1934_v14, %v1936_v16 }
 0x1c0   : > { %v6260_v12 = vadd.f32 %v960_v10, %v6180_v15  ;;  %v1955_v15 = vsel %vm328_vm1, %v1940_v19, 0 }
 0x1c1   : > { %4975 = vmatmul.msk.bf16.vlgmr.msrb.gmra.mxu2 %vm321_vm2, %v5351_v11 }
 0x1c2   : > { %2005 = vmatpush.bf16.msrb.mxu2 %v1955_v15  ;;  %v5354_v15 = vld [vmem:[%s7684_s1 + $0xa8] sm:$0x30] }
 0x1c4   : > { %v1089_v20 = vpop.f32.mrf.mxu2 }
 0x1c5   : > { %v6272_v23 = vadd.f32 %v1089_v20, %v6191_v27  ;;  %v1958_v27 = vsel %vm328_vm1, %v1941_v22, 0  ;;  %v4989_v20 = vld [vmem:[%s7684_s1 + $0xa8] sm:$0xf] }
 0x1c6   : > { %v1070_v25 = vpop.f32.mrf.mxu1  ;;  %v1051_v28 = vpop.f32.mrf.mxu0 }
 0x1c7   : > { %v962_v21 = vpop.f32.mrf.mxu3  ;;  %v6279_v32 = vadd.f32 %v1070_v25, %v6197_v33  ;;  %v6282_v29 = vadd.f32 %v1051_v28, %v6200_v30  ;;  %v4969_v33 = vld [vmem:[%s7684_s1 + $0x98] sm:$0xf]  ;;  %v5352_v30 = vld [vmem:[%s7684_s1 + $0x98] sm:$0x30] }
 0x1c8   : > { %v6276_v24 = vadd.f32 %v962_v21, %v6194_v26  ;;  %v1928_v26 = vpop.permute.xlu0 %1927  ;;  %v4970_v42 = vor.u32 %v5352_v30, %v4969_v33  ;;  %v2529_v33 = vld.sshfl [vmem:[#allocation1] sm:$0xff pattern:$0x73625140] }
 0x1c9   : > { %4971 = vmatmul.msk.bf16.vlgmr.msrb.gmra.mxu0 %vm321_vm2, %v5351_v11  ;;  %4973 = vmatmul.msk.bf16.vlgmr.msrb.gmra.mxu1 %vm321_vm2, %v5351_v11  ;;  %v1938_v36 = vsel %vm1937_vm12, %v1928_v26, %v1930_v35  ;;  %vm4079_vm12 = vcmask 285696  }
 0x1ca   : > { %v1949_v37 = vsel %vm328_vm1, %v1938_v36, 0  ;;  %1986 = vmatpush.bf16.msrb.mxu1 %v1952_v39  ;;  %v2087_v18 = vpop.permute.xlu1 %2086 }
 0x1cb   : > { %1967 = vmatpush.bf16.msrb.mxu0 %v1949_v37 }
 0x1cc   : > { %4977 = vmatmul.msk.bf16.vlgmr.msrb.gmra.mxu3 %vm321_vm2, %v5351_v11  ;;  %v1091_v38 = vpop.f32.mrf.mxu2 }
 0x1cd   : > { %2024 = vmatpush.bf16.msrb.mxu3 %v1958_v27  ;;  %v6300_v40 = vadd.f32 %v1091_v38, %v6218_v43 }
 0x1ce   : > { %v1053_v45 = vpop.f32.mrf.mxu0  ;;  %v1072_v48 = vpop.f32.mrf.mxu1 }
 0x1cf   : > { %v1108_v41 = vpop.f32.mrf.mxu3  ;;  %v6306_v49 = vadd.f32 %v1053_v45, %v6224_v54  ;;  %v6309_v53 = vadd.f32 %v1072_v48, %v6227_v55 }
 0x1d0   : > { %v6303_v44 = vadd.f32 %v1108_v41, %v6221_v46  ;;  %v2085_v19 = vpop.permute.xlu0 %2084 }
 0x1d1   : > { %4976 = vmatmul.msk.bf16.gmra.mxu2 %vm321_vm2, %v4970_v42 }
 0x1d4   : > { %v1094_v43 = vpop.f32.mrf.mxu2 }
 0x1d5   : > { %v6315_v50 = vadd.f32 %v1094_v43, %v6238_v58  ;;  %v2531_v58 = vld.sshfl [vmem:[#allocation1 + $0x8] sm:$0xff pattern:$0x73625140] }
 0x1d6   : > { %v1056_v52 = vpop.f32.mrf.mxu0  ;;  %v1075_v54 = vpop.f32.mrf.mxu1  ;;  %2541 = vrot.lane.b32.xlu1 %v2531_v58, %s5613_s6  ;;  %2679 = vst [vmem:[#allocation1] ss:$4 sm:$0xff] %v5732_v0 }
 0x1d7   : > { %v1110_v46 = vpop.f32.mrf.mxu3  ;;  %v6321_v55 = vadd.f32 %v1056_v52, %v6244_v4  ;;  %v6324_v60 = vadd.f32 %v1075_v54, %v6247_v7 }
 0x1d8   : > { %v6318_v56 = vadd.f32 %v1110_v46, %v6241_v62 }
 0x1d9   : > { %4972 = vmatmul.msk.bf16.gmra.mxu0 %vm321_vm2, %v4970_v42  ;;  %4974 = vmatmul.msk.bf16.gmra.mxu1 %vm321_vm2, %v4970_v42 }
 0x1da   : > { %v2089_v5 = vpop.permute.xlu2 %2088 }
 0x1db   : > { %v2094_v21 = vsel %vm2090_vm13, %v2087_v18, %v2089_v5 }
 0x1dc   : > { %4978 = vmatmul.msk.bf16.gmra.mxu3 %vm321_vm2, %v4970_v42  ;;  %v1096_v57 = vpop.f32.mrf.mxu2  ;;  %v2111_v22 = vsel %vm328_vm1, %v2094_v21, 0 }
 0x1dd   : > { %v6332_v61 = vadd.f32 %v1096_v57, %v6254_v8  ;;  %v2688_v46 = vld.sshfl [vmem:[#allocation1 + $0x18] sm:$0xff pattern:$0x73625140]  ;;  %v2682_v52 = vld.sshfl [vmem:[#allocation1] sm:$0xff pattern:$0x73625140] }
 0x1de   : > { %v1077_v3 = vpop.f32.mrf.mxu1  ;;  %v1058_v4 = vpop.f32.mrf.mxu0  ;;  %2698 = vrot.lane.b32.xlu0 %v2688_v46, %s5614_s23  ;;  %v2684_v51 = vld.sshfl [vmem:[#allocation1 + $0x8] sm:$0xff pattern:$0x73625140] }
 0x1df   : > { %v1113_v62 = vpop.f32.mrf.mxu3  ;;  %v6341_v7 = vadd.f32 %v1077_v3, %v6263_v17  ;;  %v6344_v6 = vadd.f32 %v1058_v4, %v6266_v13  ;;  %v2537_v17 = vld.sshfl [vmem:[#allocation1 + $0x20] sm:$0xff pattern:$0x73625140] }
 0x1e0   : > { %v6338_v2 = vadd.f32 %v1113_v62, %v6260_v12  ;;  %2547 = vrot.lane.b32.xlu2 %v2537_v17, %s5613_s6  ;;  %2681 = vst [vmem:[#allocation1 + $0x20] ss:$4 sm:$0xff] %v5734_v1 }
 0x1e1   : > { %4995 = vmatmul.msk.bf16.vlgmr.msra.gmra.mxu2 %vm321_vm2, %v5353_v63 }
 0x1e2   : > { %v2081_v36 = vpop.permute.xlu2 %2080 }
 0x1e4   : > { %v1242_v8 = vpop.f32.mrf.mxu2 }
 0x1e5   : > { %v6349_v11 = vadd.f32 %v1242_v8, %v6272_v23  ;;  %v2093_v23 = vsel %vm2090_vm13, %v2085_v19, %v2087_v18 }
 0x1e6   : > { %v1223_v9 = vpop.f32.mrf.mxu1  ;;  %v1204_v16 = vpop.f32.mrf.mxu0  ;;  %2694 = vrot.lane.b32.xlu0 %v2684_v51, %s5614_s23 }
 0x1e7   : > { %v1115_v10 = vpop.f32.mrf.mxu3  ;;  %v6355_v14 = vadd.f32 %v1223_v9, %v6279_v32  ;;  %v6358_v13 = vadd.f32 %v1204_v16, %v6282_v29  ;;  %v4990_v32 = vor.u32 %v5354_v15, %v4989_v20  ;;  %v2690_v26 = vld.sshfl [vmem:[#allocation1 + $0x20] sm:$0xff pattern:$0x73625140]  ;;  %v5356_v9 = vld [vmem:[%s7684_s1 + $0xb8] sm:$0x30] }
 0x1e8   : > { %v6352_v12 = vadd.f32 %v1115_v10, %v6276_v24  ;;  %v2108_v24 = vsel %vm328_vm1, %v2093_v23, 0  ;;  %2700 = vrot.lane.b32.xlu1 %v2690_v26, %s5614_s23  ;;  %2834 = vst [vmem:[#allocation1 + $0x20] ss:$4 sm:$0xff] %v5734_v1  ;;  %2539 = vrot.lane.b32.xlu2 %v2529_v33, %s5613_s6  ;;  %v2083_v39 = vpop.permute.xlu1 %2082  ;;  %s5624_s6 = smov 34  }
 0x1e9   : > { %4991 = vmatmul.msk.bf16.vlgmr.msra.gmra.mxu0 %vm321_vm2, %v5353_v63  ;;  %4993 = vmatmul.msk.bf16.vlgmr.msra.gmra.mxu1 %vm321_vm2, %v5353_v63  ;;  %v2092_v37 = vsel %vm2090_vm13, %v2083_v39, %v2085_v19  ;;  %v2091_v38 = vsel %vm2090_vm13, %v2081_v36, %v2083_v39  ;;  %vm4232_vm13 = vcmask 277504  }
 0x1ea   : > { %2158 = vmatpush.bf16.msra.mxu2 %v2108_v24  ;;  %v2102_v41 = vsel %vm328_vm1, %v2091_v38, 0 }
 0x1eb   : > { %2120 = vmatpush.bf16.msra.mxu0 %v2102_v41 }
 0x1ec   : > { %4997 = vmatmul.msk.bf16.vlgmr.msra.gmra.mxu3 %vm321_vm2, %v5353_v63  ;;  %v1244_v25 = vpop.f32.mrf.mxu2 }
 0x1ed   : > { %2177 = vmatpush.bf16.msra.mxu3 %v2111_v22  ;;  %v6376_v28 = vadd.f32 %v1244_v25, %v6300_v40  ;;  %v2105_v40 = vsel %vm328_vm1, %v2092_v37, 0 }
 0x1ee   : > { %v1206_v27 = vpop.f32.mrf.mxu0  ;;  %v1225_v35 = vpop.f32.mrf.mxu1  ;;  %2139 = vmatpush.bf16.msra.mxu1 %v2105_v40 }
 0x1ef   : > { %v1261_v31 = vpop.f32.mrf.mxu3  ;;  %v6382_v30 = vadd.f32 %v1206_v27, %v6306_v49  ;;  %v6385_v34 = vadd.f32 %v1225_v35, %v6309_v53  ;;  %v2843_v25 = vld.sshfl [vmem:[#allocation1 + $0x20] sm:$0xff pattern:$0x73625140] }
 0x1f0   : > { %v6379_v29 = vadd.f32 %v1261_v31, %v6303_v44  ;;  %2692 = vrot.lane.b32.xlu1 %v2682_v52, %s5614_s23  ;;  %v2240_v16 = vpop.permute.xlu0 %2239  ;;  %2853 = vrot.lane.b32.xlu0 %v2843_v25, %s5615_s11  ;;  %2987 = vst [vmem:[#allocation1 + $0x20] ss:$4 sm:$0xff] %v5734_v1 }
 0x1f1   : > { %4996 = vmatmul.msk.bf16.gmra.mxu2 %vm321_vm2, %v4990_v32 }
 0x1f4   : > { %v1247_v42 = vpop.f32.mrf.mxu2 }
 0x1f5   : > { %v6397_v44 = vadd.f32 %v1247_v42, %v6315_v50 }
 0x1f6   : > { %v1209_v47 = vpop.f32.mrf.mxu0  ;;  %v1228_v49 = vpop.f32.mrf.mxu1 }
 0x1f7   : > { %v1263_v45 = vpop.f32.mrf.mxu3  ;;  %v6403_v53 = vadd.f32 %v1209_v47, %v6321_v55  ;;  %v6406_v43 = vadd.f32 %v1228_v49, %v6324_v60  ;;  %v5357_v49 = vld [vmem:[%s7684_s1 + $0xc0] sm:$0xff] }
 0x1f8   : > { %v6400_v48 = vadd.f32 %v1263_v45, %v6318_v56 }
 0x1f9   : > { %4992 = vmatmul.msk.bf16.gmra.mxu0 %vm321_vm2, %v4990_v32  ;;  %4994 = vmatmul.msk.bf16.gmra.mxu1 %vm321_vm2, %v4990_v32 }
 0x1fa   : > { %v2242_v4 = vpop.permute.xlu1 %2241 }
 0x1fb   : > { %v2247_v17 = vsel %vm2243_vm14, %v2240_v16, %v2242_v4 }
 0x1fc   : > { %4998 = vmatmul.msk.bf16.gmra.mxu3 %vm321_vm2, %v4990_v32  ;;  %v1249_v50 = vpop.f32.mrf.mxu2  ;;  %v2264_v18 = vsel %vm328_vm1, %v2247_v17, 0 }
 0x1fd   : > { %v6414_v56 = vadd.f32 %v1249_v50, %v6332_v61 }
 0x1fe   : > { %v1230_v60 = vpop.f32.mrf.mxu1  ;;  %v1211_v57 = vpop.f32.mrf.mxu0 }
 0x1ff   : > { %v1266_v54 = vpop.f32.mrf.mxu3  ;;  %v6423_v58 = vadd.f32 %v1230_v60, %v6341_v7  ;;  %v6426_v62 = vadd.f32 %v1211_v57, %v6344_v6  ;;  %v2686_v7 = vld.sshfl [vmem:[#allocation1 + $0x10] sm:$0xff pattern:$0x73625140] }
 0x200   : > { %v6420_v55 = vadd.f32 %v1266_v54, %v6338_v2  ;;  %2696 = vrot.lane.b32.xlu2 %v2686_v7, %s5614_s23  ;;  %2832 = vst [vmem:[#allocation1] ss:$4 sm:$0xff] %v5732_v0  ;;  %s4782_s23 = sshll.u32 %s5725_s8, 3 }
 0x201   : > { %5015 = vmatmul.msk.bf16.vlgmr.msrb.gmra.mxu2 %vm321_vm2, %v5355_v59 }
 0x204   : > { %v1395_v61 = vpop.f32.mrf.mxu2 }
 0x205   : > { %v6431_v3 = vadd.f32 %v1395_v61, %v6349_v11  ;;  %v2238_v11 = vpop.permute.xlu2 %2237 }
 0x206   : > { %v1376_v8 = vpop.f32.mrf.mxu1  ;;  %v1357_v10 = vpop.f32.mrf.mxu0 }
 0x207   : > { %v1268_v63 = vpop.f32.mrf.mxu3  ;;  %v6437_v5 = vadd.f32 %v1376_v8, %v6355_v14  ;;  %v6440_v6 = vadd.f32 %v1357_v10, %v6358_v13  ;;  %v2246_v14 = vsel %vm2243_vm14, %v2238_v11, %v2240_v16  ;;  %v2839_v31 = vld.sshfl [vmem:[#allocation1 + $0x10] sm:$0xff pattern:$0x73625140]  ;;  %v2835_v41 = vld.sshfl [vmem:[#allocation1] sm:$0xff pattern:$0x73625140] }
 0x208   : > { %v6434_v2 = vadd.f32 %v1268_v63, %v6352_v12  ;;  %v5009_v12 = vld [vmem:[%s7684_s1 + $0xb8] sm:$0xf]  ;;  %v2261_v19 = vsel %vm328_vm1, %v2246_v14, 0  ;;  %2849 = vrot.lane.b32.xlu1 %v2839_v31, %s5615_s11  ;;  %2845 = vrot.lane.b32.xlu0 %v2835_v41, %s5615_s11  ;;  %v2837_v25 = vld.sshfl [vmem:[#allocation1 + $0x8] sm:$0xff pattern:$0x73625140] }
 0x209   : > { %5011 = vmatmul.msk.bf16.vlgmr.msrb.gmra.mxu0 %vm321_vm2, %v5355_v59  ;;  %5013 = vmatmul.msk.bf16.vlgmr.msrb.gmra.mxu1 %vm321_vm2, %v5355_v59  ;;  %v5010_v21 = vor.u32 %v5356_v9, %v5009_v12  ;;  %v2841_v8 = vld.sshfl [vmem:[#allocation1 + $0x18] sm:$0xff pattern:$0x73625140] }
 0x20a   : > { %2311 = vmatpush.bf16.msrb.mxu2 %v2261_v19  ;;  %2851 = vrot.lane.b32.xlu2 %v2841_v8, %s5615_s11  ;;  %2985 = vst [vmem:[#allocation1] ss:$4 sm:$0xff] %v5732_v0 }
 0x20c   : > { %5017 = vmatmul.msk.bf16.vlgmr.msrb.gmra.mxu3 %vm321_vm2, %v5355_v59  ;;  %v1397_v13 = vpop.f32.mrf.mxu2 }
 0x20d   : > { %v6458_v20 = vadd.f32 %v1397_v13, %v6376_v28  ;;  %2330 = vmatpush.bf16.msrb.mxu3 %v2264_v18  ;;  %v2234_v28 = vpop.permute.xlu1 %2233  ;;  %v2393_v54 = vpop.permute.xlu2 %2392 }
 0x20e   : > { %v1359_v22 = vpop.f32.mrf.mxu0  ;;  %v1378_v24 = vpop.f32.mrf.mxu1 }
 0x20f   : > { %v1414_v15 = vpop.f32.mrf.mxu3  ;;  %v6464_v32 = vadd.f32 %v1359_v22, %v6382_v30  ;;  %v6467_v27 = vadd.f32 %v1378_v24, %v6385_v34  ;;  %v2994_v24 = vld.sshfl [vmem:[#allocation1 + $0x20] sm:$0xff pattern:$0x73625140] }
 0x210   : > { %v6461_v23 = vadd.f32 %v1414_v15, %v6379_v29  ;;  %v2236_v29 = vpop.permute.xlu0 %2235  ;;  %3004 = vrot.lane.b32.xlu1 %v2994_v24, %s5616_s5 }
 0x211   : > { %5016 = vmatmul.msk.bf16.gmra.mxu2 %vm321_vm2, %v5010_v21  ;;  %v2245_v35 = vsel %vm2243_vm14, %v2236_v29, %v2238_v11  ;;  %v2244_v26 = vsel %vm2243_vm14, %v2234_v28, %v2236_v29 }
 0x212   : > { %v2258_v30 = vsel %vm328_vm1, %v2245_v35, 0  ;;  %v2255_v34 = vsel %vm328_vm1, %v2244_v26, 0  ;;  %2847 = vrot.lane.b32.xlu2 %v2837_v25, %s5615_s11  ;;  %v2992_v26 = vld.sshfl [vmem:[#allocation1 + $0x18] sm:$0xff pattern:$0x73625140] }
 0x213   : > { %2273 = vmatpush.bf16.msrb.mxu0 %v2255_v34  ;;  %2292 = vmatpush.bf16.msrb.mxu1 %v2258_v30 }
 0x214   : > { %v1400_v33 = vpop.f32.mrf.mxu2  ;;  %3002 = vrot.lane.b32.xlu0 %v2992_v26, %s5616_s5  ;;  %v5361_v26 = vld [vmem:[%s7684_s1 + $0xe0] sm:$0xff] }
 0x215   : > { %v6478_v36 = vadd.f32 %v1400_v33, %v6397_v44  ;;  %v2389_v11 = vpop.permute.xlu2 %2388  ;;  %v2990_v33 = vld.sshfl [vmem:[#allocation1 + $0x10] sm:$0xff pattern:$0x73625140] }
 0x216   : > { %v1362_v38 = vpop.f32.mrf.mxu0  ;;  %v1381_v40 = vpop.f32.mrf.mxu1 }
 0x217   : > { %v1416_v39 = vpop.f32.mrf.mxu3  ;;  %v6484_v42 = vadd.f32 %v1362_v38, %v6403_v53  ;;  %v6487_v45 = vadd.f32 %v1381_v40, %v6406_v43  ;;  %v5359_v38 = vld [vmem:[%s7684_s1 + $0xd0] sm:$0xff] }
 0x218   : > { %v6481_v37 = vadd.f32 %v1416_v39, %v6400_v48  ;;  %3000 = vrot.lane.b32.xlu1 %v2990_v33, %s5616_s5 }
 0x219   : > { %5012 = vmatmul.msk.bf16.gmra.mxu0 %vm321_vm2, %v5010_v21  ;;  %5014 = vmatmul.msk.bf16.gmra.mxu1 %vm321_vm2, %v5010_v21 }
 0x21a   : > { %v2391_v59 = vpop.permute.xlu1 %2390 }
 0x21b   : > { %v2399_v51 = vsel %vm2396_vm15, %v2391_v59, %v2393_v54  ;;  %v2398_v12 = vsel %vm2396_vm15, %v2389_v11, %v2391_v59 }
 0x21c   : > { %5018 = vmatmul.msk.bf16.gmra.mxu3 %vm321_vm2, %v5010_v21  ;;  %v1402_v44 = vpop.f32.mrf.mxu2  ;;  %v2411_v16 = vsel %vm328_vm1, %v2398_v12, 0 }
 0x21d   : > { %v6494_v48 = vadd.f32 %v1402_v44, %v6414_v56  ;;  %v2395_v56 = vpop.permute.xlu0 %2394 }
 0x21e   : > { %v1383_v43 = vpop.f32.mrf.mxu1  ;;  %v1364_v46 = vpop.f32.mrf.mxu0 }
 0x21f   : > { %v1419_v47 = vpop.f32.mrf.mxu3  ;;  %v6503_v52 = vadd.f32 %v1383_v43, %v6423_v58  ;;  %v6506_v50 = vadd.f32 %v1364_v46, %v6426_v62  ;;  %v2400_v58 = vsel %vm2396_vm15, %v2393_v54, %v2395_v56  ;;  %v2996_v54 = vld.sshfl [vmem:[#allocation1 + $0x28] sm:$0xff pattern:$0x73625140] }
 0x220   : > { %v6500_v53 = vadd.f32 %v1419_v47, %v6420_v55  ;;  %v2414_v55 = vsel %vm328_vm1, %v2399_v51, 0  ;;  %3006 = vrot.lane.b32.xlu2 %v2996_v54, %s5616_s5  ;;  %3140 = vst [vmem:[#allocation1 + $0x20] ss:$4 sm:$0xff] %v5734_v1 }
 0x221   : > { %5035 = vmatmul.msk.bf16.vlgmr.msra.gmra.mxu2 %vm321_vm2, %v5357_v49 }
 0x222   : > { %2464 = vmatpush.bf16.msra.mxu2 %v2414_v55  ;;  %v5360_v55 = vld [vmem:[%s7684_s1 + $0xd8] sm:$0x30] }
 0x224   : > { %v1548_v60 = vpop.f32.mrf.mxu2 }
 0x225   : > { %v6512_v61 = vadd.f32 %v1548_v60, %v6431_v3  ;;  %v2417_v3 = vsel %vm328_vm1, %v2400_v58, 0  ;;  %v5049_v60 = vld [vmem:[%s7684_s1 + $0xd8] sm:$0xf] }
 0x226   : > { %v1529_v63 = vpop.f32.mrf.mxu1  ;;  %v1510_v4 = vpop.f32.mrf.mxu0 }
 0x227   : > { %v1421_v57 = vpop.f32.mrf.mxu3  ;;  %v6519_v10 = vadd.f32 %v1529_v63, %v6437_v5  ;;  %v6522_v7 = vadd.f32 %v1510_v4, %v6440_v6  ;;  %v5029_v5 = vld [vmem:[%s7684_s1 + $0xc8] sm:$0xf]  ;;  %v5358_v6 = vld [vmem:[%s7684_s1 + $0xc8] sm:$0x30] }
 0x228   : > { %v6516_v62 = vadd.f32 %v1421_v57, %v6434_v2  ;;  %v2387_v2 = vpop.permute.xlu0 %2386  ;;  %v5030_v19 = vor.u32 %v5358_v6, %v5029_v5  ;;  %v3149_v5 = vld.sshfl [vmem:[#allocation1 + $0x28] sm:$0xff pattern:$0x73625140] }
 0x229   : > { %5031 = vmatmul.msk.bf16.vlgmr.msra.gmra.mxu0 %vm321_vm2, %v5357_v49  ;;  %5033 = vmatmul.msk.bf16.vlgmr.msra.gmra.mxu1 %vm321_vm2, %v5357_v49  ;;  %v2397_v9 = vsel %vm2396_vm15, %v2387_v2, %v2389_v11  ;;  %v3147_v2 = vld.sshfl [vmem:[#allocation1 + $0x20] sm:$0xff pattern:$0x73625140] }
 0x22a   : > { %v2408_v17 = vsel %vm328_vm1, %v2397_v9, 0  ;;  %2445 = vmatpush.bf16.msra.mxu1 %v2411_v16  ;;  %v2546_v59 = vpop.permute.xlu1 %2545  ;;  %3157 = vrot.lane.b32.xlu0 %v3147_v2, %s5617_s14  ;;  %3293 = vst [vmem:[#allocation1 + $0x20] ss:$4 sm:$0xff] %v5734_v1  ;;  %v2988_v16 = vld.sshfl [vmem:[#allocation1 + $0x8] sm:$0xff pattern:$0x73625140] }
 0x22b   : > { %2426 = vmatpush.bf16.msra.mxu0 %v2408_v17  ;;  %3159 = vrot.lane.b32.xlu1 %v3149_v5, %s5617_s14  ;;  %3138 = vst [vmem:[#allocation1] ss:$4 sm:$0xff] %v5732_v0 }
 0x22c   : > { %5037 = vmatmul.msk.bf16.vlgmr.msra.gmra.mxu3 %vm321_vm2, %v5357_v49  ;;  %v1550_v14 = vpop.f32.mrf.mxu2  ;;  %2998 = vrot.lane.b32.xlu2 %v2988_v16, %s5616_s5 }
 0x22d   : > { %2483 = vmatpush.bf16.msra.mxu3 %v2417_v3  ;;  %v6540_v13 = vadd.f32 %v1550_v14, %v6458_v20 }
 0x22e   : > { %v1512_v21 = vpop.f32.mrf.mxu0  ;;  %v1531_v22 = vpop.f32.mrf.mxu1 }
 0x22f   : > { %v1567_v18 = vpop.f32.mrf.mxu3  ;;  %v6546_v31 = vadd.f32 %v1512_v21, %v6464_v32  ;;  %v6549_v28 = vadd.f32 %v1531_v22, %v6467_v27 }
 0x230   : > { %v6543_v15 = vadd.f32 %v1567_v18, %v6461_v23  ;;  %v2544_v51 = vpop.permute.xlu0 %2543 }
 0x231   : > { %5036 = vmatmul.msk.bf16.gmra.mxu2 %vm321_vm2, %v5030_v19 }
 0x234   : > { %v1553_v20 = vpop.f32.mrf.mxu2 }
 0x235   : > { %v6556_v23 = vadd.f32 %v1553_v20, %v6478_v36 }
 0x236   : > { %v1515_v35 = vpop.f32.mrf.mxu0  ;;  %v1534_v27 = vpop.f32.mrf.mxu1 }
 0x237   : > { %v1569_v29 = vpop.f32.mrf.mxu3  ;;  %v6562_v30 = vadd.f32 %v1515_v35, %v6484_v42  ;;  %v6565_v34 = vadd.f32 %v1534_v27, %v6487_v45  ;;  %v3141_v35 = vld.sshfl [vmem:[#allocation1 + $0x8] sm:$0xff pattern:$0x73625140] }
 0x238   : > { %v6559_v32 = vadd.f32 %v1569_v29, %v6481_v37  ;;  %v3143_v29 = vld.sshfl [vmem:[#allocation1 + $0x10] sm:$0xff pattern:$0x73625140]  ;;  %3151 = vrot.lane.b32.xlu1 %v3141_v35, %s5617_s14 }
 0x239   : > { %5032 = vmatmul.msk.bf16.gmra.mxu0 %vm321_vm2, %v5030_v19  ;;  %5034 = vmatmul.msk.bf16.gmra.mxu1 %vm321_vm2, %v5030_v19 }
 0x23a   : > { %v2548_v43 = vpop.permute.xlu2 %2547  ;;  %3153 = vrot.lane.b32.xlu0 %v3143_v29, %s5617_s14 }
 0x23b   : > { %v2553_v57 = vsel %vm2549_vm0, %v2546_v59, %v2548_v43  ;;  %v3145_v43 = vld.sshfl [vmem:[#allocation1 + $0x18] sm:$0xff pattern:$0x73625140] }
 0x23c   : > { %5038 = vmatmul.msk.bf16.gmra.mxu3 %vm321_vm2, %v5030_v19  ;;  %v1555_v36 = vpop.f32.mrf.mxu2  ;;  %v2570_v58 = vsel %vm328_vm1, %v2553_v57, 0  ;;  %3155 = vrot.lane.b32.xlu2 %v3145_v43, %s5617_s14  ;;  %3291 = vst [vmem:[#allocation1] ss:$4 sm:$0xff] %v5732_v0 }
 0x23d   : > { %v6573_v39 = vadd.f32 %v1555_v36, %v6494_v48 }
 0x23e   : > { %v1536_v41 = vpop.f32.mrf.mxu1  ;;  %v1517_v42 = vpop.f32.mrf.mxu0 }
 0x23f   : > { %v1572_v37 = vpop.f32.mrf.mxu3  ;;  %v6582_v45 = vadd.f32 %v1536_v41, %v6503_v52  ;;  %v6585_v44 = vadd.f32 %v1517_v42, %v6506_v50 }
 0x240   : > { %v6579_v40 = vadd.f32 %v1572_v37, %v6500_v53 }
 0x241   : > { %5055 = vmatmul.msk.bf16.vlgmr.msrb.gmra.mxu2 %vm321_vm2, %v5359_v38 }
 0x242   : > { %v2540_v9 = vpop.permute.xlu2 %2539 }
 0x244   : > { %v1701_v48 = vpop.f32.mrf.mxu2 }
 0x245   : > { %v6589_v49 = vadd.f32 %v1701_v48, %v6512_v61  ;;  %v2552_v61 = vsel %vm2549_vm0, %v2544_v51, %v2546_v59 }
 0x246   : > { %v1682_v53 = vpop.f32.mrf.mxu1  ;;  %v1663_v56 = vpop.f32.mrf.mxu0 }
 0x247   : > { %v1574_v47 = vpop.f32.mrf.mxu3  ;;  %v6595_v52 = vadd.f32 %v1682_v53, %v6519_v10  ;;  %v6598_v50 = vadd.f32 %v1663_v56, %v6522_v7  ;;  %v5050_v10 = vor.u32 %v5360_v55, %v5049_v60  ;;  %v5362_v53 = vld [vmem:[%s7684_s1 + $0xe8] sm:$0x30] }
 0x248   : > { %v6592_v46 = vadd.f32 %v1574_v47, %v6516_v62  ;;  %v2567_v62 = vsel %vm328_vm1, %v2552_v61, 0  ;;  %v2542_v17 = vpop.permute.xlu1 %2541 }
 0x249   : > { %5051 = vmatmul.msk.bf16.vlgmr.msrb.gmra.mxu0 %vm321_vm2, %v5359_v38  ;;  %5053 = vmatmul.msk.bf16.vlgmr.msrb.gmra.mxu1 %vm321_vm2, %v5359_v38  ;;  %v2551_v14 = vsel %vm2549_vm0, %v2542_v17, %v2544_v51 }
 0x24a   : > { %2617 = vmatpush.bf16.msrb.mxu2 %v2567_v62  ;;  %v2564_v18 = vsel %vm328_vm1, %v2551_v14, 0 }
 0x24b   : > { %2598 = vmatpush.bf16.msrb.mxu1 %v2564_v18  ;;  %v3294_v18 = vld.sshfl [vmem:[#allocation1 + $0x8] sm:$0xff pattern:$0x73625140] }
 0x24c   : > { %5057 = vmatmul.msk.bf16.vlgmr.msrb.gmra.mxu3 %vm321_vm2, %v5359_v38  ;;  %v1703_v63 = vpop.f32.mrf.mxu2 }
 0x24d   : > { %2636 = vmatpush.bf16.msrb.mxu3 %v2570_v58  ;;  %v6616_v4 = vadd.f32 %v1703_v63, %v6540_v13  ;;  %v2550_v13 = vsel %vm2549_vm0, %v2540_v9, %v2542_v17  ;;  %v3302_v63 = vld.sshfl [vmem:[#allocation1 + $0x28] sm:$0xff pattern:$0x73625140] }
 0x24e   : > { %v1665_v3 = vpop.f32.mrf.mxu0  ;;  %v1684_v11 = vpop.f32.mrf.mxu1  ;;  %v2561_v19 = vsel %vm328_vm1, %v2550_v13, 0  ;;  %3312 = vrot.lane.b32.xlu0 %v3302_v63, %s5618_s10  ;;  %v3296_v63 = vld.sshfl [vmem:[#allocation1 + $0x10] sm:$0xff pattern:$0x73625140] }
 0x24f   : > { %v1720_v8 = vpop.f32.mrf.mxu3  ;;  %v6622_v6 = vadd.f32 %v1665_v3, %v6546_v31  ;;  %v6625_v12 = vadd.f32 %v1684_v11, %v6549_v28  ;;  %2579 = vmatpush.bf16.msrb.mxu0 %v2561_v19 }
 0x250   : > { %v6619_v7 = vadd.f32 %v1720_v8, %v6543_v15  ;;  %v2699_v56 = vpop.permute.xlu0 %2698  ;;  %v3298_v8 = vld.sshfl [vmem:[#allocation1 + $0x18] sm:$0xff pattern:$0x73625140] }
 0x251   : > { %5056 = vmatmul.msk.bf16.gmra.mxu2 %vm321_vm2, %v5050_v10  ;;  %3308 = vrot.lane.b32.xlu1 %v3298_v8, %s5618_s10  ;;  %3444 = vst [vmem:[#allocation1] ss:$4 sm:$0xff] %v5732_v0 }
 0x254   : > { %v1706_v15 = vpop.f32.mrf.mxu2 }
 0x255   : > { %v6638_v21 = vadd.f32 %v1706_v15, %v6556_v23 }
 0x256   : > { %v1668_v25 = vpop.f32.mrf.mxu0  ;;  %v1687_v31 = vpop.f32.mrf.mxu1  ;;  %3304 = vrot.lane.b32.xlu0 %v3294_v18, %s5618_s10 }
 0x257   : > { %v1722_v22 = vpop.f32.mrf.mxu3  ;;  %v6644_v28 = vadd.f32 %v1668_v25, %v6562_v30  ;;  %v6647_v20 = vadd.f32 %v1687_v31, %v6565_v34  ;;  %v5363_v25 = vld [vmem:[%s7684_s1 + $0xf0] sm:$0xff] }
 0x258   : > { %v6641_v24 = vadd.f32 %v1722_v22, %v6559_v32 }
 0x259   : > { %5052 = vmatmul.msk.bf16.gmra.mxu0 %vm321_vm2, %v5050_v10  ;;  %5054 = vmatmul.msk.bf16.gmra.mxu1 %vm321_vm2, %v5050_v10 }
 0x25a   : > { %v2701_v42 = vpop.permute.xlu1 %2700 }
 0x25b   : > { %v2706_v54 = vsel %vm2702_vm3, %v2699_v56, %v2701_v42 }
 0x25c   : > { %5058 = vmatmul.msk.bf16.gmra.mxu3 %vm321_vm2, %v5050_v10  ;;  %v1708_v23 = vpop.f32.mrf.mxu2  ;;  %v2723_v59 = vsel %vm328_vm1, %v2706_v54, 0 }
 0x25d   : > { %v6655_v32 = vadd.f32 %v1708_v23, %v6573_v39 }
 0x25e   : > { %v1689_v30 = vpop.f32.mrf.mxu1  ;;  %v1670_v34 = vpop.f32.mrf.mxu0 }
 0x25f   : > { %v1725_v27 = vpop.f32.mrf.mxu3  ;;  %v6664_v36 = vadd.f32 %v1689_v30, %v6582_v45  ;;  %v6667_v37 = vadd.f32 %v1670_v34, %v6585_v44 }
 0x260   : > { %v6661_v33 = vadd.f32 %v1725_v27, %v6579_v40 }
 0x261   : > { %5075 = vmatmul.msk.bf16.vlgmr.msra.gmra.mxu2 %vm321_vm2, %v5361_v26 }
 0x264   : > { %v1854_v39 = vpop.f32.mrf.mxu2 }
 0x265   : > { %v6671_v41 = vadd.f32 %v1854_v39, %v6589_v49  ;;  %v2697_v49 = vpop.permute.xlu2 %2696 }
 0x266   : > { %v1835_v40 = vpop.f32.mrf.mxu1  ;;  %v1816_v47 = vpop.f32.mrf.mxu0 }
 0x267   : > { %v1727_v38 = vpop.f32.mrf.mxu3  ;;  %v6677_v45 = vadd.f32 %v1835_v40, %v6595_v52  ;;  %v6680_v44 = vadd.f32 %v1816_v47, %v6598_v50  ;;  %v2705_v52 = vsel %vm2702_vm3, %v2697_v49, %v2699_v56  ;;  %v3300_v40 = vld.sshfl [vmem:[#allocation1 + $0x20] sm:$0xff pattern:$0x73625140] }
 0x268   : > { %v6674_v48 = vadd.f32 %v1727_v38, %v6592_v46  ;;  %v5069_v46 = vld [vmem:[%s7684_s1 + $0xe8] sm:$0xf]  ;;  %v2720_v51 = vsel %vm328_vm1, %v2705_v52, 0  ;;  %3310 = vrot.lane.b32.xlu2 %v3300_v40, %s5618_s10  ;;  %3446 = vst [vmem:[#allocation1 + $0x20] ss:$4 sm:$0xff] %v5734_v1 }
 0x269   : > { %5071 = vmatmul.msk.bf16.vlgmr.msra.gmra.mxu0 %vm321_vm2, %v5361_v26  ;;  %5073 = vmatmul.msk.bf16.vlgmr.msra.gmra.mxu1 %vm321_vm2, %v5361_v26  ;;  %v5070_v57 = vor.u32 %v5362_v53, %v5069_v46 }
 0x26a   : > { %2770 = vmatpush.bf16.msra.mxu2 %v2720_v51 }
 0x26c   : > { %5077 = vmatmul.msk.bf16.vlgmr.msra.gmra.mxu3 %vm321_vm2, %v5361_v26  ;;  %v1856_v50 = vpop.f32.mrf.mxu2 }
 0x26d   : > { %v6698_v60 = vadd.f32 %v1856_v50, %v6616_v4  ;;  %2789 = vmatpush.bf16.msra.mxu3 %v2723_v59  ;;  %v2693_v4 = vpop.permute.xlu1 %2692 }
 0x26e   : > { %v1818_v58 = vpop.f32.mrf.mxu0  ;;  %v1837_v62 = vpop.f32.mrf.mxu1 }
 0x26f   : > { %v1873_v55 = vpop.f32.mrf.mxu3  ;;  %v6704_v10 = vadd.f32 %v1818_v58, %v6622_v6  ;;  %v6707_v3 = vadd.f32 %v1837_v62, %v6625_v12  ;;  %v3453_v62 = vld.sshfl [vmem:[#allocation1 + $0x20] sm:$0xff pattern:$0x73625140] }
 0x270   : > { %v6701_v61 = vadd.f32 %v1873_v55, %v6619_v7  ;;  %v2695_v7 = vpop.permute.xlu0 %2694  ;;  %3463 = vrot.lane.b32.xlu1 %v3453_v62, %s5619_s30  ;;  %3306 = vrot.lane.b32.xlu2 %v3296_v63, %s5618_s10  ;;  %s5625_s10 = smov 111  }
 0x271   : > { %5076 = vmatmul.msk.bf16.gmra.mxu2 %vm321_vm2, %v5070_v57  ;;  %v2704_v11 = vsel %vm2702_vm3, %v2695_v7, %v2697_v49  ;;  %v2703_v2 = vsel %vm2702_vm3, %v2693_v4, %v2695_v7 }
 0x272   : > { %v2717_v6 = vsel %vm328_vm1, %v2704_v11, 0  ;;  %v2714_v9 = vsel %vm328_vm1, %v2703_v2, 0  ;;  %v3451_v2 = vld.sshfl [vmem:[#allocation1 + $0x18] sm:$0xff pattern:$0x73625140] }
 0x273   : > { %2732 = vmatpush.bf16.msra.mxu0 %v2714_v9  ;;  %2751 = vmatpush.bf16.msra.mxu1 %v2717_v6 }
 0x274   : > { %v1859_v5 = vpop.f32.mrf.mxu2  ;;  %3461 = vrot.lane.b32.xlu0 %v3451_v2, %s5619_s30  ;;  %v5367_v2 = vld [vmem:[%s7684_s1 + $0x110] sm:$0xff] }
 0x275   : > { %v6717_v12 = vadd.f32 %v1859_v5, %v6638_v21  ;;  %v3449_v5 = vld.sshfl [vmem:[#allocation1 + $0x10] sm:$0xff pattern:$0x73625140] }
 0x276   : > { %v1821_v14 = vpop.f32.mrf.mxu0  ;;  %v1840_v13 = vpop.f32.mrf.mxu1 }
 0x277   : > { %v1875_v16 = vpop.f32.mrf.mxu3  ;;  %v6723_v19 = vadd.f32 %v1821_v14, %v6644_v28  ;;  %v6726_v15 = vadd.f32 %v1840_v13, %v6647_v20  ;;  %v5365_v14 = vld [vmem:[%s7684_s1 + $0x100] sm:$0xff] }
 0x278   : > { %v6720_v17 = vadd.f32 %v1875_v16, %v6641_v24  ;;  %v2854_v23 = vpop.permute.xlu0 %2853  ;;  %3459 = vrot.lane.b32.xlu1 %v3449_v5, %s5619_s30 }
 0x279   : > { %5072 = vmatmul.msk.bf16.gmra.mxu0 %vm321_vm2, %v5070_v57  ;;  %5074 = vmatmul.msk.bf16.gmra.mxu1 %vm321_vm2, %v5070_v57 }
 0x27a   : > { %v2850_v27 = vpop.permute.xlu1 %2849 }
 0x27c   : > { %5078 = vmatmul.msk.bf16.gmra.mxu3 %vm321_vm2, %v5070_v57  ;;  %v1861_v21 = vpop.f32.mrf.mxu2 }
 0x27d   : > { %v6733_v22 = vadd.f32 %v1861_v21, %v6655_v32  ;;  %v2852_v32 = vpop.permute.xlu2 %2851 }
 0x27e   : > { %v1842_v28 = vpop.f32.mrf.mxu1  ;;  %v1823_v20 = vpop.f32.mrf.mxu0  ;;  %v2858_v26 = vsel %vm2855_vm4, %v2850_v27, %v2852_v32 }
 0x27f   : > { %v1878_v24 = vpop.f32.mrf.mxu3  ;;  %v6742_v29 = vadd.f32 %v1842_v28, %v6664_v36  ;;  %v6745_v35 = vadd.f32 %v1823_v20, %v6667_v37  ;;  %v2859_v36 = vsel %vm2855_vm4, %v2852_v32, %v2854_v23 }
 0x280   : > { %v6739_v31 = vadd.f32 %v1878_v24, %v6661_v33  ;;  %v2873_v33 = vsel %vm328_vm1, %v2858_v26, 0  ;;  %v2846_v49 = vpop.permute.xlu0 %2845 }
 0x281   : > { %5095 = vmatmul.msk.bf16.vlgmr.msrb.gmra.mxu2 %vm321_vm2, %v5363_v25 }
 0x282   : > { %2923 = vmatpush.bf16.msrb.mxu2 %v2873_v33 }
 0x284   : > { %v2007_v30 = vpop.f32.mrf.mxu2 }
 0x285   : > { %v6751_v39 = vadd.f32 %v2007_v30, %v6671_v41  ;;  %v2876_v41 = vsel %vm328_vm1, %v2859_v36, 0  ;;  %v5366_v36 = vld [vmem:[%s7684_s1 + $0x108] sm:$0x30] }
 0x286   : > { %v1988_v38 = vpop.f32.mrf.mxu1  ;;  %v1969_v42 = vpop.f32.mrf.mxu0 }
 0x287   : > { %v1880_v34 = vpop.f32.mrf.mxu3  ;;  %v6758_v47 = vadd.f32 %v1988_v38, %v6677_v45  ;;  %v6761_v43 = vadd.f32 %v1969_v42, %v6680_v44  ;;  %v5089_v45 = vld [vmem:[%s7684_s1 + $0xf8] sm:$0xf]  ;;  %v5364_v44 = vld [vmem:[%s7684_s1 + $0xf8] sm:$0x30] }
 0x288   : > { %v6755_v37 = vadd.f32 %v1880_v34, %v6674_v48  ;;  %v2848_v48 = vpop.permute.xlu2 %2847  ;;  %v5090_v51 = vor.u32 %v5364_v44, %v5089_v45  ;;  %v3003_v33 = vpop.permute.xlu0 %3002 }
 0x289   : > { %5091 = vmatmul.msk.bf16.vlgmr.msrb.gmra.mxu0 %vm321_vm2, %v5363_v25  ;;  %5093 = vmatmul.msk.bf16.vlgmr.msrb.gmra.mxu1 %vm321_vm2, %v5363_v25  ;;  %v2857_v46 = vsel %vm2855_vm4, %v2848_v48, %v2850_v27  ;;  %v2856_v53 = vsel %vm2855_vm4, %v2846_v49, %v2848_v48  ;;  %v3455_v27 = vld.sshfl [vmem:[#allocation1 + $0x28] sm:$0xff pattern:$0x73625140] }
 0x28a   : > { %v2870_v56 = vsel %vm328_vm1, %v2857_v46, 0  ;;  %v2867_v54 = vsel %vm328_vm1, %v2856_v53, 0  ;;  %3465 = vrot.lane.b32.xlu2 %v3455_v27, %s5619_s30  ;;  %3599 = vst [vmem:[#allocation1 + $0x20] ss:$4 sm:$0xff] %v5734_v1 }
 0x28b   : > { %2885 = vmatpush.bf16.msrb.mxu0 %v2867_v54  ;;  %2904 = vmatpush.bf16.msrb.mxu1 %v2870_v56 }
 0x28c   : > { %5097 = vmatmul.msk.bf16.vlgmr.msrb.gmra.mxu3 %vm321_vm2, %v5363_v25  ;;  %v2009_v52 = vpop.f32.mrf.mxu2 }
 0x28d   : > { %2942 = vmatpush.bf16.msrb.mxu3 %v2876_v41  ;;  %v6780_v50 = vadd.f32 %v2009_v52, %v6698_v60 }
 0x28e   : > { %v1971_v57 = vpop.f32.mrf.mxu0  ;;  %v1990_v58 = vpop.f32.mrf.mxu1 }
 0x28f   : > { %v2026_v59 = vpop.f32.mrf.mxu3  ;;  %v6786_v8 = vadd.f32 %v1971_v57, %v6704_v10  ;;  %v6789_v4 = vadd.f32 %v1990_v58, %v6707_v3 }
 0x290   : > { %v6783_v55 = vadd.f32 %v2026_v59, %v6701_v61  ;;  %v3007_v24 = vpop.permute.xlu2 %3006 }
 0x291   : > { %5096 = vmatmul.msk.bf16.gmra.mxu2 %vm321_vm2, %v5090_v51  ;;  %v3606_v54 = vld.sshfl [vmem:[#allocation1 + $0x20] sm:$0xff pattern:$0x73625140]  ;;  %v3608_v52 = vld.sshfl [vmem:[#allocation1 + $0x28] sm:$0xff pattern:$0x73625140] }
 0x292   : > { %3616 = vrot.lane.b32.xlu0 %v3606_v54, %s5620_s13  ;;  %3618 = vrot.lane.b32.xlu1 %v3608_v52, %s5620_s13  ;;  %3752 = vst [vmem:[#allocation1 + $0x20] ss:$4 sm:$0xff] %v5734_v1 }
 0x294   : > { %v2012_v60 = vpop.f32.mrf.mxu2 }
 0x295   : > { %v6796_v61 = vadd.f32 %v2012_v60, %v6717_v12 }
 0x296   : > { %v1974_v11 = vpop.f32.mrf.mxu0  ;;  %v1993_v3 = vpop.f32.mrf.mxu1 }
 0x297   : > { %v2028_v7 = vpop.f32.mrf.mxu3  ;;  %v6802_v6 = vadd.f32 %v1974_v11, %v6723_v19  ;;  %v6805_v9 = vadd.f32 %v1993_v3, %v6726_v15 }
 0x298   : > { %v6799_v10 = vadd.f32 %v2028_v7, %v6720_v17  ;;  %v2999_v42 = vpop.permute.xlu2 %2998 }
 0x299   : > { %5092 = vmatmul.msk.bf16.gmra.mxu0 %vm321_vm2, %v5090_v51  ;;  %5094 = vmatmul.msk.bf16.gmra.mxu1 %vm321_vm2, %v5090_v51 }
 0x29c   : > { %5098 = vmatmul.msk.bf16.gmra.mxu3 %vm321_vm2, %v5090_v51  ;;  %v2014_v12 = vpop.f32.mrf.mxu2 }
 0x29d   : > { %v6813_v16 = vadd.f32 %v2014_v12, %v6733_v22  ;;  %v3005_v22 = vpop.permute.xlu1 %3004 }
 0x29e   : > { %v1995_v18 = vpop.f32.mrf.mxu1  ;;  %v1976_v19 = vpop.f32.mrf.mxu0 }
 0x29f   : > { %v2031_v17 = vpop.f32.mrf.mxu3  ;;  %v6822_v15 = vadd.f32 %v1995_v18, %v6742_v29  ;;  %v6825_v21 = vadd.f32 %v1976_v19, %v6745_v35 }
 0x2a0   : > { %v6819_v13 = vadd.f32 %v2031_v17, %v6739_v31  ;;  %v3012_v31 = vsel %vm3008_vm5, %v3005_v22, %v3007_v24  ;;  %v3156_v18 = vpop.permute.xlu2 %3155 }
 0x2a1   : > { %5115 = vmatmul.msk.bf16.vlgmr.msra.gmra.mxu2 %vm321_vm2, %v5365_v14  ;;  %v3029_v30 = vsel %vm328_vm1, %v3012_v31, 0 }
 0x2a4   : > { %v2160_v25 = vpop.f32.mrf.mxu2 }
 0x2a5   : > { %v6829_v20 = vadd.f32 %v2160_v25, %v6751_v39  ;;  %v3001_v34 = vpop.permute.xlu1 %3000  ;;  %v5109_v39 = vld [vmem:[%s7684_s1 + $0x108] sm:$0xf] }
 0x2a6   : > { %v2141_v29 = vpop.f32.mrf.mxu1  ;;  %v2122_v32 = vpop.f32.mrf.mxu0  ;;  %v3010_v38 = vsel %vm3008_vm5, %v3001_v34, %v3003_v33  ;;  %v5110_v44 = vor.u32 %v5366_v36, %v5109_v39 }
 0x2a7   : > { %v2033_v28 = vpop.f32.mrf.mxu3  ;;  %v6836_v35 = vadd.f32 %v2141_v29, %v6758_v47  ;;  %v6839_v26 = vadd.f32 %v2122_v32, %v6761_v43  ;;  %v3023_v47 = vsel %vm328_vm1, %v3010_v38, 0  ;;  %v3009_v43 = vsel %vm3008_vm5, %v2999_v42, %v3001_v34 }
 0x2a8   : > { %v6833_v23 = vadd.f32 %v2033_v28, %v6755_v37  ;;  %v3011_v37 = vsel %vm3008_vm5, %v3003_v33, %v3005_v22  ;;  %v3020_v48 = vsel %vm328_vm1, %v3009_v43, 0 }
 0x2a9   : > { %5111 = vmatmul.msk.bf16.vlgmr.msra.gmra.mxu0 %vm321_vm2, %v5365_v14  ;;  %5113 = vmatmul.msk.bf16.vlgmr.msra.gmra.mxu1 %vm321_vm2, %v5365_v14  ;;  %v3026_v40 = vsel %vm328_vm1, %v3011_v37, 0 }
 0x2aa   : > { %3076 = vmatpush.bf16.msra.mxu2 %v3026_v40  ;;  %3057 = vmatpush.bf16.msra.mxu1 %v3023_v47 }
 0x2ab   : > { %3038 = vmatpush.bf16.msra.mxu0 %v3020_v48  ;;  %v3761_v48 = vld.sshfl [vmem:[#allocation1 + $0x28] sm:$0xff pattern:$0x73625140] }
 0x2ac   : > { %5117 = vmatmul.msk.bf16.vlgmr.msra.gmra.mxu3 %vm321_vm2, %v5365_v14  ;;  %v2162_v41 = vpop.f32.mrf.mxu2 }
 0x2ad   : > { %3095 = vmatpush.bf16.msra.mxu3 %v3029_v30  ;;  %v6860_v49 = vadd.f32 %v2162_v41, %v6780_v50  ;;  %v3447_v50 = vld.sshfl [vmem:[#allocation1 + $0x8] sm:$0xff pattern:$0x73625140]  ;;  %v3160_v14 = vpop.permute.xlu1 %3159 }
 0x2ae   : > { %v2124_v53 = vpop.f32.mrf.mxu0  ;;  %v2143_v56 = vpop.f32.mrf.mxu1  ;;  %3457 = vrot.lane.b32.xlu2 %v3447_v50, %s5619_s30  ;;  %3597 = vst [vmem:[#allocation1] ss:$4 sm:$0xff] %v5732_v0 }
 0x2af   : > { %v2179_v45 = vpop.f32.mrf.mxu3  ;;  %v6866_v59 = vadd.f32 %v2124_v53, %v6786_v8  ;;  %v6869_v51 = vadd.f32 %v2143_v56, %v6789_v4 }
 0x2b0   : > { %v6863_v46 = vadd.f32 %v2179_v45, %v6783_v55 }
 0x2b1   : > { %5116 = vmatmul.msk.bf16.gmra.mxu2 %vm321_vm2, %v5110_v44 }
 0x2b4   : > { %v2165_v55 = vpop.f32.mrf.mxu2 }
 0x2b5   : > { %v6878_v57 = vadd.f32 %v2165_v55, %v6796_v61  ;;  %v3602_v7 = vld.sshfl [vmem:[#allocation1 + $0x10] sm:$0xff pattern:$0x73625140]  ;;  %v3600_v11 = vld.sshfl [vmem:[#allocation1 + $0x8] sm:$0xff pattern:$0x73625140]  ;;  %v3152_v30 = vpop.permute.xlu1 %3151 }
 0x2b6   : > { %v2127_v63 = vpop.f32.mrf.mxu0  ;;  %v2146_v8 = vpop.f32.mrf.mxu1  ;;  %3612 = vrot.lane.b32.xlu0 %v3602_v7, %s5620_s13  ;;  %3610 = vrot.lane.b32.xlu1 %v3600_v11, %s5620_s13  ;;  %v3604_v29 = vld.sshfl [vmem:[#allocation1 + $0x18] sm:$0xff pattern:$0x73625140] }
 0x2b7   : > { %v2181_v58 = vpop.f32.mrf.mxu3  ;;  %v6884_v4 = vadd.f32 %v2127_v63, %v6802_v6  ;;  %v6887_v60 = vadd.f32 %v2146_v8, %v6805_v9  ;;  %3614 = vrot.lane.b32.xlu2 %v3604_v29, %s5620_s13  ;;  %3750 = vst [vmem:[#allocation1] ss:$4 sm:$0xff] %v5732_v0  ;;  %v5369_v63 = vld [vmem:[%s7684_s1 + $0x120] sm:$0xff]  ;;  %s7463_s13 = sshll.u32 %s5581_s18, 2 }
 0x2b8   : > { %v6881_v62 = vadd.f32 %v2181_v58, %v6799_v10  ;;  %p260_p0 = scmp.lt.s32.totalorder %s7463_s13, 7 }
 0x2b9   : > { %5112 = vmatmul.msk.bf16.gmra.mxu0 %vm321_vm2, %v5110_v44  ;;  %5114 = vmatmul.msk.bf16.gmra.mxu1 %vm321_vm2, %v5110_v44 }
 0x2ba   : > { %s261_s14 = scalar_select %p260_p0, %s7463_s13, 7 }
 0x2bc   : > { %5118 = vmatmul.msk.bf16.gmra.mxu3 %vm321_vm2, %v5110_v44  ;;  %v2167_v61 = vpop.f32.mrf.mxu2 }
 0x2bd   : > { %v6895_v10 = vadd.f32 %v2167_v61, %v6813_v16  ;;  %v3158_v16 = vpop.permute.xlu0 %3157 }
 0x2be   : > { %v2148_v6 = vpop.f32.mrf.mxu1  ;;  %v2129_v9 = vpop.f32.mrf.mxu0  ;;  %v3164_v19 = vsel %vm3161_vm6, %v3156_v18, %v3158_v16  ;;  %v3757_v45 = vld.sshfl [vmem:[#allocation1 + $0x18] sm:$0xff pattern:$0x73625140]  ;;  %3771 = vrot.lane.b32.xlu0 %v3761_v48, %s5621_s9  ;;  %v3753_v50 = vld.sshfl [vmem:[#allocation1 + $0x8] sm:$0xff pattern:$0x73625140] }
 0x2bf   : > { %v2184_v3 = vpop.f32.mrf.mxu3  ;;  %v6904_v12 = vadd.f32 %v2148_v6, %v6822_v15  ;;  %v6907_v17 = vadd.f32 %v2129_v9, %v6825_v21  ;;  %v3165_v15 = vsel %vm3161_vm6, %v3158_v16, %v3160_v14  ;;  %3767 = vrot.lane.b32.xlu1 %v3757_v45, %s5621_s9 }
 0x2c0   : > { %v6901_v5 = vadd.f32 %v2184_v3, %v6819_v13  ;;  %v3179_v13 = vsel %vm328_vm1, %v3164_v19, 0  ;;  %v3759_v19 = vld.sshfl [vmem:[#allocation1 + $0x20] sm:$0xff pattern:$0x73625140] }
 0x2c1   : > { %5135 = vmatmul.msk.bf16.vlgmr.msrb.gmra.mxu2 %vm321_vm2, %v5367_v2  ;;  %3769 = vrot.lane.b32.xlu2 %v3759_v19, %s5621_s9  ;;  %3905 = vst [vmem:[#allocation1 + $0x20] ss:$4 sm:$0xff] %v5734_v1 }
 0x2c2   : > { %3229 = vmatpush.bf16.msrb.mxu2 %v3179_v13  ;;  %v3311_v61 = vpop.permute.xlu2 %3310 }
 0x2c3   : > { %v3309_v3 = vpop.permute.xlu1 %3308 }
 0x2c4   : > { %v2313_v22 = vpop.f32.mrf.mxu2 }
 0x2c5   : > { %v6913_v25 = vadd.f32 %v2313_v22, %v6829_v20  ;;  %v3182_v20 = vsel %vm328_vm1, %v3165_v15, 0 }
 0x2c6   : > { %v2294_v28 = vpop.f32.mrf.mxu1  ;;  %v2275_v31 = vpop.f32.mrf.mxu0  ;;  %3763 = vrot.lane.b32.xlu0 %v3753_v50, %s5621_s9 }
 0x2c7   : > { %v2186_v24 = vpop.f32.mrf.mxu3  ;;  %v6920_v32 = vadd.f32 %v2294_v28, %v6836_v35  ;;  %v6923_v27 = vadd.f32 %v2275_v31, %v6839_v26  ;;  %v5368_v35 = vld [vmem:[%s7684_s1 + $0x118] sm:$0x30]  ;;  %v3154_v26 = vpop.permute.xlu0 %3153  ;;  %v5370_v28 = vld [vmem:[%s7684_s1 + $0x128] sm:$0x30] }
 0x2c8   : > { %v6917_v21 = vadd.f32 %v2186_v24, %v6833_v23  ;;  %v5129_v23 = vld [vmem:[%s7684_s1 + $0x118] sm:$0xf]  ;;  %v3163_v33 = vsel %vm3161_vm6, %v3154_v26, %v3156_v18  ;;  %v3162_v34 = vsel %vm3161_vm6, %v3152_v30, %v3154_v26 }
 0x2c9   : > { %5131 = vmatmul.msk.bf16.vlgmr.msrb.gmra.mxu0 %vm321_vm2, %v5367_v2  ;;  %5133 = vmatmul.msk.bf16.vlgmr.msrb.gmra.mxu1 %vm321_vm2, %v5367_v2  ;;  %v3176_v36 = vsel %vm328_vm1, %v3163_v33, 0  ;;  %v3173_v37 = vsel %vm328_vm1, %v3162_v34, 0  ;;  %v5130_v40 = vor.u32 %v5368_v35, %v5129_v23 }
 0x2ca   : > { %3191 = vmatpush.bf16.msrb.mxu0 %v3173_v37  ;;  %3210 = vmatpush.bf16.msrb.mxu1 %v3176_v36  ;;  %v3755_v36 = vld.sshfl [vmem:[#allocation1 + $0x10] sm:$0xff pattern:$0x73625140] }
 0x2cb   : > { %3765 = vrot.lane.b32.xlu2 %v3755_v36, %s5621_s9  ;;  %3903 = vst [vmem:[#allocation1] ss:$4 sm:$0xff] %v5732_v0 }
 0x2cc   : > { %5137 = vmatmul.msk.bf16.vlgmr.msrb.gmra.mxu3 %vm321_vm2, %v5367_v2  ;;  %v2315_v39 = vpop.f32.mrf.mxu2  ;;  %v3317_v2 = vsel %vm3314_vm7, %v3309_v3, %v3311_v61 }
 0x2cd   : > { %3248 = vmatpush.bf16.msrb.mxu3 %v3182_v20  ;;  %v6942_v38 = vadd.f32 %v2315_v39, %v6860_v49  ;;  %v3912_v39 = vld.sshfl [vmem:[#allocation1 + $0x20] sm:$0xff pattern:$0x73625140] }
 0x2ce   : > { %v2277_v43 = vpop.f32.mrf.mxu0  ;;  %v2296_v41 = vpop.f32.mrf.mxu1  ;;  %3922 = vrot.lane.b32.xlu1 %v3912_v39, %s5622_s24 }
 0x2cf   : > { %v2332_v42 = vpop.f32.mrf.mxu3  ;;  %v6948_v44 = vadd.f32 %v2277_v43, %v6866_v59  ;;  %v6951_v53 = vadd.f32 %v2296_v41, %v6869_v51 }
 0x2d0   : > { %v6945_v47 = vadd.f32 %v2332_v42, %v6863_v46 }
 0x2d1   : > { %5136 = vmatmul.msk.bf16.gmra.mxu2 %vm321_vm2, %v5130_v40 }
 0x2d2   : > { %v3910_v45 = vld.sshfl [vmem:[#allocation1 + $0x18] sm:$0xff pattern:$0x73625140] }
 0x2d3   : > { %3920 = vrot.lane.b32.xlu0 %v3910_v45, %s5622_s24  ;;  %v5373_v45 = vld [vmem:[%s7684_s1 + $0x140] sm:$0xff] }
 0x2d4   : > { %v2318_v49 = vpop.f32.mrf.mxu2 }
 0x2d5   : > { %v6957_v46 = vadd.f32 %v2318_v49, %v6878_v57 }
 0x2d6   : > { %v2280_v52 = vpop.f32.mrf.mxu0  ;;  %v2299_v59 = vpop.f32.mrf.mxu1 }
 0x2d7   : > { %v2334_v56 = vpop.f32.mrf.mxu3  ;;  %v6963_v51 = vadd.f32 %v2280_v52, %v6884_v4  ;;  %v6966_v55 = vadd.f32 %v2299_v59, %v6887_v60  ;;  %v5371_v52 = vld [vmem:[%s7684_s1 + $0x130] sm:$0xff] }
 0x2d8   : > { %v6960_v54 = vadd.f32 %v2334_v56, %v6881_v62 }
 0x2d9   : > { %5132 = vmatmul.msk.bf16.gmra.mxu0 %vm321_vm2, %v5130_v40  ;;  %5134 = vmatmul.msk.bf16.gmra.mxu1 %vm321_vm2, %v5130_v40 }
 0x2dc   : > { %5138 = vmatmul.msk.bf16.gmra.mxu3 %vm321_vm2, %v5130_v40  ;;  %v2320_v57 = vpop.f32.mrf.mxu2 }
 0x2dd   : > { %v6973_v58 = vadd.f32 %v2320_v57, %v6895_v10  ;;  %v3313_v10 = vpop.permute.xlu0 %3312 }
 0x2de   : > { %v2301_v4 = vpop.f32.mrf.mxu1  ;;  %v2282_v60 = vpop.f32.mrf.mxu0 }
 0x2df   : > { %v2337_v62 = vpop.f32.mrf.mxu3  ;;  %v6982_v7 = vadd.f32 %v2301_v4, %v6904_v12  ;;  %v6985_v11 = vadd.f32 %v2282_v60, %v6907_v17  ;;  %v3318_v12 = vsel %vm3314_vm7, %v3311_v61, %v3313_v10 }
 0x2e0   : > { %v6979_v8 = vadd.f32 %v2337_v62, %v6901_v5  ;;  %v3332_v5 = vsel %vm328_vm1, %v3317_v2, 0  ;;  %v3335_v24 = vsel %vm328_vm1, %v3318_v12, 0  ;;  %v5372_v12 = vld [vmem:[%s7684_s1 + $0x138] sm:$0x30] }
 0x2e1   : > { %5155 = vmatmul.msk.bf16.vlgmr.msra.gmra.mxu2 %vm321_vm2, %v5369_v63 }
 0x2e2   : > { %3382 = vmatpush.bf16.msra.mxu2 %v3332_v5 }
 0x2e4   : > { %v2466_v6 = vpop.f32.mrf.mxu2 }
 0x2e5   : > { %v6991_v16 = vadd.f32 %v2466_v6, %v6913_v25  ;;  %v3307_v25 = vpop.permute.xlu2 %3306  ;;  %v3305_v15 = vpop.permute.xlu0 %3304 }
 0x2e6   : > { %v2447_v14 = vpop.f32.mrf.mxu1  ;;  %v2428_v18 = vpop.f32.mrf.mxu0  ;;  %v3316_v31 = vsel %vm3314_vm7, %v3307_v25, %v3309_v3  ;;  %v3315_v29 = vsel %vm3314_vm7, %v3305_v15, %v3307_v25  ;;  %v3914_v3 = vld.sshfl [vmem:[#allocation1 + $0x28] sm:$0xff pattern:$0x73625140] }
 0x2e7   : > { %v2339_v9 = vpop.f32.mrf.mxu3  ;;  %v6998_v22 = vadd.f32 %v2447_v14, %v6920_v32  ;;  %v7001_v13 = vadd.f32 %v2428_v18, %v6923_v27  ;;  %v3329_v32 = vsel %vm328_vm1, %v3316_v31, 0  ;;  %v3326_v27 = vsel %vm328_vm1, %v3315_v29, 0  ;;  %3924 = vrot.lane.b32.xlu2 %v3914_v3, %s5622_s24  ;;  %4058 = vst [vmem:[#allocation1 + $0x20] ss:$4 sm:$0xff] %v5734_v1 }
 0x2e8   : > { %v6995_v17 = vadd.f32 %v2339_v9, %v6917_v21  ;;  %v5149_v21 = vld [vmem:[%s7684_s1 + $0x128] sm:$0xf] }
 0x2e9   : > { %5151 = vmatmul.msk.bf16.vlgmr.msra.gmra.mxu0 %vm321_vm2, %v5369_v63  ;;  %5153 = vmatmul.msk.bf16.vlgmr.msra.gmra.mxu1 %vm321_vm2, %v5369_v63  ;;  %v5150_v26 = vor.u32 %v5370_v28, %v5149_v21 }
 0x2ea   : > { %3344 = vmatpush.bf16.msra.mxu0 %v3326_v27  ;;  %3363 = vmatpush.bf16.msra.mxu1 %v3329_v32 }
 0x2ec   : > { %5157 = vmatmul.msk.bf16.vlgmr.msra.gmra.mxu3 %vm321_vm2, %v5369_v63  ;;  %v2468_v20 = vpop.f32.mrf.mxu2 }
 0x2ed   : > { %3401 = vmatpush.bf16.msra.mxu3 %v3335_v24  ;;  %v7020_v23 = vadd.f32 %v2468_v20, %v6942_v38  ;;  %v3466_v62 = vpop.permute.xlu2 %3465  ;;  %v3462_v5 = vpop.permute.xlu0 %3461 }
 0x2ee   : > { %v2430_v33 = vpop.f32.mrf.mxu0  ;;  %v2449_v34 = vpop.f32.mrf.mxu1  ;;  %v4065_v27 = vld.sshfl [vmem:[#allocation1 + $0x20] sm:$0xff pattern:$0x73625140]  ;;  %v4067_v20 = vld.sshfl [vmem:[#allocation1 + $0x28] sm:$0xff pattern:$0x73625140] }
 0x2ef   : > { %v2485_v35 = vpop.f32.mrf.mxu3  ;;  %v7026_v37 = vadd.f32 %v2430_v33, %v6948_v44  ;;  %v7029_v42 = vadd.f32 %v2449_v34, %v6951_v53  ;;  %v3908_v44 = vld.sshfl [vmem:[#allocation1 + $0x10] sm:$0xff pattern:$0x73625140]  ;;  %4075 = vrot.lane.b32.xlu0 %v4065_v27, %s5623_s12  ;;  %4211 = vst [vmem:[#allocation1 + $0x20] ss:$4 sm:$0xff] %v5734_v1 }
 0x2f0   : > { %v7023_v30 = vadd.f32 %v2485_v35, %v6945_v47  ;;  %3918 = vrot.lane.b32.xlu1 %v3908_v44, %s5622_s24 }
 0x2f1   : > { %5156 = vmatmul.msk.bf16.gmra.mxu2 %vm321_vm2, %v5150_v26 }
 0x2f4   : > { %v2471_v38 = vpop.f32.mrf.mxu2 }
 0x2f5   : > { %v7036_v40 = vadd.f32 %v2471_v38, %v6957_v46 }
 0x2f6   : > { %v2433_v41 = vpop.f32.mrf.mxu0  ;;  %v2452_v48 = vpop.f32.mrf.mxu1 }
 0x2f7   : > { %v2487_v47 = vpop.f32.mrf.mxu3  ;;  %v7042_v53 = vadd.f32 %v2433_v41, %v6963_v51  ;;  %v7045_v49 = vadd.f32 %v2452_v48, %v6966_v55 }
 0x2f8   : > { %v7039_v43 = vadd.f32 %v2487_v47, %v6960_v54  ;;  %4077 = vrot.lane.b32.xlu1 %v4067_v20, %s5623_s12 }
 0x2f9   : > { %5152 = vmatmul.msk.bf16.gmra.mxu0 %vm321_vm2, %v5150_v26  ;;  %5154 = vmatmul.msk.bf16.gmra.mxu1 %vm321_vm2, %v5150_v26 }
 0x2fc   : > { %5158 = vmatmul.msk.bf16.gmra.mxu3 %vm321_vm2, %v5150_v26  ;;  %v2473_v46 = vpop.f32.mrf.mxu2 }
 0x2fd   : > { %v7053_v56 = vadd.f32 %v2473_v46, %v6973_v58  ;;  %v3464_v58 = vpop.permute.xlu1 %3463 }
 0x2fe   : > { %v2454_v50 = vpop.f32.mrf.mxu1  ;;  %v2435_v51 = vpop.f32.mrf.mxu0 }
 0x2ff   : > { %v2490_v54 = vpop.f32.mrf.mxu3  ;;  %v7062_v55 = vadd.f32 %v2454_v50, %v6982_v7  ;;  %v7065_v57 = vadd.f32 %v2435_v51, %v6985_v11 }
 0x300   : > { %v7059_v59 = vadd.f32 %v2490_v54, %v6979_v8  ;;  %v3471_v8 = vsel %vm3467_vm8, %v3464_v58, %v3466_v62 }
 0x301   : > { %5175 = vmatmul.msk.bf16.vlgmr.msrb.gmra.mxu2 %vm321_vm2, %v5371_v52  ;;  %v3488_v6 = vsel %vm328_vm1, %v3471_v8, 0 }
 0x304   : > { %v2619_v63 = vpop.f32.mrf.mxu2 }
 0x305   : > { %v7069_v60 = vadd.f32 %v2619_v63, %v6991_v16  ;;  %v3460_v9 = vpop.permute.xlu1 %3459  ;;  %v5169_v16 = vld [vmem:[%s7684_s1 + $0x138] sm:$0xf] }
 0x306   : > { %v2600_v7 = vpop.f32.mrf.mxu1  ;;  %v2581_v10 = vpop.f32.mrf.mxu0  ;;  %v3469_v14 = vsel %vm3467_vm8, %v3460_v9, %v3462_v5  ;;  %v5170_v28 = vor.u32 %v5372_v12, %v5169_v16 }
 0x307   : > { %v2492_v4 = vpop.f32.mrf.mxu3  ;;  %v7076_v11 = vadd.f32 %v2600_v7, %v6998_v22  ;;  %v7079_v2 = vadd.f32 %v2581_v10, %v7001_v13  ;;  %v3482_v22 = vsel %vm328_vm1, %v3469_v14, 0 }
 0x308   : > { %v7073_v61 = vadd.f32 %v2492_v4, %v6995_v17  ;;  %v3470_v17 = vsel %vm3467_vm8, %v3462_v5, %v3464_v58  ;;  %v3458_v18 = vpop.permute.xlu2 %3457 }
 0x309   : > { %5171 = vmatmul.msk.bf16.vlgmr.msrb.gmra.mxu0 %vm321_vm2, %v5371_v52  ;;  %5173 = vmatmul.msk.bf16.vlgmr.msrb.gmra.mxu1 %vm321_vm2, %v5371_v52  ;;  %v3485_v19 = vsel %vm328_vm1, %v3470_v17, 0  ;;  %v3468_v13 = vsel %vm3467_vm8, %v3458_v18, %v3460_v9 }
 0x30a   : > { %3535 = vmatpush.bf16.msrb.mxu2 %v3485_v19  ;;  %v3479_v25 = vsel %vm328_vm1, %v3468_v13, 0  ;;  %3516 = vmatpush.bf16.msrb.mxu1 %v3482_v22 }
 0x30b   : > { %3497 = vmatpush.bf16.msrb.mxu0 %v3479_v25  ;;  %v4220_v25 = vld.sshfl [vmem:[#allocation1 + $0x28] sm:$0xff pattern:$0x73625140] }
 0x30c   : > { %5177 = vmatmul.msk.bf16.vlgmr.msrb.gmra.mxu3 %vm321_vm2, %v5371_v52  ;;  %v2621_v24 = vpop.f32.mrf.mxu2 }
 0x30d   : > { %3554 = vmatpush.bf16.msrb.mxu3 %v3488_v6  ;;  %v7100_v15 = vadd.f32 %v2621_v24, %v7020_v23  ;;  %v3906_v23 = vld.sshfl [vmem:[#allocation1 + $0x8] sm:$0xff pattern:$0x73625140]  ;;  %v3619_v52 = vpop.permute.xlu1 %3618 }
 0x30e   : > { %v2583_v29 = vpop.f32.mrf.mxu0  ;;  %v2602_v32 = vpop.f32.mrf.mxu1  ;;  %3916 = vrot.lane.b32.xlu2 %v3906_v23, %s5622_s24  ;;  %4056 = vst [vmem:[#allocation1] ss:$4 sm:$0xff] %v5732_v0  ;;  %s263_s24 = sadd.s32 %s4782_s23, %s261_s14 }
 0x30f   : > { %v2638_v21 = vpop.f32.mrf.mxu3  ;;  %v7106_v35 = vadd.f32 %v2583_v29, %v7026_v37  ;;  %v7109_v26 = vadd.f32 %v2602_v32, %v7029_v42  ;;  %s264_s5 = scalar_lea.vmem %s7685_s2, %s263_s24 }
 0x310   : > { %v7103_v31 = vadd.f32 %v2638_v21, %v7023_v30 }
 0x311   : > { %5176 = vmatmul.msk.bf16.gmra.mxu2 %vm321_vm2, %v5170_v28  ;;  %v3615_v50 = vpop.permute.xlu2 %3614 }
 0x314   : > { %v2624_v30 = vpop.f32.mrf.mxu2 }
 0x315   : > { %v7118_v33 = vadd.f32 %v2624_v30, %v7036_v40  ;;  %v4061_v47 = vld.sshfl [vmem:[#allocation1 + $0x10] sm:$0xff pattern:$0x73625140]  ;;  %v4059_v41 = vld.sshfl [vmem:[#allocation1 + $0x8] sm:$0xff pattern:$0x73625140] }
 0x316   : > { %v2586_v36 = vpop.f32.mrf.mxu0  ;;  %v2605_v37 = vpop.f32.mrf.mxu1  ;;  %4071 = vrot.lane.b32.xlu0 %v4061_v47, %s5623_s12  ;;  %4069 = vrot.lane.b32.xlu1 %v4059_v41, %s5623_s12  ;;  %v4063_v7 = vld.sshfl [vmem:[#allocation1 + $0x18] sm:$0xff pattern:$0x73625140] }
 0x317   : > { %v2640_v34 = vpop.f32.mrf.mxu3  ;;  %v7124_v42 = vadd.f32 %v2586_v36, %v7042_v53  ;;  %v7127_v38 = vadd.f32 %v2605_v37, %v7045_v49  ;;  %4073 = vrot.lane.b32.xlu2 %v4063_v7, %s5623_s12  ;;  %4209 = vst [vmem:[#allocation1] ss:$4 sm:$0xff] %v5732_v0  ;;  %v5375_v36 = vld [vmem:[%s7684_s1 + $0x150] sm:$0xff] }
 0x318   : > { %v7121_v39 = vadd.f32 %v2640_v34, %v7039_v43 }
 0x319   : > { %5172 = vmatmul.msk.bf16.gmra.mxu0 %vm321_vm2, %v5170_v28  ;;  %5174 = vmatmul.msk.bf16.gmra.mxu1 %vm321_vm2, %v5170_v28 }
 0x31c   : > { %5178 = vmatmul.msk.bf16.gmra.mxu3 %vm321_vm2, %v5170_v28  ;;  %v2626_v40 = vpop.f32.mrf.mxu2 }
 0x31d   : > { %v7135_v43 = vadd.f32 %v2626_v40, %v7053_v56  ;;  %v3617_v56 = vpop.permute.xlu0 %3616  ;;  %v3770_v40 = vpop.permute.xlu2 %3769 }
 0x31e   : > { %v2607_v53 = vpop.f32.mrf.mxu1  ;;  %v2588_v49 = vpop.f32.mrf.mxu0  ;;  %v3623_v51 = vsel %vm3620_vm9, %v3615_v50, %v3617_v56  ;;  %v4216_v21 = vld.sshfl [vmem:[#allocation1 + $0x18] sm:$0xff pattern:$0x73625140]  ;;  %4230 = vrot.lane.b32.xlu0 %v4220_v25, %s5624_s6  ;;  %v4212_v23 = vld.sshfl [vmem:[#allocation1 + $0x8] sm:$0xff pattern:$0x73625140] }
 0x31f   : > { %v2643_v48 = vpop.f32.mrf.mxu3  ;;  %v7144_v46 = vadd.f32 %v2607_v53, %v7062_v55  ;;  %v7147_v54 = vadd.f32 %v2588_v49, %v7065_v57  ;;  %v3624_v55 = vsel %vm3620_vm9, %v3617_v56, %v3619_v52  ;;  %4226 = vrot.lane.b32.xlu1 %v4216_v21, %s5624_s6 }
 0x320   : > { %v7141_v44 = vadd.f32 %v2643_v48, %v7059_v59  ;;  %v3638_v59 = vsel %vm328_vm1, %v3623_v51, 0  ;;  %v4218_v51 = vld.sshfl [vmem:[#allocation1 + $0x20] sm:$0xff pattern:$0x73625140] }
 0x321   : > { %5195 = vmatmul.msk.bf16.vlgmr.msra.gmra.mxu2 %vm321_vm2, %v5373_v45  ;;  %4228 = vrot.lane.b32.xlu2 %v4218_v51, %s5624_s6 }
 0x322   : > { %3688 = vmatpush.bf16.msra.mxu2 %v3638_v59 }
 0x324   : > { %v2772_v58 = vpop.f32.mrf.mxu2 }
 0x325   : > { %v7153_v63 = vadd.f32 %v2772_v58, %v7069_v60  ;;  %v3641_v60 = vsel %vm328_vm1, %v3624_v55, 0 }
 0x326   : > { %v2753_v4 = vpop.f32.mrf.mxu1  ;;  %v2734_v8 = vpop.f32.mrf.mxu0  ;;  %4222 = vrot.lane.b32.xlu0 %v4212_v23, %s5624_s6 }
 0x327   : > { %v2645_v62 = vpop.f32.mrf.mxu3  ;;  %v7160_v10 = vadd.f32 %v2753_v4, %v7076_v11  ;;  %v7163_v3 = vadd.f32 %v2734_v8, %v7079_v2  ;;  %v5374_v11 = vld [vmem:[%s7684_s1 + $0x148] sm:$0x30]  ;;  %v5376_v4 = vld [vmem:[%s7684_s1 + $0x158] sm:$0x30] }
 0x328   : > { %v7157_v57 = vadd.f32 %v2645_v62, %v7073_v61  ;;  %v5189_v61 = vld [vmem:[%s7684_s1 + $0x148] sm:$0xf]  ;;  %v3613_v2 = vpop.permute.xlu0 %3612  ;;  %v3611_v6 = vpop.permute.xlu1 %3610 }
 0x329   : > { %5191 = vmatmul.msk.bf16.vlgmr.msra.gmra.mxu0 %vm321_vm2, %v5373_v45  ;;  %5193 = vmatmul.msk.bf16.vlgmr.msra.gmra.mxu1 %vm321_vm2, %v5373_v45  ;;  %v3622_v5 = vsel %vm3620_vm9, %v3613_v2, %v3615_v50  ;;  %v3621_v9 = vsel %vm3620_vm9, %v3611_v6, %v3613_v2  ;;  %v5190_v19 = vor.u32 %v5374_v11, %v5189_v61 }
 0x32a   : > { %v3635_v12 = vsel %vm328_vm1, %v3622_v5, 0  ;;  %v3632_v17 = vsel %vm328_vm1, %v3621_v9, 0 }
 0x32b   : > { %3650 = vmatpush.bf16.msra.mxu0 %v3632_v17  ;;  %3669 = vmatpush.bf16.msra.mxu1 %v3635_v12 }
 0x32c   : > { %5197 = vmatmul.msk.bf16.vlgmr.msra.gmra.mxu3 %vm321_vm2, %v5373_v45  ;;  %v2774_v16 = vpop.f32.mrf.mxu2 }
 0x32d   : > { %3707 = vmatpush.bf16.msra.mxu3 %v3641_v60  ;;  %v7182_v14 = vadd.f32 %v2774_v16, %v7100_v15  ;;  %v4214_v16 = vld.sshfl [vmem:[#allocation1 + $0x10] sm:$0xff pattern:$0x73625140] }
 0x32e   : > { %v2736_v13 = vpop.f32.mrf.mxu0  ;;  %v2755_v24 = vpop.f32.mrf.mxu1  ;;  %4224 = vrot.lane.b32.xlu2 %v4214_v16, %s5624_s6  ;;  %s7397_s6 = sand.u32 1, %s5573_s16  }
 0x32f   : > { %v2791_v18 = vpop.f32.mrf.mxu3  ;;  %v7188_v28 = vadd.f32 %v2736_v13, %v7106_v35  ;;  %v7191_v29 = vadd.f32 %v2755_v24, %v7109_v26  ;;  %s4778_s8 = sshll.u32 %s7397_s6, 7  ;;  %s4779_s11 = sshll.u32 %s7397_s6, 3 }
 0x330   : > { %v7185_v22 = vadd.f32 %v2791_v18, %v7103_v31  ;;  %s7501_s9 = scalar_lea.vmem [#allocation2], %s4778_s8  ;;  %s7610_s12 = scalar_lea.vmem [#allocation3], %s4779_s11 }
 0x331   : > { %5196 = vmatmul.msk.bf16.gmra.mxu2 %vm321_vm2, %v5190_v19  ;;  %v3768_v48 = vpop.permute.xlu1 %3767 }
 0x332   : > { %v3776_v45 = vsel %vm3773_vm10, %v3768_v48, %v3770_v40 }
 0x334   : > { %v2777_v15 = vpop.f32.mrf.mxu2 }
 0x335   : > { %v7197_v31 = vadd.f32 %v2777_v15, %v7118_v33 }
 0x336   : > { %v2739_v20 = vpop.f32.mrf.mxu0  ;;  %v2758_v35 = vpop.f32.mrf.mxu1 }
 0x337   : > { %v2793_v32 = vpop.f32.mrf.mxu3  ;;  %v7203_v26 = vadd.f32 %v2739_v20, %v7124_v42  ;;  %v7206_v30 = vadd.f32 %v2758_v35, %v7127_v38 }
 0x338   : > { %v7200_v27 = vadd.f32 %v2793_v32, %v7121_v39 }
 0x339   : > { %5192 = vmatmul.msk.bf16.gmra.mxu0 %vm321_vm2, %v5190_v19  ;;  %5194 = vmatmul.msk.bf16.gmra.mxu1 %vm321_vm2, %v5190_v19 }
 0x33c   : > { %5198 = vmatmul.msk.bf16.gmra.mxu3 %vm321_vm2, %v5190_v19  ;;  %v2779_v33 = vpop.f32.mrf.mxu2 }
 0x33d   : > { %v7213_v34 = vadd.f32 %v2779_v33, %v7135_v43  ;;  %v3772_v43 = vpop.permute.xlu0 %3771 }
 0x33e   : > { %v2760_v42 = vpop.f32.mrf.mxu1  ;;  %v2741_v38 = vpop.f32.mrf.mxu0 }
 0x33f   : > { %v2796_v39 = vpop.f32.mrf.mxu3  ;;  %v7222_v47 = vadd.f32 %v2760_v42, %v7144_v46  ;;  %v7225_v41 = vadd.f32 %v2741_v38, %v7147_v54  ;;  %v3777_v46 = vsel %vm3773_vm10, %v3770_v40, %v3772_v43 }
 0x340   : > { %v7219_v37 = vadd.f32 %v2796_v39, %v7141_v44  ;;  %v3791_v44 = vsel %vm328_vm1, %v3776_v45, 0  ;;  %v3794_v62 = vsel %vm328_vm1, %v3777_v46, 0  ;;  %v5229_v45 = vld [vmem:[%s7684_s1 + $0x168] sm:$0xf] }
 0x341   : > { %5215 = vmatmul.msk.bf16.vlgmr.msrb.gmra.mxu2 %vm321_vm2, %v5375_v36 }
 0x342   : > { %3841 = vmatpush.bf16.msrb.mxu2 %v3791_v44 }
 0x344   : > { %v2925_v53 = vpop.f32.mrf.mxu2 }
 0x345   : > { %v7231_v56 = vadd.f32 %v2925_v53, %v7153_v63  ;;  %v3766_v63 = vpop.permute.xlu2 %3765  ;;  %v3764_v55 = vpop.permute.xlu0 %3763  ;;  %v5378_v53 = vld [vmem:[%s7684_s1 + $0x168] sm:$0x30] }
 0x346   : > { %v2906_v52 = vpop.f32.mrf.mxu1  ;;  %v2887_v50 = vpop.f32.mrf.mxu0  ;;  %v3775_v8 = vsel %vm3773_vm10, %v3766_v63, %v3768_v48  ;;  %v3774_v7 = vsel %vm3773_vm10, %v3764_v55, %v3766_v63 }
 0x347   : > { %v2798_v49 = vpop.f32.mrf.mxu3  ;;  %v2955_v58 = vadd.f32 %v2906_v52, %v7160_v10  ;;  %v2954_v59 = vadd.f32 %v2887_v50, %v7163_v3  ;;  %v3788_v10 = vsel %vm328_vm1, %v3775_v8, 0  ;;  %v3785_v3 = vsel %vm328_vm1, %v3774_v7, 0 }
 0x348   : > { %v7235_v54 = vadd.f32 %v2798_v49, %v7157_v57  ;;  %v5209_v57 = vld [vmem:[%s7684_s1 + $0x158] sm:$0xf] }
 0x349   : > { %5211 = vmatmul.msk.bf16.vlgmr.msrb.gmra.mxu0 %vm321_vm2, %v5375_v36  ;;  %5213 = vmatmul.msk.bf16.vlgmr.msrb.gmra.mxu1 %vm321_vm2, %v5375_v36  ;;  %v5210_v2 = vor.u32 %v5376_v4, %v5209_v57 }
 0x34a   : > { %3803 = vmatpush.bf16.msrb.mxu0 %v3785_v3  ;;  %3822 = vmatpush.bf16.msrb.mxu1 %v3788_v10 }
 0x34c   : > { %5217 = vmatmul.msk.bf16.vlgmr.msrb.gmra.mxu3 %vm321_vm2, %v5375_v36  ;;  %v2927_v60 = vpop.f32.mrf.mxu2 }
 0x34d   : > { %3860 = vmatpush.bf16.msrb.mxu3 %v3794_v62  ;;  %v7255_v61 = vadd.f32 %v2927_v60, %v7182_v14  ;;  %v3921_v43 = vpop.permute.xlu0 %3920  ;;  %v5230_v62 = vor.u32 %v5378_v53, %v5229_v45 }
 0x34e   : > { %v2889_v5 = vpop.f32.mrf.mxu0  ;;  %v2908_v9 = vpop.f32.mrf.mxu1 }
 0x34f   : > { %v2944_v11 = vpop.f32.mrf.mxu3  ;;  %v7261_v12 = vadd.f32 %v2889_v5, %v7188_v28  ;;  %v7264_v17 = vadd.f32 %v2908_v9, %v7191_v29 }
 0x350   : > { %v7258_v6 = vadd.f32 %v2944_v11, %v7185_v22 }
 0x351   : > { %5216 = vmatmul.msk.bf16.gmra.mxu2 %vm321_vm2, %v5210_v2 }
 0x354   : > { %v2930_v14 = vpop.f32.mrf.mxu2 }
 0x355   : > { %v2964_v18 = vadd.f32 %v2930_v14, %v7197_v31  ;;  %v5377_v31 = vld [vmem:[%s7684_s1 + $0x160] sm:$0xff] }
 0x356   : > { %v2892_v13 = vpop.f32.mrf.mxu0  ;;  %v2911_v24 = vpop.f32.mrf.mxu1 }
 0x357   : > { %v2946_v19 = vpop.f32.mrf.mxu3  ;;  %v2962_v25 = vadd.f32 %v2892_v13, %v7203_v26  ;;  %v2963_v21 = vadd.f32 %v2911_v24, %v7206_v30  ;;  %v3923_v26 = vpop.permute.xlu1 %3922 }
 0x358   : > { %v2961_v22 = vadd.f32 %v2946_v19, %v7200_v27  ;;  %v3925_v30 = vpop.permute.xlu2 %3924  ;;  %v3929_v44 = vsel %vm3926_vm11, %v3921_v43, %v3923_v26 }
 0x359   : > { %5212 = vmatmul.msk.bf16.gmra.mxu0 %vm321_vm2, %v5210_v2  ;;  %5214 = vmatmul.msk.bf16.gmra.mxu1 %vm321_vm2, %v5210_v2  ;;  %v3930_v36 = vsel %vm3926_vm11, %v3923_v26, %v3925_v30  ;;  %v3944_v46 = vsel %vm328_vm1, %v3929_v44, 0 }
 0x35a   : > { %v3947_v40 = vsel %vm328_vm1, %v3930_v36, 0 }
 0x35c   : > { %5218 = vmatmul.msk.bf16.gmra.mxu3 %vm321_vm2, %v5210_v2  ;;  %v2932_v28 = vpop.f32.mrf.mxu2 }
 0x35d   : > { %v2968_v29 = vadd.f32 %v2932_v28, %v7213_v34 }
 0x35e   : > { %v2913_v27 = vpop.f32.mrf.mxu1  ;;  %v2894_v20 = vpop.f32.mrf.mxu0 }
 0x35f   : > { %v2949_v15 = vpop.f32.mrf.mxu3  ;;  %v2967_v35 = vadd.f32 %v2913_v27, %v7222_v47  ;;  %v2966_v23 = vadd.f32 %v2894_v20, %v7225_v41 }
 0x360   : > { %v2965_v32 = vadd.f32 %v2949_v15, %v7219_v37 }
 0x361   : > { %5235 = vmatmul.msk.bf16.vlgmr.msra.gmra.mxu2 %vm321_vm2, %v5377_v31  ;;  %v4076_v13 = vpop.permute.xlu0 %4075 }
 0x362   : > { %v3919_v48 = vpop.permute.xlu1 %3918  ;;  %3994 = vmatpush.bf16.msra.mxu2 %v3944_v46 }
 0x363   : > { %v3928_v49 = vsel %vm3926_vm11, %v3919_v48, %v3921_v43 }
 0x364   : > { %v3078_v33 = vpop.f32.mrf.mxu2 }
 0x365   : > { %v7284_v39 = vadd.f32 %v3078_v33, %v7231_v56  ;;  %v5249_v33 = vld [vmem:[%s7684_s1 + $0x178] sm:$0xf] }
 0x366   : > { %v3059_v42 = vpop.f32.mrf.mxu1  ;;  %v3040_v38 = vpop.f32.mrf.mxu0 }
 0x367   : > { %v2951_v34 = vpop.f32.mrf.mxu3  ;;  %v7290_v47 = vadd.f32 %v3059_v42, %v2955_v58  ;;  %v7292_v41 = vadd.f32 %v3040_v38, %v2954_v59 }
 0x368   : > { %v7288_v37 = vadd.f32 %v2951_v34, %v7235_v54  ;;  %v3917_v56 = vpop.permute.xlu2 %3916  ;;  %v3941_v54 = vsel %vm328_vm1, %v3928_v49, 0  ;;  %v5380_v34 = vld [vmem:[%s7684_s1 + $0x178] sm:$0x30] }
 0x369   : > { %5231 = vmatmul.msk.bf16.vlgmr.msra.gmra.mxu0 %vm321_vm2, %v5377_v31  ;;  %5233 = vmatmul.msk.bf16.vlgmr.msra.gmra.mxu1 %vm321_vm2, %v5377_v31  ;;  %v3927_v52 = vsel %vm3926_vm11, %v3917_v56, %v3919_v48  ;;  %v5250_v48 = vor.u32 %v5380_v34, %v5249_v33 }
 0x36a   : > { %v3938_v51 = vsel %vm328_vm1, %v3927_v52, 0  ;;  %3975 = vmatpush.bf16.msra.mxu1 %v3941_v54  ;;  %v4078_v24 = vpop.permute.xlu1 %4077 }
 0x36b   : > { %3956 = vmatpush.bf16.msra.mxu0 %v3938_v51 }
 0x36c   : > { %5237 = vmatmul.msk.bf16.vlgmr.msra.gmra.mxu3 %vm321_vm2, %v5377_v31  ;;  %v3080_v50 = vpop.f32.mrf.mxu2 }
 0x36d   : > { %4013 = vmatpush.bf16.msra.mxu3 %v3947_v40  ;;  %v3113_v58 = vadd.f32 %v3080_v50, %v7255_v61 }
 0x36e   : > { %v3042_v55 = vpop.f32.mrf.mxu0  ;;  %v3061_v57 = vpop.f32.mrf.mxu1 }
 0x36f   : > { %v3097_v59 = vpop.f32.mrf.mxu3  ;;  %v3111_v4 = vadd.f32 %v3042_v55, %v7261_v12  ;;  %v3112_v8 = vadd.f32 %v3061_v57, %v7264_v17  ;;  %v5379_v12 = vld [vmem:[%s7684_s1 + $0x170] sm:$0xff] }
 0x370   : > { %v3110_v63 = vadd.f32 %v3097_v59, %v7258_v6 }
 0x371   : > { %5236 = vmatmul.msk.bf16.gmra.mxu2 %vm321_vm2, %v5230_v62 }
 0x374   : > { %v3083_v7 = vpop.f32.mrf.mxu2 }
 0x375   : > { %v3117_v10 = vadd.f32 %v3083_v7, %v2964_v18 }
 0x376   : > { %v3045_v11 = vpop.f32.mrf.mxu0  ;;  %v3064_v2 = vpop.f32.mrf.mxu1 }
 0x377   : > { %v3099_v3 = vpop.f32.mrf.mxu3  ;;  %v3115_v61 = vadd.f32 %v3045_v11, %v2962_v25  ;;  %v3116_v5 = vadd.f32 %v3064_v2, %v2963_v21  ;;  %v4074_v25 = vpop.permute.xlu2 %4073 }
 0x378   : > { %v3114_v60 = vadd.f32 %v3099_v3, %v2961_v22  ;;  %v4082_v21 = vsel %vm4079_vm12, %v4074_v25, %v4076_v13 }
 0x379   : > { %5232 = vmatmul.msk.bf16.gmra.mxu0 %vm321_vm2, %v5230_v62  ;;  %5234 = vmatmul.msk.bf16.gmra.mxu1 %vm321_vm2, %v5230_v62 }
 0x37c   : > { %5238 = vmatmul.msk.bf16.gmra.mxu3 %vm321_vm2, %v5230_v62  ;;  %v3085_v6 = vpop.f32.mrf.mxu2 }
 0x37d   : > { %v3121_v9 = vadd.f32 %v3085_v6, %v2968_v29  ;;  %v4097_v29 = vsel %vm328_vm1, %v4082_v21, 0 }
 0x37e   : > { %v3066_v14 = vpop.f32.mrf.mxu1  ;;  %v3047_v18 = vpop.f32.mrf.mxu0 }
 0x37f   : > { %v3102_v16 = vpop.f32.mrf.mxu3  ;;  %v3120_v19 = vadd.f32 %v3066_v14, %v2967_v35  ;;  %v3119_v22 = vadd.f32 %v3047_v18, %v2966_v23  ;;  %v4229_v11 = vpop.permute.xlu2 %4228 }
 0x380   : > { %v3118_v17 = vadd.f32 %v3102_v16, %v2965_v32  ;;  %v4083_v32 = vsel %vm4079_vm12, %v4076_v13, %v4078_v24 }
 0x381   : > { %5255 = vmatmul.msk.bf16.vlgmr.msrb.gmra.mxu2 %vm321_vm2, %v5379_v12  ;;  %v4100_v30 = vsel %vm328_vm1, %v4083_v32, 0 }
 0x382   : > { %4147 = vmatpush.bf16.msrb.mxu2 %v4097_v29  ;;  %v5382_v29 = vld [vmem:[%s7684_s1 + $0x188] sm:$0x30] }
 0x384   : > { %v3231_v28 = vpop.f32.mrf.mxu2 }
 0x385   : > { %v3262_v31 = vadd.f32 %v3231_v28, %v7284_v39  ;;  %v5269_v28 = vld [vmem:[%s7684_s1 + $0x188] sm:$0xf] }
 0x386   : > { %v3212_v20 = vpop.f32.mrf.mxu1  ;;  %v3193_v35 = vpop.f32.mrf.mxu0 }
 0x387   : > { %v3104_v15 = vpop.f32.mrf.mxu3  ;;  %v3261_v23 = vadd.f32 %v3212_v20, %v7290_v47  ;;  %v3260_v26 = vadd.f32 %v3193_v35, %v7292_v41 }
 0x388   : > { %v3122_v27 = vadd.f32 %v3104_v15, %v7288_v37  ;;  %v4072_v39 = vpop.permute.xlu0 %4071  ;;  %v4070_v36 = vpop.permute.xlu1 %4069 }
 0x389   : > { %5251 = vmatmul.msk.bf16.vlgmr.msrb.gmra.mxu0 %vm321_vm2, %v5379_v12  ;;  %5253 = vmatmul.msk.bf16.vlgmr.msrb.gmra.mxu1 %vm321_vm2, %v5379_v12  ;;  %v4081_v37 = vsel %vm4079_vm12, %v4072_v39, %v4074_v25  ;;  %v4080_v42 = vsel %vm4079_vm12, %v4070_v36, %v4072_v39  ;;  %v4225_v25 = vpop.permute.xlu2 %4224 }
 0x38a   : > { %v4094_v47 = vsel %vm328_vm1, %v4081_v37, 0  ;;  %v4091_v41 = vsel %vm328_vm1, %v4080_v42, 0 }
 0x38b   : > { %4109 = vmatpush.bf16.msrb.mxu0 %v4091_v41  ;;  %4128 = vmatpush.bf16.msrb.mxu1 %v4094_v47 }
 0x38c   : > { %5257 = vmatmul.msk.bf16.vlgmr.msrb.gmra.mxu3 %vm321_vm2, %v5379_v12  ;;  %v3233_v38 = vpop.f32.mrf.mxu2 }
 0x38d   : > { %4166 = vmatpush.bf16.msrb.mxu3 %v4100_v30  ;;  %v7343_v40 = vadd.f32 %v3233_v38, %v3113_v58 }
 0x38e   : > { %v3195_v53 = vpop.f32.mrf.mxu0  ;;  %v3214_v44 = vpop.f32.mrf.mxu1 }
 0x38f   : > { %v3250_v43 = vpop.f32.mrf.mxu3  ;;  %v3264_v49 = vadd.f32 %v3195_v53, %v3111_v4  ;;  %v3265_v56 = vadd.f32 %v3214_v44, %v3112_v8  ;;  %v5381_v4 = vld [vmem:[%s7684_s1 + $0x180] sm:$0xff] }
 0x390   : > { %v3263_v45 = vadd.f32 %v3250_v43, %v3110_v63  ;;  %v4231_v2 = vpop.permute.xlu0 %4230 }
 0x391   : > { %5256 = vmatmul.msk.bf16.gmra.mxu2 %vm321_vm2, %v5250_v48  ;;  %v4236_v14 = vsel %vm4232_vm13, %v4229_v11, %v4231_v2 }
 0x392   : > { %v4253_v24 = vsel %vm328_vm1, %v4236_v14, 0 }
 0x394   : > { %v3236_v46 = vpop.f32.mrf.mxu2 }
 0x395   : > { %v3270_v54 = vadd.f32 %v3236_v46, %v3117_v10 }
 0x396   : > { %v3198_v51 = vpop.f32.mrf.mxu0  ;;  %v3217_v59 = vpop.f32.mrf.mxu1 }
 0x397   : > { %v3252_v52 = vpop.f32.mrf.mxu3  ;;  %v3268_v62 = vadd.f32 %v3198_v51, %v3115_v61  ;;  %v3269_v58 = vadd.f32 %v3217_v59, %v3116_v5  ;;  %v4227_v61 = vpop.permute.xlu1 %4226 }
 0x398   : > { %v3267_v50 = vadd.f32 %v3252_v52, %v3114_v60  ;;  %v4235_v5 = vsel %vm4232_vm13, %v4227_v61, %v4229_v11  ;;  %v4223_v21 = vpop.permute.xlu0 %4222  ;;  %v4234_v15 = vsel %vm4232_vm13, %v4225_v25, %v4227_v61 }
 0x399   : > { %5252 = vmatmul.msk.bf16.gmra.mxu0 %vm321_vm2, %v5250_v48  ;;  %5254 = vmatmul.msk.bf16.gmra.mxu1 %vm321_vm2, %v5250_v48  ;;  %v4247_v32 = vsel %vm328_vm1, %v4234_v15, 0 }
 0x39c   : > { %5258 = vmatmul.msk.bf16.gmra.mxu3 %vm321_vm2, %v5250_v48  ;;  %v3238_v63 = vpop.f32.mrf.mxu2 }
 0x39d   : > { %v3274_v55 = vadd.f32 %v3238_v63, %v3121_v9  ;;  %v4250_v9 = vsel %vm328_vm1, %v4235_v5, 0 }
 0x39e   : > { %v3219_v7 = vpop.f32.mrf.mxu1  ;;  %v3200_v10 = vpop.f32.mrf.mxu0 }
 0x39f   : > { %v3255_v57 = vpop.f32.mrf.mxu3  ;;  %v3273_v3 = vadd.f32 %v3219_v7, %v3120_v19  ;;  %v3272_v60 = vadd.f32 %v3200_v10, %v3119_v22  ;;  %v5384_v7 = vld [vmem:[%s7684_s1 + $0x198] sm:$0x30] }
 0x3a0   : > { %v3271_v8 = vadd.f32 %v3255_v57, %v3118_v17 }
 0x3a1   : > { %5275 = vmatmul.msk.bf16.vlgmr.msra.gmra.mxu2 %vm321_vm2, %v5381_v4 }
 0x3a2   : > { %4300 = vmatpush.bf16.msra.mxu2 %v4250_v9 }
 0x3a4   : > { %v3384_v6 = vpop.f32.mrf.mxu2 }
 0x3a5   : > { %v3415_v12 = vadd.f32 %v3384_v6, %v3262_v31  ;;  %v4233_v31 = vsel %vm4232_vm13, %v4223_v21, %v4225_v25 }
 0x3a6   : > { %v3365_v18 = vpop.f32.mrf.mxu1  ;;  %v3346_v19 = vpop.f32.mrf.mxu0 }
 0x3a7   : > { %v3257_v16 = vpop.f32.mrf.mxu3  ;;  %v3414_v22 = vadd.f32 %v3365_v18, %v3261_v23  ;;  %v3413_v13 = vadd.f32 %v3346_v19, %v3260_v26  ;;  %v5270_v26 = vor.u32 %v5382_v29, %v5269_v28  ;;  %v5385_v28 = vld [vmem:[%s7684_s1 + $0x1a0] sm:$0xff] }
 0x3a8   : > { %v3275_v17 = vadd.f32 %v3257_v16, %v3122_v27  ;;  %v4244_v27 = vsel %vm328_vm1, %v4233_v31, 0 }
 0x3a9   : > { %5271 = vmatmul.msk.bf16.vlgmr.msra.gmra.mxu0 %vm321_vm2, %v5381_v4  ;;  %5273 = vmatmul.msk.bf16.vlgmr.msra.gmra.mxu1 %vm321_vm2, %v5381_v4 }
 0x3aa   : > { %4262 = vmatpush.bf16.msra.mxu0 %v4244_v27  ;;  %4281 = vmatpush.bf16.msra.mxu1 %v4247_v32 }
 0x3ac   : > { %5277 = vmatmul.msk.bf16.vlgmr.msra.gmra.mxu3 %vm321_vm2, %v5381_v4  ;;  %v3386_v20 = vpop.f32.mrf.mxu2 }
 0x3ad   : > { %4319 = vmatpush.bf16.msra.mxu3 %v4253_v24  ;;  %v3419_v35 = vadd.f32 %v3386_v20, %v7343_v40 }
 0x3ae   : > { %v3348_v33 = vpop.f32.mrf.mxu0  ;;  %v3367_v34 = vpop.f32.mrf.mxu1 }
 0x3af   : > { %v3403_v23 = vpop.f32.mrf.mxu3  ;;  %v3417_v39 = vadd.f32 %v3348_v33, %v3264_v49  ;;  %v3418_v36 = vadd.f32 %v3367_v34, %v3265_v56  ;;  %v5383_v49 = vld [vmem:[%s7684_s1 + $0x190] sm:$0xff] }
 0x3b0   : > { %v3416_v30 = vadd.f32 %v3403_v23, %v3263_v45 }
 0x3b1   : > { %5276 = vmatmul.msk.bf16.gmra.mxu2 %vm321_vm2, %v5270_v26 }
 0x3b4   : > { %v3389_v37 = vpop.f32.mrf.mxu2 }
 0x3b5   : > { %v3423_v42 = vadd.f32 %v3389_v37, %v3270_v54  ;;  %v5386_v37 = vld [vmem:[%s7684_s1 + $0x1a8] sm:$0x30] }
 0x3b6   : > { %v3351_v41 = vpop.f32.mrf.mxu0  ;;  %v3370_v43 = vpop.f32.mrf.mxu1 }
 0x3b7   : > { %v3405_v38 = vpop.f32.mrf.mxu3  ;;  %v3421_v48 = vadd.f32 %v3351_v41, %v3268_v62  ;;  %v3422_v53 = vadd.f32 %v3370_v43, %v3269_v58 }
 0x3b8   : > { %v3420_v47 = vadd.f32 %v3405_v38, %v3267_v50 }
 0x3b9   : > { %5272 = vmatmul.msk.bf16.gmra.mxu0 %vm321_vm2, %v5270_v26  ;;  %5274 = vmatmul.msk.bf16.gmra.mxu1 %vm321_vm2, %v5270_v26 }
 0x3bc   : > { %5278 = vmatmul.msk.bf16.gmra.mxu3 %vm321_vm2, %v5270_v26  ;;  %v3391_v40 = vpop.f32.mrf.mxu2 }
 0x3bd   : > { %v3427_v45 = vadd.f32 %v3391_v40, %v3274_v55 }
 0x3be   : > { %v3372_v46 = vpop.f32.mrf.mxu1  ;;  %v3353_v54 = vpop.f32.mrf.mxu0 }
 0x3bf   : > { %v3408_v44 = vpop.f32.mrf.mxu3  ;;  %v3426_v52 = vadd.f32 %v3372_v46, %v3273_v3  ;;  %v3425_v50 = vadd.f32 %v3353_v54, %v3272_v60 }
 0x3c0   : > { %v3424_v56 = vadd.f32 %v3408_v44, %v3271_v8  ;;  %v5289_v8 = vld [vmem:[%s7684_s1 + $0x198] sm:$0xf] }
 0x3c1   : > { %5295 = vmatmul.msk.bf16.vlgmr.msrb.gmra.mxu2 %vm321_vm2, %v5383_v49  ;;  %v5290_v11 = vor.u32 %v5384_v7, %v5289_v8 }
 0x3c4   : > { %v3537_v51 = vpop.f32.mrf.mxu2 }
 0x3c5   : > { %v3568_v62 = vadd.f32 %v3537_v51, %v3415_v12 }
 0x3c6   : > { %v3518_v63 = vpop.f32.mrf.mxu1  ;;  %v3499_v57 = vpop.f32.mrf.mxu0 }
 0x3c7   : > { %v3410_v59 = vpop.f32.mrf.mxu3  ;;  %v3567_v4 = vadd.f32 %v3518_v63, %v3414_v22  ;;  %v3566_v55 = vadd.f32 %v3499_v57, %v3413_v13 }
 0x3c8   : > { %v3428_v58 = vadd.f32 %v3410_v59, %v3275_v17 }
 0x3c9   : > { %5291 = vmatmul.msk.bf16.vlgmr.msrb.gmra.mxu0 %vm321_vm2, %v5383_v49  ;;  %5293 = vmatmul.msk.bf16.vlgmr.msrb.gmra.mxu1 %vm321_vm2, %v5383_v49 }
 0x3cc   : > { %5297 = vmatmul.msk.bf16.vlgmr.msrb.gmra.mxu3 %vm321_vm2, %v5383_v49  ;;  %v3539_v10 = vpop.f32.mrf.mxu2 }
 0x3cd   : > { %v3572_v3 = vadd.f32 %v3539_v10, %v3419_v35 }
 0x3ce   : > { %v3501_v61 = vpop.f32.mrf.mxu0  ;;  %v3520_v5 = vpop.f32.mrf.mxu1 }
 0x3cf   : > { %v3556_v60 = vpop.f32.mrf.mxu3  ;;  %v3570_v6 = vadd.f32 %v3501_v61, %v3417_v39  ;;  %v3571_v9 = vadd.f32 %v3520_v5, %v3418_v36  ;;  %v5309_v36 = vld [vmem:[%s7684_s1 + $0x1a8] sm:$0xf] }
 0x3d0   : > { %v3569_v2 = vadd.f32 %v3556_v60, %v3416_v30  ;;  %v5310_v41 = vor.u32 %v5386_v37, %v5309_v36 }
 0x3d1   : > { %5296 = vmatmul.msk.bf16.gmra.mxu2 %vm321_vm2, %v5290_v11 }
 0x3d4   : > { %v3542_v16 = vpop.f32.mrf.mxu2 }
 0x3d5   : > { %v3576_v12 = vadd.f32 %v3542_v16, %v3423_v42 }
 0x3d6   : > { %v3504_v18 = vpop.f32.mrf.mxu0  ;;  %v3523_v19 = vpop.f32.mrf.mxu1 }
 0x3d7   : > { %v3558_v14 = vpop.f32.mrf.mxu3  ;;  %v3574_v22 = vadd.f32 %v3504_v18, %v3421_v48  ;;  %v3575_v13 = vadd.f32 %v3523_v19, %v3422_v53 }
 0x3d8   : > { %v3573_v17 = vadd.f32 %v3558_v14, %v3420_v47 }
 0x3d9   : > { %5292 = vmatmul.msk.bf16.gmra.mxu0 %vm321_vm2, %v5290_v11  ;;  %5294 = vmatmul.msk.bf16.gmra.mxu1 %vm321_vm2, %v5290_v11 }
 0x3dc   : > { %5298 = vmatmul.msk.bf16.gmra.mxu3 %vm321_vm2, %v5290_v11  ;;  %v3544_v24 = vpop.f32.mrf.mxu2 }
 0x3dd   : > { %v3580_v25 = vadd.f32 %v3544_v24, %v3427_v45 }
 0x3de   : > { %v3506_v15 = vpop.f32.mrf.mxu0  ;;  %v3525_v31 = vpop.f32.mrf.mxu1 }
 0x3df   : > { %v3561_v21 = vpop.f32.mrf.mxu3  ;;  %v3578_v32 = vadd.f32 %v3506_v15, %v3425_v50  ;;  %v3579_v27 = vadd.f32 %v3525_v31, %v3426_v52 }
 0x3e0   : > { %v3577_v29 = vadd.f32 %v3561_v21, %v3424_v56 }
 0x3e1   : > { %5315 = vmatmul.msk.bf16.vlgmr.msra.gmra.mxu2 %vm321_vm2, %v5385_v28 }
 0x3e4   : > { %v3690_v20 = vpop.f32.mrf.mxu2 }
 0x3e5   : > { %v3721_v23 = vadd.f32 %v3690_v20, %v3568_v62 }
 0x3e6   : > { %v3652_v30 = vpop.f32.mrf.mxu0  ;;  %v3671_v33 = vpop.f32.mrf.mxu1 }
 0x3e7   : > { %v3563_v35 = vpop.f32.mrf.mxu3  ;;  %v3719_v34 = vadd.f32 %v3652_v30, %v3566_v55  ;;  %v3720_v39 = vadd.f32 %v3671_v33, %v3567_v4 }
 0x3e8   : > { %v3581_v26 = vadd.f32 %v3563_v35, %v3428_v58 }
 0x3e9   : > { %5311 = vmatmul.msk.bf16.vlgmr.msra.gmra.mxu0 %vm321_vm2, %v5385_v28  ;;  %5313 = vmatmul.msk.bf16.vlgmr.msra.gmra.mxu1 %vm321_vm2, %v5385_v28 }
 0x3ec   : > { %5317 = vmatmul.msk.bf16.vlgmr.msra.gmra.mxu3 %vm321_vm2, %v5385_v28  ;;  %v3692_v42 = vpop.f32.mrf.mxu2 }
 0x3ed   : > { %v3725_v38 = vadd.f32 %v3692_v42, %v3572_v3 }
 0x3ee   : > { %v3654_v48 = vpop.f32.mrf.mxu0  ;;  %v3673_v53 = vpop.f32.mrf.mxu1 }
 0x3ef   : > { %v3709_v47 = vpop.f32.mrf.mxu3  ;;  %v3723_v40 = vadd.f32 %v3654_v48, %v3570_v6  ;;  %v3724_v45 = vadd.f32 %v3673_v53, %v3571_v9 }
 0x3f0   : > { %v3722_v43 = vadd.f32 %v3709_v47, %v3569_v2 }
 0x3f1   : > { %5316 = vmatmul.msk.bf16.gmra.mxu2 %vm321_vm2, %v5310_v41 }
 0x3f4   : > { %v3695_v44 = vpop.f32.mrf.mxu2 }
 0x3f5   : > { %v3729_v49 = vadd.f32 %v3695_v44, %v3576_v12 }
 0x3f6   : > { %v3657_v54 = vpop.f32.mrf.mxu0  ;;  %v3676_v52 = vpop.f32.mrf.mxu1 }
 0x3f7   : > { %v3711_v56 = vpop.f32.mrf.mxu3  ;;  %v3727_v50 = vadd.f32 %v3657_v54, %v3574_v22  ;;  %v3728_v51 = vadd.f32 %v3676_v52, %v3575_v13 }
 0x3f8   : > { %v3726_v46 = vadd.f32 %v3711_v56, %v3573_v17 }
 0x3f9   : > { %5312 = vmatmul.msk.bf16.gmra.mxu0 %vm321_vm2, %v5310_v41  ;;  %5314 = vmatmul.msk.bf16.gmra.mxu1 %vm321_vm2, %v5310_v41 }
 0x3fc   : > { %5318 = vmatmul.msk.bf16.gmra.mxu3 %vm321_vm2, %v5310_v41  ;;  %v3697_v59 = vpop.f32.mrf.mxu2  ;;  %vm4477_vm2 = vcmask 1043456  }
 0x3fd   : > { %v3733_v62 = vadd.f32 %v3697_v59, %v3580_v25 }
 0x3fe   : > { %v3659_v57 = vpop.f32.mrf.mxu0  ;;  %v3678_v4 = vpop.f32.mrf.mxu1 }
 0x3ff   : > { %v3714_v58 = vpop.f32.mrf.mxu3  ;;  %v3731_v55 = vadd.f32 %v3659_v57, %v3578_v32  ;;  %v3732_v8 = vadd.f32 %v3678_v4, %v3579_v27 }
 0x400   : > { %v3730_v63 = vadd.f32 %v3714_v58, %v3577_v29 }
 0x404   : > { %v3843_v7 = vpop.f32.mrf.mxu2 }
 0x405   : > { %v7412_v3 = vadd.f32 %v3843_v7, %v3721_v23 }
 0x406   : > { %v3805_v11 = vpop.f32.mrf.mxu0  ;;  %v3824_v2 = vpop.f32.mrf.mxu1 }
 0x407   : > { %v3716_v10 = vpop.f32.mrf.mxu3  ;;  %v7414_v61 = vadd.f32 %v3805_v11, %v3719_v34  ;;  %v7416_v5 = vadd.f32 %v3824_v2, %v3720_v39  ;;  %v271_v11 = vld [vmem:[%s264_s5] sm:$0xf] }
 0x408   : > { %v3734_v60 = vadd.f32 %v3716_v10, %v3581_v26 }
 0x40c   : > { %v3845_v6 = vpop.f32.mrf.mxu2 }
 0x40d   : > { %v7418_v9 = vadd.f32 %v3845_v6, %v3725_v38 }
 0x40e   : > { %v3807_v14 = vpop.f32.mrf.mxu0  ;;  %v3826_v17 = vpop.f32.mrf.mxu1 }
 0x40f   : > { %v3862_v16 = vpop.f32.mrf.mxu3  ;;  %v7422_v18 = vadd.f32 %v3807_v14, %v3723_v40  ;;  %v7424_v19 = vadd.f32 %v3826_v17, %v3724_v45  ;;  %v7491_v17 = vperm.slane %v271_v11, 2 }
 0x410   : > { %v7420_v12 = vadd.f32 %v3862_v16, %v3722_v43 }
 0x414   : > { %v3848_v22 = vpop.f32.mrf.mxu2 }
 0x415   : > { %v7426_v13 = vadd.f32 %v3848_v22, %v3729_v49 }
 0x416   : > { %v3810_v21 = vpop.f32.mrf.mxu0  ;;  %v3829_v28 = vpop.f32.mrf.mxu1 }
 0x417   : > { %v3864_v24 = vpop.f32.mrf.mxu3  ;;  %v7430_v29 = vadd.f32 %v3810_v21, %v3727_v50  ;;  %v7432_v15 = vadd.f32 %v3829_v28, %v3728_v51 }
 0x418   : > { %v7428_v25 = vadd.f32 %v3864_v24, %v3726_v46 }
 0x41c   : > { %v3850_v31 = vpop.f32.mrf.mxu2 }
 0x41d   : > { %v7434_v32 = vadd.f32 %v3850_v31, %v3733_v62 }
 0x41e   : > { %v3812_v35 = vpop.f32.mrf.mxu0  ;;  %v3831_v23 = vpop.f32.mrf.mxu1 }
 0x41f   : > { %v3867_v27 = vpop.f32.mrf.mxu3  ;;  %v7438_v26 = vadd.f32 %v3812_v35, %v3731_v55  ;;  %v7440_v30 = vadd.f32 %v3831_v23, %v3732_v8  ;;  %v7497_v35 = vperm.slane %v271_v11, 1 }
 0x420   : > { %v7436_v20 = vadd.f32 %v3867_v27, %v3730_v63  ;;  %v7495_v27 = vperm.slane %v271_v11, 0 }
 0x424   : > { %v3996_v33 = vpop.f32.mrf.mxu2 }
 0x425   : > { %v4027_v2 = vadd.f32 %v3996_v33, %v7412_v3 }
 0x426   : > { %v3958_v36 = vpop.f32.mrf.mxu0  ;;  %v3977_v37 = vpop.f32.mrf.mxu1 }
 0x427   : > { %v3869_v34 = vpop.f32.mrf.mxu3  ;;  %v4025_v6 = vadd.f32 %v3958_v36, %v7414_v61  ;;  %v4026_v16 = vadd.f32 %v3977_v37, %v7416_v5 }
 0x428   : > { %v7442_v39 = vadd.f32 %v3869_v34, %v3734_v60 }
 0x42c   : > { %v3998_v42 = vpop.f32.mrf.mxu2 }
 0x42d   : > { %v4031_v34 = vadd.f32 %v3998_v42, %v7418_v9  ;;  %v7511_v42 = vperm.slane %v271_v11, 3 }
 0x42e   : > { %v3960_v47 = vpop.f32.mrf.mxu0  ;;  %v3979_v41 = vpop.f32.mrf.mxu1 }
 0x42f   : > { %v4015_v38 = vpop.f32.mrf.mxu3 }
 0x434   : > { %v7444_v43 = vpop.f32.mrf.mxu2 }
 0x436   : > { %v7448_v53 = vpop.f32.mrf.mxu0  ;;  %v7450_v40 = vpop.f32.mrf.mxu1 }
 0x437   : > { %v7446_v48 = vpop.f32.mrf.mxu3  ;;  %v4033_v11 = vadd.f32 %v7448_v53, %v7430_v29 }
 0x43c   : > { %v7452_v45 = vpop.f32.mrf.mxu2 }
 0x43e   : > { %v7456_v49 = vpop.f32.mrf.mxu0  ;;  %v7458_v56 = vpop.f32.mrf.mxu1 }
 0x43f   : > { %v7454_v44 = vpop.f32.mrf.mxu3 }
 0x444   : > { %v4149_v46 = vpop.f32.mrf.mxu2 }
 0x445   : > { %v4180_v14 = vadd.f32 %v4149_v46, %v4027_v2  ;;  %v4028_v46 = vadd.f32 %v4015_v38, %v7420_v12 }
 0x446   : > { %v4111_v52 = vpop.f32.mrf.mxu0  ;;  %v4130_v50 = vpop.f32.mrf.mxu1 }
 0x447   : > { %v7460_v54 = vpop.f32.mrf.mxu3  ;;  %v4178_v22 = vadd.f32 %v4111_v52, %v4025_v6  ;;  %v4179_v21 = vadd.f32 %v4130_v50, %v4026_v16  ;;  %v4029_v52 = vadd.f32 %v3960_v47, %v7422_v18  ;;  %v4030_v50 = vadd.f32 %v3979_v41, %v7424_v19 }
 0x44c   : > { %v4151_v51 = vpop.f32.mrf.mxu2 }
 0x44d   : > { %v4184_v2 = vadd.f32 %v4151_v51, %v4031_v34  ;;  %v4035_v51 = vadd.f32 %v7444_v43, %v7426_v13  ;;  %v4036_v34 = vadd.f32 %v7454_v44, %v7436_v20 }
 0x44e   : > { %v4113_v62 = vpop.f32.mrf.mxu0  ;;  %v4132_v58 = vpop.f32.mrf.mxu1 }
 0x44f   : > { %v4168_v59 = vpop.f32.mrf.mxu3  ;;  %v4182_v16 = vadd.f32 %v4113_v62, %v4029_v52 }
 0x450   : > { %v4181_v6 = vadd.f32 %v4168_v59, %v4028_v46 }
 0x454   : > { %v7466_v63 = vpop.f32.mrf.mxu2 }
 0x456   : > { %v7470_v4 = vpop.f32.mrf.mxu0  ;;  %v7472_v55 = vpop.f32.mrf.mxu1 }
 0x457   : > { %v7468_v57 = vpop.f32.mrf.mxu3 }
 0x45c   : > { %v7476_v8 = vpop.f32.mrf.mxu2 }
 0x45e   : > { %v7483_v10 = vpop.f32.mrf.mxu0  ;;  %v7485_v60 = vpop.f32.mrf.mxu1 }
 0x45f   : > { %v7478_v7 = vpop.f32.mrf.mxu3 }
 0x464   : > { %v4302_v24 = vpop.f32.mrf.mxu2 }
 0x465   : > { %v4333_v31 = vadd.f32 %v4302_v24, %v4180_v14  ;;  %v4183_v14 = vadd.f32 %v4132_v58, %v4030_v50  ;;  %v4032_v58 = vadd.f32 %v7446_v48, %v7428_v25 }
 0x466   : > { %v4264_v23 = vpop.f32.mrf.mxu0  ;;  %v4283_v3 = vpop.f32.mrf.mxu1 }
 0x467   : > { %v7493_v28 = vpop.f32.mrf.mxu3  ;;  %v4358_v61 = vmul.f32 %v7491_v17, %v4333_v31  ;;  %v4331_v33 = vadd.f32 %v4264_v23, %v4178_v22  ;;  %v4332_v5 = vadd.f32 %v4283_v3, %v4179_v21  ;;  %v4034_v31 = vadd.f32 %v7450_v40, %v7432_v15 }
 0x468   : > { %v4188_v23 = vadd.f32 %v7466_v63, %v4035_v51  ;;  %v4185_v13 = vadd.f32 %v7468_v57, %v4032_v58  ;;  %v4186_v3 = vadd.f32 %v7470_v4, %v4033_v11 }
 0x469   : > { %4374 = vst [vmem:[%s7501_s9 + $0x10] sm:$0xff] %v4358_v61  ;;  %v4356_v36 = vmul.f32 %v7495_v27, %v4331_v33  ;;  %v4357_v37 = vmul.f32 %v7497_v35, %v4332_v5  ;;  %v4187_v25 = vadd.f32 %v7472_v55, %v4034_v31  ;;  %v4039_v5 = vadd.f32 %v7452_v45, %v7434_v32 }
 0x46a   : > { %v4189_v32 = vadd.f32 %v7478_v7, %v4036_v34 }
 0x46b   : > { %4372 = vst [vmem:[%s7501_s9] sm:$0xff] %v4356_v36  ;;  %v4037_v36 = vadd.f32 %v7456_v49, %v7438_v26  ;;  %v4192_v46 = vadd.f32 %v7476_v8, %v4039_v5 }
 0x46c   : > { %4373 = vst [vmem:[%s7501_s9 + $0x8] sm:$0xff] %v4357_v37  ;;  %v4304_v9 = vpop.f32.mrf.mxu2  ;;  %v4038_v37 = vadd.f32 %v7458_v56, %v7440_v30 }
 0x46d   : > { %v4337_v22 = vadd.f32 %v4304_v9, %v4184_v2  ;;  %v4190_v52 = vadd.f32 %v7483_v10, %v4037_v36 }
 0x46e   : > { %v4266_v12 = vpop.f32.mrf.mxu0  ;;  %v4285_v38 = vpop.f32.mrf.mxu1  ;;  %v4191_v20 = vadd.f32 %v7485_v60, %v4038_v37  ;;  %v4040_v60 = vadd.f32 %v7460_v54, %v7442_v39 }
 0x46f   : > { %v4321_v24 = vpop.f32.mrf.mxu3  ;;  %v4362_v18 = vmul.f32 %v7491_v17, %v4337_v22  ;;  %v4335_v19 = vadd.f32 %v4266_v12, %v4182_v16  ;;  %v4336_v47 = vadd.f32 %v4285_v38, %v4183_v14 }
 0x470   : > { %v4334_v21 = vadd.f32 %v4321_v24, %v4181_v6  ;;  %v4193_v22 = vadd.f32 %v7493_v28, %v4040_v60 }
 0x471   : > { %4378 = vst [vmem:[%s7501_s9 + $0x30] sm:$0xff] %v4362_v18  ;;  %v4360_v59 = vmul.f32 %v7495_v27, %v4335_v19  ;;  %v4361_v62 = vmul.f32 %v7497_v35, %v4336_v47 }
 0x472   : > { %v4359_v41 = vmul.f32 %v7511_v42, %v4334_v21  ;;  %v4496_v21 = vrot.slane %v7497_v35, 4 }
 0x473   : > { %4376 = vst [vmem:[%s7501_s9 + $0x20] sm:$0xff] %v4360_v59 }
 0x474   : > { %4375 = vst [vmem:[%s7501_s9 + $0x18] sm:$0xff] %v4359_v41  ;;  %v4307_v43 = vpop.f32.mrf.mxu2  ;;  %v4498_v38 = vsel %vm4477_vm2, %v7495_v27, %v4496_v21 }
 0x475   : > { %4377 = vst [vmem:[%s7501_s9 + $0x28] sm:$0xff] %v4361_v62  ;;  %v4341_v48 = vadd.f32 %v4307_v43, %v4188_v23  ;;  %4500 = vrot.lane.b32.xlu0 %v4498_v38, %s5625_s10 }
 0x476   : > { %v4269_v29 = vpop.f32.mrf.mxu0  ;;  %v4288_v53 = vpop.f32.mrf.mxu1 }
 0x477   : > { %v4323_v61 = vpop.f32.mrf.mxu3  ;;  %v4366_v15 = vmul.f32 %v7491_v17, %v4341_v48  ;;  %v4339_v40 = vadd.f32 %v4269_v29, %v4186_v3  ;;  %v4340_v63 = vadd.f32 %v4288_v53, %v4187_v25 }
 0x478   : > { %v4338_v33 = vadd.f32 %v4323_v61, %v4185_v13 }
 0x479   : > { %4382 = vst [vmem:[%s7501_s9 + $0x50] sm:$0xff] %v4366_v15  ;;  %v4364_v4 = vmul.f32 %v7495_v27, %v4339_v40  ;;  %v4365_v55 = vmul.f32 %v7497_v35, %v4340_v63 }
 0x47a   : > { %v4363_v57 = vmul.f32 %v7511_v42, %v4338_v33 }
 0x47b   : > { %4380 = vst [vmem:[%s7501_s9 + $0x40] sm:$0xff] %v4364_v4 }
 0x47c   : > { %4379 = vst [vmem:[%s7501_s9 + $0x38] sm:$0xff] %v4363_v57  ;;  %v4309_v45 = vpop.f32.mrf.mxu2 }
 0x47d   : > { %4381 = vst [vmem:[%s7501_s9 + $0x48] sm:$0xff] %v4365_v55  ;;  %v4345_v44 = vadd.f32 %v4309_v45, %v4192_v46 }
 0x47e   : > { %v4271_v49 = vpop.f32.mrf.mxu0  ;;  %v4290_v2 = vpop.f32.mrf.mxu1 }
 0x47f   : > { %v4326_v50 = vpop.f32.mrf.mxu3  ;;  %v4370_v30 = vmul.f32 %v7491_v17, %v4345_v44  ;;  %v4343_v56 = vadd.f32 %v4271_v49, %v4190_v52  ;;  %v4344_v8 = vadd.f32 %v4290_v2, %v4191_v20 }
 0x480   : > { %v4342_v26 = vadd.f32 %v4326_v50, %v4189_v32 }
 0x481   : > { %4386 = vst [vmem:[%s7501_s9 + $0x70] sm:$0x7] %v4370_v30  ;;  %v5321_v6 = vmul.f32 -1.442695, %v4370_v30  ;;  %v4368_v10 = vmul.f32 %v7495_v27, %v4343_v56  ;;  %v4369_v9 = vmul.f32 %v7497_v35, %v4344_v8 }
 0x482   : > { %v4367_v7 = vmul.f32 %v7511_v42, %v4342_v26 }
 0x483   : > { %5487 = vpow2.f32 %v5321_v6  ;;  %4384 = vst [vmem:[%s7501_s9 + $0x60] sm:$0x7] %v4368_v10  ;;  %v5319_v16 = vmul.f32 -1.442695, %v4368_v10  ;;  %v5320_v14 = vmul.f32 -1.442695, %v4369_v9 }
 0x484   : > { %4383 = vst [vmem:[%s7501_s9 + $0x58] sm:$0xff] %v4367_v7 }
 0x485   : > { %4385 = vst [vmem:[%s7501_s9 + $0x68] sm:$0x7] %v4369_v9  ;;  %5489 = vpow2.f32 %v5319_v16 }
 0x486   : > { %5491 = vpow2.f32 %v5320_v14  ;;  %v4497_v14 = vrot.slane %v7511_v42, 4 }
 0x487   : > { %v4328_v24 = vpop.f32.mrf.mxu3 }
 0x488   : > { %v4346_v12 = vadd.f32 %v4328_v24, %v4193_v22 }
 0x489   : > { %v5488_v54 = vpop.eup %5487 }
 0x48a   : > { %v4371_v39 = vmul.f32 %v7511_v42, %v4346_v12  ;;  %v7569_v18 = vadd.f32 1.0, %v5488_v54  ;;  %v4499_v12 = vsel %vm4477_vm2, %v7491_v17, %v4497_v14 }
 0x48b   : > { %v5490_v19 = vpop.eup %5489 }
 0x48c   : > { %4387 = vst [vmem:[%s7501_s9 + $0x78] sm:$0x7] %v4371_v39  ;;  %v5322_v28 = vmul.f32 -1.442695, %v4371_v39  ;;  %v5492_v47 = vpop.eup %5491  ;;  %5493 = vrcp.f32 %v7569_v18  ;;  %v4400_v35 = vadd.f32 1.0, %v5490_v19  ;;  %vm4439_vm10 = vweird.f32 %v7569_v18  ;;  %v4622_v14 = vld [vmem:[%s7501_s9 + $0x68] sm:$0xff] (%p5702_p3) }
 0x48d   : > { %v4401_v41 = vadd.f32 1.0, %v5492_v47  ;;  %v4445_v20 = vand.u32 2147483648, %v7569_v18  ;;  %v4443_v50 = vand.u32 2147483647, %v7569_v18 }
 0x48e   : > { %5495 = vpow2.f32 %v5322_v28  ;;  %v4415_v48 = vand.u32 2147483648, %v4400_v35  ;;  %v4413_v33 = vand.u32 2147483647, %v4400_v35  ;;  %vm4409_vm3 = vweird.f32 %v4400_v35 }
 0x48f   : > { %5497 = vrcp.f32 %v4400_v35  ;;  %v4430_v61 = vand.u32 2147483648, %v4401_v41  ;;  %v4428_v53 = vand.u32 2147483647, %v4401_v41  ;;  %vm4424_vm5 = vweird.f32 %v4401_v41 }
 0x490   : > { %5499 = vrcp.f32 %v4401_v41  ;;  %v4416_v4 = vor.u32 1.1754944e-38, %v4415_v48  ;;  %vm4414_vm7 = vcmp.eq.f32.partialorder %v4413_v33, 8.507059e+37  ;;  %v4446_v6 = vor.u32 1.1754944e-38, %v4445_v20 }
 0x491   : > { %v4431_v55 = vor.u32 1.1754944e-38, %v4430_v61  ;;  %vm4429_vm8 = vcmp.eq.f32.partialorder %v4428_v53, 8.507059e+37  ;;  %v4464_v28 = vunpack.c.l.bf16 %v5732_v0 }
 0x492   : > { %v7573_v27 = vpop.eup %5493 }
 0x493   : > { %v4435_v59 = vmul.f32 %v7573_v27, %v7569_v18  ;;  %vm4440_vm9 = vweird.f32 %v7573_v27 }
 0x494   : > { %v5496_v51 = vpop.eup %5495  ;;  %vm4441_vm12 = vmor %vm4439_vm10, %vm4440_vm9 }
 0x495   : > { %v5498_v62 = vpop.eup %5497  ;;  %v4403_v58 = vadd.f32 1.0, %v5496_v51  ;;  %v4436_v43 = vsub.f32 1.0, %v4435_v59 }
 0x496   : > { %v5500_v11 = vpop.eup %5499  ;;  %v4405_v31 = vmul.f32 %v5498_v62, %v4400_v35  ;;  %vm4410_vm15 = vweird.f32 %v5498_v62 }
 0x497   : > { %5501 = vrcp.f32 %v4403_v58  ;;  %v4420_v23 = vmul.f32 %v5500_v11, %v4401_v41  ;;  %vm4425_vm0 = vweird.f32 %v5500_v11  ;;  %v4437_v40 = vmul.f32 %v7573_v27, %v4436_v43  ;;  %vm4411_vm4 = vmor %vm4409_vm3, %vm4410_vm15 }
 0x498   : > { %v4406_v13 = vsub.f32 1.0, %v4405_v31  ;;  %vm4426_vm6 = vmor %vm4424_vm5, %vm4425_vm0  ;;  %v4460_v44 = vand.u32 2147483648, %v4403_v58  ;;  %v4458_v49 = vand.u32 2147483647, %v4403_v58  ;;  %vm4454_vm13 = vweird.f32 %v4403_v58 }
 0x499   : > { %v4421_v3 = vsub.f32 1.0, %v4420_v23  ;;  %v4438_v32 = vadd.f32 %v7573_v27, %v4437_v40  ;;  %vm4444_vm0 = vcmp.eq.f32.partialorder %v4443_v50, 8.507059e+37  ;;  %vm4546_vm5 = vcmask 1045508   ;;  %v4596_v50 = vld [vmem:[%s7501_s9] sm:$0xff] (%p5702_p3) }
 0x49a   : > { %v4407_v25 = vmul.f32 %v5498_v62, %v4406_v13  ;;  %v4461_v10 = vor.u32 1.1754944e-38, %v4460_v44  ;;  %vm4459_vm3 = vcmp.eq.f32.partialorder %v4458_v49, 8.507059e+37  ;;  %v4600_v49 = vld [vmem:[%s7501_s9 + $0x10] sm:$0xff] (%p5702_p3) }
 0x49b   : > { %v4422_v29 = vmul.f32 %v5500_v11, %v4421_v3  ;;  %v4442_v56 = vsel %vm4441_vm12, %v7573_v27, %v4438_v32  ;;  %v4466_v27 = vunpack.c.l.bf16 %v5734_v1 }
 0x49c   : > { %v4408_v15 = vadd.f32 %v5498_v62, %v4407_v25  ;;  %v4447_v60 = vsel %vm4444_vm0, %v4446_v6, %v4442_v56  ;;  %v4606_v56 = vld [vmem:[%s7501_s9 + $0x28] sm:$0xff] (%p5702_p3)  ;;  %v4612_v6 = vld [vmem:[%s7501_s9 + $0x40] sm:$0xff] (%p5702_p3) }
 0x49d   : > { %v5502_v63 = vpop.eup %5501  ;;  %v4423_v57 = vadd.f32 %v5500_v11, %v4422_v29  ;;  %v4469_v24 = vperm.slane %v4447_v60, 2  ;;  %v4618_v60 = vld [vmem:[%s7501_s9 + $0x58] sm:$0xff] (%p5702_p3) }
 0x49e   : > { %v4412_v5 = vsel %vm4411_vm4, %v5498_v62, %v4408_v15  ;;  %v4450_v34 = vmul.f32 %v5502_v63, %v4403_v58  ;;  %vm4455_vm11 = vweird.f32 %v5502_v63  ;;  %vm4486_vm4 = vcmask 908288  }
 0x49f   : > { %v4427_v36 = vsel %vm4426_vm6, %v5500_v11, %v4423_v57  ;;  %v4417_v37 = vsel %vm4414_vm7, %v4416_v4, %v4412_v5  ;;  %vm4456_vm15 = vmor %vm4454_vm13, %vm4455_vm11  ;;  %v4465_v62 = vunpack.c.h.bf16 %v5732_v0  ;;  %vm4562_vm6 = vcmask 1045504  }
 0x4a0   : > { %v4432_v46 = vsel %vm4429_vm8, %v4431_v55, %v4427_v36  ;;  %v4451_v45 = vsub.f32 1.0, %v4450_v34  ;;  %v4467_v2 = vperm.slane %v4417_v37, 2 }
 0x4a1   : > { %v4468_v52 = vperm.slane %v4432_v46, 2 }
 0x4a2   : > { %v4452_v26 = vmul.f32 %v5502_v63, %v4451_v45 }
 0x4a3   : > { %v4475_v30 = vrot.slane %v4468_v52, 4 }
 0x4a4   : > { %v4453_v8 = vadd.f32 %v5502_v63, %v4452_v26  ;;  %v4598_v26 = vld [vmem:[%s7501_s9 + $0x8] sm:$0xff] (%p5702_p3) }
 0x4a5   : > { %v4478_v7 = vsel %vm4477_vm2, %v4467_v2, %v4475_v30  ;;  %v4602_v2 = vld [vmem:[%s7501_s9 + $0x18] sm:$0xff] (%p5702_p3)  ;;  %v4604_v30 = vld [vmem:[%s7501_s9 + $0x20] sm:$0xff] (%p5702_p3) }
 0x4a6   : > { %4480 = vrot.lane.b32.xlu1 %v4478_v7, %s5625_s10  ;;  %v4457_v9 = vsel %vm4456_vm15, %v5502_v63, %v4453_v8  ;;  %v4608_v8 = vld [vmem:[%s7501_s9 + $0x30] sm:$0xff] (%p5702_p3)  ;;  %v4610_v7 = vld [vmem:[%s7501_s9 + $0x38] sm:$0xff] (%p5702_p3) }
 0x4a7   : > { %v4462_v16 = vsel %vm4459_vm3, %v4461_v10, %v4457_v9  ;;  %v4614_v10 = vld [vmem:[%s7501_s9 + $0x48] sm:$0xff] (%p5702_p3)  ;;  %v4616_v9 = vld [vmem:[%s7501_s9 + $0x50] sm:$0xff] (%p5702_p3) }
 0x4a8   : > { %v4470_v22 = vperm.slane %v4462_v16, 2  ;;  %v4620_v16 = vld [vmem:[%s7501_s9 + $0x60] sm:$0xff] (%p5702_p3) }
 0x4aa   : > { %v4476_v21 = vrot.slane %v4470_v22, 4  ;;  %v4624_v22 = vld [vmem:[%s7501_s9 + $0x70] sm:$0xff] (%p5702_p3) }
 0x4ac   : > { %v4479_v38 = vsel %vm4477_vm2, %v4469_v24, %v4476_v21  ;;  %v4626_v24 = vld [vmem:[%s7501_s9 + $0x78] sm:$0xff] (%p5702_p3) }
 0x4ad   : > { %4482 = vrot.lane.b32.xlu2 %v4479_v38, %s5625_s10 }
 0x4ae   : > { %4502 = vrot.lane.b32.xlu1 %v4499_v12, %s5625_s10 }
 0x4e7   : > { %v4501_v39 = vpop.permute.xlu0 %4500 }
 0x4e8   : > { %v4504_v54 = vrot.slane %v4501_v39, 4 }
 0x4ea   : > { %v4506_v41 = vsel %vm4486_vm4, %v4504_v54, %v4501_v39 }
 0x507   : > { %v4483_v18 = vpop.permute.xlu2 %4482 }
 0x508   : > { %v4485_v47 = vrot.slane %v4483_v18, 4 }
 0x50a   : > { %v4495_v31 = vmul.f32 %v4485_v47, %v4466_v27 }
 0x518   : > { %v4481_v19 = vpop.permute.xlu1 %4480 }
 0x519   : > { %v4484_v42 = vrot.slane %v4481_v19, 4 }
 0x51b   : > { %v4487_v35 = vsel %vm4486_vm4, %v4484_v42, %v4481_v19  ;;  %v4488_v51 = vsel %vm4477_vm2, %v4484_v42, %v4485_v47 }
 0x51c   : > { %v4493_v17 = vmul.f32 %v4487_v35, %v4464_v28  ;;  %v4489_v58 = vsel %vm4486_vm4, %v4488_v51, %v4483_v18 }
 0x51d   : > { %v4494_v13 = vmul.f32 %v4489_v58, %v4465_v62 }
 0x51e   : > { %v4512_v59 = vmul.f32 %v4506_v41, %v4493_v17 }
 0x520   : > { %4518 = vst [vmem:[#allocation1] ss:$2 sm:$0xff] %v4512_v59  ;;  %v4503_v11 = vpop.permute.xlu1 %4502 }
 0x521   : > { %v4505_v23 = vrot.slane %v4503_v11, 4 }
 0x523   : > { %v4507_v43 = vsel %vm4477_vm2, %v4504_v54, %v4505_v23  ;;  %v4514_v3 = vmul.f32 %v4505_v23, %v4495_v31 }
 0x524   : > { %v4508_v25 = vsel %vm4486_vm4, %v4507_v43, %v4503_v11 }
 0x525   : > { %v4513_v48 = vmul.f32 %v4508_v25, %v4494_v13  ;;  %4522 = vst [vmem:[#allocation1 + $0x20] ss:$2 sm:$0xff] %v4514_v3 }
 0x527   : > { %4520 = vst [vmem:[#allocation1 + $0x10] ss:$2 sm:$0xff] %v4513_v48  ;;  %v4523_v1 = vld.sshfl [vmem:[#allocation1] sm:$0xff pattern:$0x75316420] }
 0x528   : > { %v4524_v61 = vld.sshfl [vmem:[#allocation1 + $0x8] sm:$0xff pattern:$0x75316420] }
 0x529   : > { %v4533_v33 = vpack.c.bf16 %v4524_v61, %v4523_v1 }
 0x52b   : > { %v4539_v57 = vrot.slane %v4533_v33, 2 }
 0x52c   : > { %v4527_v29 = vld.sshfl [vmem:[#allocation1 + $0x20] sm:$0xff pattern:$0x75316420] }
 0x52d   : > { %v4535_v0 = vpack.c.bf16 %v4527_v29, %v4527_v29  ;;  %v4545_v34 = vsel %vm328_vm1, %v4533_v33, %v4539_v57 }
 0x52e   : > { %v4525_v53 = vld.sshfl [vmem:[#allocation1 + $0x10] sm:$0xff pattern:$0x75316420]  ;;  %v4526_v15 = vld.sshfl [vmem:[#allocation1 + $0x18] sm:$0xff pattern:$0x75316420] }
 0x52f   : > { %v4542_v40 = vrot.slane %v4535_v0, 2  ;;  %v4534_v63 = vpack.c.bf16 %v4526_v15, %v4525_v53 }
 0x531   : > { %v4554_v5 = vsel %vm328_vm1, %v4535_v0, %v4542_v40  ;;  %v4540_v4 = vrot.slane %v4534_v63, 4  ;;  %v4541_v55 = vrot.slane %v4534_v63, 6 }
 0x532   : > { %4558 = vrot.lane.b32.xlu0 %v4554_v5, %s5611_s27 }
 0x533   : > { %v4549_v36 = vsel %vm4546_vm5, %v4540_v4, %v4541_v55 }
 0x534   : > { %v4550_v37 = vsel %vm4477_vm2, %v4545_v34, %v4549_v36 }
 0x535   : > { %4556 = vrot.lane.b32.xlu2 %v4550_v37, %s5611_s27  ;;  %s5326_s27 = sshll.u32 (%p5702_p3), %s5585_s19, 5 }
 0x536   : > { %s4581_s23 = sadd.s32 (%p5702_p3), %s5326_s27, %s7463_s13 }
 0x537   : > { %s5327_s24 = sshll.u32 (%p5702_p3), %s4581_s23, 3 }
 0x538   : > { %s4583_s5 = scalar_lea.vmem (%p5702_p3), %s7686_s3, %s5327_s24 }
 0x539   : > { %4597 = vst [vmem:[%s4583_s5] sm:$0xff] (%p5702_p3), %v4596_v50 }
 0x53a   : > { %4599 = vst [vmem:[%s4583_s5 + $0x8] sm:$0xff] (%p5702_p3), %v4598_v26 }
 0x53b   : > { %4601 = vst [vmem:[%s4583_s5 + $0x10] sm:$0xff] (%p5702_p3), %v4600_v49 }
 0x53c   : > { %4603 = vst [vmem:[%s4583_s5 + $0x18] sm:$0xff] (%p5702_p3), %v4602_v2 }
 0x53d   : > { %4605 = vst [vmem:[%s4583_s5 + $0x40] sm:$0xff] (%p5702_p3), %v4604_v30 }
 0x53e   : > { %4607 = vst [vmem:[%s4583_s5 + $0x48] sm:$0xff] (%p5702_p3), %v4606_v56 }
 0x53f   : > { %4609 = vst [vmem:[%s4583_s5 + $0x50] sm:$0xff] (%p5702_p3), %v4608_v8 }
 0x540   : > { %4611 = vst [vmem:[%s4583_s5 + $0x58] sm:$0xff] (%p5702_p3), %v4610_v7 }
 0x541   : > { %4613 = vst [vmem:[%s4583_s5 + $0x80] sm:$0xff] (%p5702_p3), %v4612_v6 }
 0x542   : > { %4615 = vst [vmem:[%s4583_s5 + $0x88] sm:$0xff] (%p5702_p3), %v4614_v10 }
 0x543   : > { %4617 = vst [vmem:[%s4583_s5 + $0x90] sm:$0xff] (%p5702_p3), %v4616_v9 }
 0x544   : > { %4619 = vst [vmem:[%s4583_s5 + $0x98] sm:$0xff] (%p5702_p3), %v4618_v60 }
 0x545   : > { %4621 = vst [vmem:[%s4583_s5 + $0xc0] sm:$0xff] (%p5702_p3), %v4620_v16 }
 0x546   : > { %4623 = vst [vmem:[%s4583_s5 + $0xc8] sm:$0xff] (%p5702_p3), %v4622_v14 }
 0x547   : > { %4625 = vst [vmem:[%s4583_s5 + $0xd0] sm:$0xff] (%p5702_p3), %v4624_v22 }
 0x548   : > { %4627 = vst [vmem:[%s4583_s5 + $0xd8] sm:$0xff] (%p5702_p3), %v4626_v24 }
 0x58f   : > { %v4557_v46 = vpop.permute.xlu2 %4556 }
 0x590   : > { %v4560_v45 = vrot.slane %v4557_v46, 2 }
 0x5a4   : > { %v4559_v32 = vpop.permute.xlu0 %4558 }
 0x5a5   : > { %v4561_v52 = vrot.slane %v4559_v32, 2  ;;  %4578 = sbr.rel (!%p5702_p3) target bundleno = 1450 (0x5aa), region = 36 }
 0x5a7   : > { %v4563_v20 = vsel %vm4562_vm6, %v4560_v45, %v4561_v52 }
 0x5a8   : > { %v4564_v44 = vsel %vm2243_vm14, %v4557_v46, %v4563_v20 }
 0x5a9   : > { %4566 = vst [vmem:[%s7610_s12] sm:$0xff] %v4564_v44 }
 0x5aa PF: > { %s5329_s8 = sshll.u32 %s5585_s19, 3  ;;  %s4642_s10 = sshll.u32 %s7610_s12, 4  ;;  %s4643_s10 = int_to_ptr.vmem [resolvable:$true] %s4642_s10 }
 0x5ab   : > { %s4638_s11 = sadd.s32 %s5329_s8, %s7463_s13  ;;  %s5523_s19 = scalar_lea.hbm %s7687_s4, 32 }
 0x5ac   : > { %s5330_s27 = sshll.u32 %s4638_s11, 1 }
 0x5ad   : > { %s4640_s18 = scalar_lea.hbm %s7687_s4, %s5330_s27 }
 0x5ae   : > { %s4644_s30 = sshll.u32 %s4640_s18, 4  ;;  %s4645_s30 = int_to_ptr.hbm [resolvable:$true] %s4644_s30 }
 0x5af   : > { %s5517_s9 = sshra.s32 %s4645_s30, 4  ;;  %s5518_s9 = int_to_ptr.hbm [resolvable:$true] %s5517_s9 }
 0x5b0   : > { %s5519_s14 = scalar_lea.hbm %s5518_s9, 8  ;;  %p5524_p5 = scmp.lt.s32.totalorder %s5518_s9, %s7687_s4 }
 0x5b1   : > { %p5520_p1 = scmp.ne.s32.totalorder %s5518_s9, %s5519_s14  ;;  %p5525_p6 = scmp.lt.s32.totalorder %s5523_s19, %s5519_s14 }
 0x5b3   : > { %p5521_p2 = pnand %p5520_p1, %p5702_p3  ;;  %p5526_p7 = por %p5525_p6, %p5524_p5 }
 0x5b5   : > { %p5522_p4 = pneg %p5521_p2 }
 0x5b7   : > { %p5527_p9 = pnand %p5526_p7, %p5522_p4 }
 0x5b9   : > { %5530 = shalt.err (!%p5527_p9)
}
 0x5ba   : > { %s7692_s8 = scalar_lea.sflag [#allocation4], %s7397_s6 }
 0x5bb   : > { %5389 = dma.vmem_to_hbm [thread:$0]  (%p5702_p3), %s4643_s10, 128, %s4645_s30, %s7692_s8  }
 0x5bc PF: > { %p5395_p10 = scmp.ge.s32.totalorder %s5597_s22, 2  ;;  %s4663_s0 = sand.u32 1, %s5569_s15  }
 0x5bd   : > { %s4664_s11 = scalar_lea.sflag [#allocation4], %s4663_s0 }
 0x5be   : > { %p5392_p11 = pnand %p5395_p10, %p5711_p8 }
 0x5c0   : > { %p5393_p12 = pneg %p5392_p11 }
 0x5c2   : > { %5564 = dma.done.wait (%p5393_p12), %s4664_s11, 128  }
 0x5c3   : > { %5566 = vsyncadd (%p5393_p12), %s4664_s11, 4294967168  ;;  %s18_s22 = sadd.s32 1, %s5597_s22   ;;  %s7693_s15 = smov %s5573_s16 }
 0x5c4   : > { %p15_p13 = scmp.ge.s32.totalorder %s18_s22, 6   ;;  %s7694_s16 = smov %s5577_s17 }
 0x5c5   : > { %s7695_s17 = smov %s5720_s7  ;;  %s7696_s18 = smov %s5589_s20 }
 0x5c6   : > { %s7697_s19 = smov %s5593_s21  ;;  %s7698_s20 = smov %s7701_s25 }
 0x5c7   : > { %s7699_s21 = smov %s7705_s26  ;;  %17 = sbr.rel (!%p15_p13) target bundleno = 7 (0x7), region = 159 }
 0x5cc   :  { %4670 = vsyncpa [#allocation4], 1 }
 0x5cd   :  { %4672 = vsyncpa [#allocation4 + $0x1], 1 }

</bundles_post_ra>
